<compile_context>
chip_gen: v5e
topology: v5e:2x2
jax: 0.10.0
libtpu: 0.0.40
codegen_flags: <defaults>
</compile_context>

<pallas_src>
import functools

import jax
import jax.numpy as jnp
from jax import lax
from jax.experimental import pallas as pl
from jax.experimental.pallas import tpu as pltpu

LN_EPS = 1e-5
LANE = 128
MIB = 1024 * 1024


def _round_up(n, m):
    return ((n + m - 1) // m) * m


def _tpu_generation():
    """Best-effort TPU generation from device_kind; 0 if unknown."""
    try:
        kind = jax.devices()[0].device_kind
    except Exception:  # pragma: no cover
        return 0
    for ch in kind:
        if ch.isdigit():
            return int(ch)
    return 0


def _gen_config():
    """(scoped VMEM limit, max Phase-B tile) per TPU generation."""
    g = _tpu_generation()
    if g >= 7:          # v7x: 64 MiB physical VMEM, 2 TensorCores
        return 48 * MIB, 1024
    if g == 6:          # v6e: 128 MiB VMEM -> big Gram tiles pay off
        return 96 * MIB, 2048
    if g == 5:          # v5e: 128 MiB VMEM but weakest store path
        return 64 * MIB, 1024
    return 32 * MIB, 1024


# --------------------------------------------------------------------------- #
# Kernel helpers
# --------------------------------------------------------------------------- #
def _linear(h, w_ref, b_ref):
    # w: (in_pad, out_pad) in bf16 (or f32); bias (1, out_pad) f32.
    w = w_ref[...]
    return jnp.dot(h.astype(w.dtype), w,
                   preferred_element_type=jnp.float32) + b_ref[...]


def _layernorm(h, g_ref, b_ref, true_dim):
    # Feature dim is zero-padded to a multiple of 128 and padded lanes of h are
    # exactly zero (zero-padded weight columns / biases), so no mask is needed:
    # stats over the true width via sum/true_dim and E[h^2] - mean^2.
    inv_n = 1.0 / true_dim
    mean = jnp.sum(h, axis=-1, keepdims=True) * inv_n
    var = jnp.sum(h * h, axis=-1, keepdims=True) * inv_n - mean * mean
    # Padded lanes: (0 - mean) * rsqrt * gamma(=0) + beta(=0) == 0, so padding
    # stays exactly zero for downstream matmuls.
    return (h - mean) * lax.rsqrt(var + LN_EPS) * g_ref[...] + b_ref[...]


# --------------------------------------------------------------------------- #
# Phase A: row-tiled MLP (encoder -> fused heads -> reparameterize -> decoder)
# --------------------------------------------------------------------------- #
def _mlp_kernel(x_ref, eps_ref,
                w1, b1, g1, be1, w2, b2, g2, be2,          # encoder
                wml, bml,                                  # fused mu|logvar head
                wd1, bd1, gd1, bed1, wd2, bd2, gd2, bed2,  # decoder hidden
                we, bee,                                   # edge predictor
                dec_ref, mu_ref, logvar_ref,
                *, hidden_dim, latent_pad):
    h = _layernorm(jnp.maximum(_linear(x_ref[...], w1, b1), 0.0), g1, be1, hidden_dim)
    h = _layernorm(jnp.maximum(_linear(h, w2, b2), 0.0), g2, be2, hidden_dim)

    # Fused mu|logvar head: one (rt, hp) @ (hp, 2*lp) matmul, then a
    # lane-aligned split at column latent_pad.
    ml = _linear(h, wml, bml)
    mu = ml[:, :latent_pad]
    logvar = ml[:, latent_pad:]
    mu_ref[...] = mu
    logvar_ref[...] = logvar

    # reparameterize (training-mode semantics: mu + eps * exp(0.5 * logvar))
    z = mu + eps_ref[...] * jnp.exp(0.5 * logvar)

    h = _layernorm(jnp.maximum(_linear(z, wd1, bd1), 0.0), gd1, bed1, hidden_dim)
    h = _layernorm(jnp.maximum(_linear(h, wd2, bd2), 0.0), gd2, bed2, hidden_dim)

    # Emit decoded directly in the Gram-matmul dtype (bf16 by default) so no
    # wrapper-level cast pass is needed.
    dec_ref[...] = _linear(h, we, bee).astype(dec_ref.dtype)


# --------------------------------------------------------------------------- #
# Phase B: tiled Gram matrix + exact sigmoid
# --------------------------------------------------------------------------- #
def _gram_sigmoid_kernel(dl_ref, dr_ref, adj_ref):
    logits = lax.dot_general(dl_ref[...], dr_ref[...],
                             (((1,), (1,)), ((), ())),
                             preferred_element_type=jnp.float32)
    # Exact sigmoid: the divide/exp ride the EUP slot, which is idle while the
    # MXU streams tiles, so exactness is free here.
    adj_ref[...] = (1.0 / (1.0 + jnp.exp(-logits))).astype(adj_ref.dtype)


# --------------------------------------------------------------------------- #
# Host-side wrapper
# --------------------------------------------------------------------------- #
_PARAM_ORDER = ("w1", "b1", "g1", "be1", "w2", "b2", "g2", "be2",
                "wml", "bml",
                "wd1", "bd1", "gd1", "bed1", "wd2", "bd2", "gd2", "bed2",
                "we", "bee")


def _pad2d(a, rows, cols):
    return jnp.pad(a, ((0, rows - a.shape[0]), (0, cols - a.shape[1])))


def _padded_params(params, dp, hp, lp, mm_dtype):
    """Pad params lane-dense; matmul weights in mm_dtype, bias/LN params f32."""
    f32 = jnp.float32

    def pad_w(a, rows, cols):
        return _pad2d(a.astype(f32), rows, cols).astype(mm_dtype)

    def pad_v(a, cols):
        return _pad2d(a.astype(f32)[None, :], 1, cols)

    # Fuse mu / logvar heads at a lane-aligned boundary (each padded to lp).
    wml = jnp.concatenate([_pad2d(params["wmu"].astype(f32), hp, lp),
                           _pad2d(params["wlv"].astype(f32), hp, lp)],
                          axis=1).astype(mm_dtype)
    bml = jnp.concatenate([pad_v(params["bmu"], lp), pad_v(params["blv"], lp)],
                          axis=1)

    out = {
        "w1": pad_w(params["w1"], dp, hp), "b1": pad_v(params["b1"], hp),
        "g1": pad_v(params["g1"], hp), "be1": pad_v(params["be1"], hp),
        "w2": pad_w(params["w2"], hp, hp), "b2": pad_v(params["b2"], hp),
        "g2": pad_v(params["g2"], hp), "be2": pad_v(params["be2"], hp),
        "wml": wml, "bml": bml,
        "wd1": pad_w(params["wd1"], lp, hp), "bd1": pad_v(params["bd1"], hp),
        "gd1": pad_v(params["gd1"], hp), "bed1": pad_v(params["bed1"], hp),
        "wd2": pad_w(params["wd2"], hp, hp), "bd2": pad_v(params["bd2"], hp),
        "gd2": pad_v(params["gd2"], hp), "bed2": pad_v(params["bed2"], hp),
        "we": pad_w(params["we"], hp, dp), "bee": pad_v(params["bee"], dp),
    }
    return tuple(out[k] for k in _PARAM_ORDER)


def _pick_row_tile(n_padded):
    # Largest of 512/256/128 that keeps >= 2 grid steps (megacore-friendly and
    # fills the 256-row MXU M-dim on v6e/v7x). n_padded is a multiple of 128.
    for t in (512, 256, 128):
        if n_padded % t == 0 and n_padded // t >= 2:
            return t
    return n_padded


def _pick_adj_tile(n_padded, max_tile):
    # Largest allowed tile that keeps a >= 2x2 grid (both TensorCores busy on
    # v7x, fewer redundant re-reads of decoded on all generations).
    for t in (2048, 1024, 512, 256, 128):
        if t <= max_tile and n_padded % t == 0 and n_padded // t >= 2:
            return t
    return n_padded


@functools.partial(jax.jit, static_argnames=("use_bf16", "adj_out_dtype"))
def vgae_forward(x, adj, eps, params, use_bf16=True, adj_out_dtype=jnp.float32):
    del adj  # unused in the reference forward pass as well
    n, din = x.shape
    hidden = params["w1"].shape[1]
    latent = params["wmu"].shape[1]

    dp = _round_up(din, LANE)
    hp = _round_up(hidden, LANE)
    lp = _round_up(latent, LANE)
    np_ = _round_up(n, LANE)

    mm_dtype = jnp.bfloat16 if use_bf16 else jnp.float32
    vmem_limit, max_adj_tile = _gen_config()

    x_p = jnp.pad(x.astype(jnp.float32), ((0, np_ - n), (0, dp - din)))
    eps_p = jnp.pad(eps.astype(jnp.float32), ((0, np_ - n), (0, lp - latent)))
    w = _padded_params(params, dp, hp, lp, mm_dtype)

    # ---------------- phase A: row-tiled MLP ----------------
    rt = _pick_row_tile(np_)

    def row_spec(cols):
        return pl.BlockSpec((rt, cols), lambda r: (r, 0))

    def full_spec(a):
        # weights / LN params stay fully resident across the row grid
        return pl.BlockSpec(a.shape, lambda r: (0, 0))

    decoded, mu_p, logvar_p = pl.pallas_call(
        functools.partial(_mlp_kernel, hidden_dim=hidden, latent_pad=lp),
        grid=(np_ // rt,),
        in_specs=[row_spec(dp), row_spec(lp)] + [full_spec(a) for a in w],
        out_specs=(row_spec(dp), row_spec(lp), row_spec(lp)),
        out_shape=(jax.ShapeDtypeStruct((np_, dp), mm_dtype),   # decoded (bf16 by default)
                   jax.ShapeDtypeStruct((np_, lp), jnp.float32),
                   jax.ShapeDtypeStruct((np_, lp), jnp.float32)),
        compiler_params=pltpu.CompilerParams(
            dimension_semantics=("parallel",),
            vmem_limit_bytes=vmem_limit),
    )(x_p, eps_p, *w)

    # ---------------- phase B: tiled Gram + sigmoid ----------------
    t = _pick_adj_tile(np_, max_adj_tile)

    adj_pred = pl.pallas_call(
        _gram_sigmoid_kernel,
        grid=(np_ // t, np_ // t),
        in_specs=[pl.BlockSpec((t, dp), lambda i, j: (i, 0)),
                  pl.BlockSpec((t, dp), lambda i, j: (j, 0))],
        out_specs=pl.BlockSpec((t, t), lambda i, j: (i, j)),
        out_shape=jax.ShapeDtypeStruct((np_, np_), adj_out_dtype),
        compiler_params=pltpu.CompilerParams(
            dimension_semantics=("parallel", "parallel"),
            vmem_limit_bytes=vmem_limit),
    )(decoded, decoded)

    # The Gram matrix is symmetric by construction (same products, same
    # accumulation order for (i,j) and (j,i)), so the reference's
    # 0.5 * (A + A.T) is a no-op; we skip the full N x N transpose.
    return adj_pred[:n, :n], mu_p[:n, :latent], logvar_p[:n, :latent]


# --------------------------------------------------------------------------- #
# Deterministic init + pure-JAX reference
# --------------------------------------------------------------------------- #
def init_params(key, input_dim, hidden_dim, latent_dim):
    """Synthetic init: Linear weights/biases ~ 0.1*N(0,1); LN gamma=1, beta=0."""
    ks = jax.random.split(key, 8)

    def lin(k, din, dout):
        kw, kb = jax.random.split(k)
        return (0.1 * jax.random.normal(kw, (din, dout), jnp.float32),
                0.1 * jax.random.normal(kb, (dout,), jnp.float32))

    ones = lambda d: jnp.ones((d,), jnp.float32)
    zeros = lambda d: jnp.zeros((d,), jnp.float32)

    p = {}
    p["w1"], p["b1"] = lin(ks[0], input_dim, hidden_dim)
    p["g1"], p["be1"] = ones(hidden_dim), zeros(hidden_dim)
    p["w2"], p["b2"] = lin(ks[1], hidden_dim, hidden_dim)
    p["g2"], p["be2"] = ones(hidden_dim), zeros(hidden_dim)
    p["wmu"], p["bmu"] = lin(ks[2], hidden_dim, latent_dim)
    p["wlv"], p["blv"] = lin(ks[3], hidden_dim, latent_dim)
    p["wd1"], p["bd1"] = lin(ks[4], latent_dim, hidden_dim)
    p["gd1"], p["bed1"] = ones(hidden_dim), zeros(hidden_dim)
    p["wd2"], p["bd2"] = lin(ks[5], hidden_dim, hidden_dim)
    p["gd2"], p["bed2"] = ones(hidden_dim), zeros(hidden_dim)
    p["we"], p["bee"] = lin(ks[6], hidden_dim, input_dim)
    return p


def vgae_reference(x, eps, p, mm_dtype=jnp.float32):
    """Pure-JAX reference. mm_dtype controls matmul-input precision so the
    bf16 kernel path can be checked against matched bf16 math."""
    def mm(a, w):
        return jnp.dot(a.astype(mm_dtype), w.astype(mm_dtype),
                       preferred_element_type=jnp.float32)

    def ln(h, g, b):
        m = jnp.mean(h, axis=-1, keepdims=True)
        v = jnp.mean((h - m) ** 2, axis=-1, keepdims=True)
        return (h - m) / jnp.sqrt(v + LN_EPS) * g + b

    h = ln(jnp.maximum(mm(x, p["w1"]) + p["b1"], 0.0), p["g1"], p["be1"])
    h = ln(jnp.maximum(mm(h, p["w2"]) + p["b2"], 0.0), p["g2"], p["be2"])
    mu = mm(h, p["wmu"]) + p["bmu"]
    logvar = mm(h, p["wlv"]) + p["blv"]
    z = mu + eps * jnp.exp(0.5 * logvar)
    h = ln(jnp.maximum(mm(z, p["wd1"]) + p["bd1"], 0.0), p["gd1"], p["bed1"])
    h = ln(jnp.maximum(mm(h, p["wd2"]) + p["bd2"], 0.0), p["gd2"], p["bed2"])
    d = (mm(h, p["we"]) + p["bee"]).astype(mm_dtype)
    a = jax.nn.sigmoid(mm(d, d.T))
    return 0.5 * (a + a.T), mu, logvar


if __name__ == "__main__":
    N, input_dim, hidden_dim, latent_dim = 256, 16, 32, 8

    key = jax.random.PRNGKey(0)
    kx, kadj, keps, kp = jax.random.split(key, 4)
    x = jax.random.normal(kx, (N, input_dim), jnp.float32)
    adj = (jax.random.uniform(kadj, (N, N)) > 0.5).astype(jnp.float32)
    eps = jax.random.normal(keps, (N, latent_dim), jnp.float32)
    params = init_params(kp, input_dim, hidden_dim, latent_dim)

    # ---- default fast path: bf16 matmuls / bf16 Gram inputs ----
    adj_rec, mu, logvar = vgae_forward(x, adj, eps, params)
    jax.block_until_ready((adj_rec, mu, logvar))

    rab, rmb, rlb = vgae_reference(x, eps, params, mm_dtype=jnp.bfloat16)
    assert jnp.allclose(mu, rmb, atol=3e-2), "bf16 mu mismatch"
    assert jnp.allclose(logvar, rlb, atol=3e-2), "bf16 logvar mismatch"
    assert jnp.allclose(adj_rec, rab, atol=3e-2), "bf16 adj mismatch"
    # symmetric without the explicit (A + A.T)/2 in the kernel
    assert jnp.allclose(adj_rec, adj_rec.T, atol=1e-6), "adj not symmetric"
    assert adj_rec.shape == (N, N) and mu.shape == (N, latent_dim) and logvar.shape == (N, latent_dim)

    # ---- exact f32 path: tight check of kernel structure / semantics ----
    adj32, mu32, lv32 = vgae_forward(x, adj, eps, params, use_bf16=False)
    jax.block_until_ready((adj32, mu32, lv32))
    ra, rm, rl = vgae_reference(x, eps, params)
    assert jnp.allclose(mu32, rm, atol=1e-4), "f32 mu mismatch"
    assert jnp.allclose(lv32, rl, atol=1e-4), "f32 logvar mismatch"
    assert jnp.allclose(adj32, ra, atol=1e-3), "f32 adj mismatch"
    assert jnp.allclose(adj32, adj32.T, atol=1e-6), "f32 adj not symmetric"

    print("KERNEL_OK")
</pallas_src>

<mosaic_0001>
module attributes {stable_mosaic.version = 11 : i64} {
  func.func @_mlp_kernel(%arg0: i32, %arg1: memref<128x128xf32, #tpu.memory_space<vmem>>, %arg2: memref<128x128xf32, #tpu.memory_space<vmem>>, %arg3: memref<128x128xbf16, #tpu.memory_space<vmem>>, %arg4: memref<1x128xf32, #tpu.memory_space<vmem>>, %arg5: memref<1x128xf32, #tpu.memory_space<vmem>>, %arg6: memref<1x128xf32, #tpu.memory_space<vmem>>, %arg7: memref<128x128xbf16, #tpu.memory_space<vmem>>, %arg8: memref<1x128xf32, #tpu.memory_space<vmem>>, %arg9: memref<1x128xf32, #tpu.memory_space<vmem>>, %arg10: memref<1x128xf32, #tpu.memory_space<vmem>>, %arg11: memref<128x256xbf16, #tpu.memory_space<vmem>>, %arg12: memref<1x256xf32, #tpu.memory_space<vmem>>, %arg13: memref<128x128xbf16, #tpu.memory_space<vmem>>, %arg14: memref<1x128xf32, #tpu.memory_space<vmem>>, %arg15: memref<1x128xf32, #tpu.memory_space<vmem>>, %arg16: memref<1x128xf32, #tpu.memory_space<vmem>>, %arg17: memref<128x128xbf16, #tpu.memory_space<vmem>>, %arg18: memref<1x128xf32, #tpu.memory_space<vmem>>, %arg19: memref<1x128xf32, #tpu.memory_space<vmem>>, %arg20: memref<1x128xf32, #tpu.memory_space<vmem>>, %arg21: memref<128x128xbf16, #tpu.memory_space<vmem>>, %arg22: memref<1x128xf32, #tpu.memory_space<vmem>>, %arg23: memref<128x128xbf16, #tpu.memory_space<vmem>>, %arg24: memref<128x128xf32, #tpu.memory_space<vmem>>, %arg25: memref<128x128xf32, #tpu.memory_space<vmem>>) attributes {dimension_semantics = [#tpu.dimension_semantics<parallel>], iteration_bounds = array<i64: 2>, scalar_prefetch = 0 : i64, scratch_operands = 0 : i64, tpu.core_type = #tpu.core_type<tc>, window_params = [{transform_indices = @transform_0, window_bounds = array<i64: 128, 128>}, {transform_indices = @transform_1, window_bounds = array<i64: 128, 128>}, {pipeline_mode = #tpu.pipeline_mode<synchronous>, transform_indices = @transform_2, window_bounds = array<i64: 128, 128>}, {pipeline_mode = #tpu.pipeline_mode<synchronous>, transform_indices = @transform_3, window_bounds = array<i64: 1, 128>}, {pipeline_mode = #tpu.pipeline_mode<synchronous>, transform_indices = @transform_4, window_bounds = array<i64: 1, 128>}, {pipeline_mode = #tpu.pipeline_mode<synchronous>, transform_indices = @transform_5, window_bounds = array<i64: 1, 128>}, {pipeline_mode = #tpu.pipeline_mode<synchronous>, transform_indices = @transform_6, window_bounds = array<i64: 128, 128>}, {pipeline_mode = #tpu.pipeline_mode<synchronous>, transform_indices = @transform_7, window_bounds = array<i64: 1, 128>}, {pipeline_mode = #tpu.pipeline_mode<synchronous>, transform_indices = @transform_8, window_bounds = array<i64: 1, 128>}, {pipeline_mode = #tpu.pipeline_mode<synchronous>, transform_indices = @transform_9, window_bounds = array<i64: 1, 128>}, {pipeline_mode = #tpu.pipeline_mode<synchronous>, transform_indices = @transform_10, window_bounds = array<i64: 128, 256>}, {pipeline_mode = #tpu.pipeline_mode<synchronous>, transform_indices = @transform_11, window_bounds = array<i64: 1, 256>}, {pipeline_mode = #tpu.pipeline_mode<synchronous>, transform_indices = @transform_12, window_bounds = array<i64: 128, 128>}, {pipeline_mode = #tpu.pipeline_mode<synchronous>, transform_indices = @transform_13, window_bounds = array<i64: 1, 128>}, {pipeline_mode = #tpu.pipeline_mode<synchronous>, transform_indices = @transform_14, window_bounds = array<i64: 1, 128>}, {pipeline_mode = #tpu.pipeline_mode<synchronous>, transform_indices = @transform_15, window_bounds = array<i64: 1, 128>}, {pipeline_mode = #tpu.pipeline_mode<synchronous>, transform_indices = @transform_16, window_bounds = array<i64: 128, 128>}, {pipeline_mode = #tpu.pipeline_mode<synchronous>, transform_indices = @transform_17, window_bounds = array<i64: 1, 128>}, {pipeline_mode = #tpu.pipeline_mode<synchronous>, transform_indices = @transform_18, window_bounds = array<i64: 1, 128>}, {pipeline_mode = #tpu.pipeline_mode<synchronous>, transform_indices = @transform_19, window_bounds = array<i64: 1, 128>}, {pipeline_mode = #tpu.pipeline_mode<synchronous>, transform_indices = @transform_20, window_bounds = array<i64: 128, 128>}, {pipeline_mode = #tpu.pipeline_mode<synchronous>, transform_indices = @transform_21, window_bounds = array<i64: 1, 128>}, {transform_indices = @transform_22, window_bounds = array<i64: 128, 128>}, {transform_indices = @transform_23, window_bounds = array<i64: 128, 128>}, {transform_indices = @transform_24, window_bounds = array<i64: 128, 128>}]} {
    %c0 = arith.constant 0 : index
    %c0_0 = arith.constant 0 : index
    %0 = vector.load %arg1[%c0, %c0_0] : memref<128x128xf32, #tpu.memory_space<vmem>>, vector<128x128xf32>
    %c0_1 = arith.constant 0 : index
    %c0_2 = arith.constant 0 : index
    %1 = vector.load %arg3[%c0_1, %c0_2] : memref<128x128xbf16, #tpu.memory_space<vmem>>, vector<128x128xbf16>
    %2 = arith.truncf %0 : vector<128x128xf32> to vector<128x128xbf16>
    %cst = arith.constant dense<0.000000e+00> : vector<128x128xf32>
    %3 = tpu.matmul %2, %1, %cst {dimension_numbers = #tpu.dot_dimension_numbers<[1], [0], [0], [1], [0, 0, 1, 1], [], []>} : vector<128x128xbf16>, vector<128x128xbf16>, vector<128x128xf32> -> vector<128x128xf32>
    %c0_3 = arith.constant 0 : index
    %c0_4 = arith.constant 0 : index
    %4 = vector.load %arg4[%c0_3, %c0_4] : memref<1x128xf32, #tpu.memory_space<vmem>>, vector<1x128xf32>
    %5 = vector.broadcast %4 : vector<1x128xf32> to vector<128x128xf32>
    %6 = arith.addf %3, %5 : vector<128x128xf32>
    %cst_5 = arith.constant 0.000000e+00 : f32
    %7 = vector.broadcast %cst_5 : f32 to vector<128x128xf32>
    %8 = arith.maximumf %6, %7 : vector<128x128xf32>
    %cst_6 = arith.constant dense<0.000000e+00> : vector<128xf32>
    %9 = vector.multi_reduction <add>, %8, %cst_6 [1] : vector<128x128xf32> to vector<128xf32>
    %10 = vector.shape_cast %9 : vector<128xf32> to vector<128x1xf32>
    %cst_7 = arith.constant 3.125000e-02 : f32
    %11 = vector.broadcast %cst_7 : f32 to vector<128x1xf32>
    %12 = arith.mulf %10, %11 : vector<128x1xf32>
    %13 = arith.mulf %8, %8 : vector<128x128xf32>
    %cst_8 = arith.constant dense<0.000000e+00> : vector<128xf32>
    %14 = vector.multi_reduction <add>, %13, %cst_8 [1] : vector<128x128xf32> to vector<128xf32>
    %15 = vector.shape_cast %14 : vector<128xf32> to vector<128x1xf32>
    %cst_9 = arith.constant 3.125000e-02 : f32
    %16 = vector.broadcast %cst_9 : f32 to vector<128x1xf32>
    %17 = arith.mulf %15, %16 : vector<128x1xf32>
    %18 = arith.mulf %12, %12 : vector<128x1xf32>
    %19 = arith.subf %17, %18 : vector<128x1xf32>
    %20 = vector.broadcast %12 : vector<128x1xf32> to vector<128x128xf32>
    %21 = arith.subf %8, %20 : vector<128x128xf32>
    %cst_10 = arith.constant 9.99999974E-6 : f32
    %22 = vector.broadcast %cst_10 : f32 to vector<128x1xf32>
    %23 = arith.addf %19, %22 : vector<128x1xf32>
    %24 = math.rsqrt %23 : vector<128x1xf32>
    %25 = vector.broadcast %24 : vector<128x1xf32> to vector<128x128xf32>
    %26 = arith.mulf %21, %25 : vector<128x128xf32>
    %c0_11 = arith.constant 0 : index
    %c0_12 = arith.constant 0 : index
    %27 = vector.load %arg5[%c0_11, %c0_12] : memref<1x128xf32, #tpu.memory_space<vmem>>, vector<1x128xf32>
    %28 = vector.broadcast %27 : vector<1x128xf32> to vector<128x128xf32>
    %29 = arith.mulf %26, %28 : vector<128x128xf32>
    %c0_13 = arith.constant 0 : index
    %c0_14 = arith.constant 0 : index
    %30 = vector.load %arg6[%c0_13, %c0_14] : memref<1x128xf32, #tpu.memory_space<vmem>>, vector<1x128xf32>
    %31 = vector.broadcast %30 : vector<1x128xf32> to vector<128x128xf32>
    %32 = arith.addf %29, %31 : vector<128x128xf32>
    %c0_15 = arith.constant 0 : index
    %c0_16 = arith.constant 0 : index
    %33 = vector.load %arg7[%c0_15, %c0_16] : memref<128x128xbf16, #tpu.memory_space<vmem>>, vector<128x128xbf16>
    %34 = arith.truncf %32 : vector<128x128xf32> to vector<128x128xbf16>
    %cst_17 = arith.constant dense<0.000000e+00> : vector<128x128xf32>
    %35 = tpu.matmul %34, %33, %cst_17 {dimension_numbers = #tpu.dot_dimension_numbers<[1], [0], [0], [1], [0, 0, 1, 1], [], []>} : vector<128x128xbf16>, vector<128x128xbf16>, vector<128x128xf32> -> vector<128x128xf32>
    %c0_18 = arith.constant 0 : index
    %c0_19 = arith.constant 0 : index
    %36 = vector.load %arg8[%c0_18, %c0_19] : memref<1x128xf32, #tpu.memory_space<vmem>>, vector<1x128xf32>
    %37 = vector.broadcast %36 : vector<1x128xf32> to vector<128x128xf32>
    %38 = arith.addf %35, %37 : vector<128x128xf32>
    %cst_20 = arith.constant 0.000000e+00 : f32
    %39 = vector.broadcast %cst_20 : f32 to vector<128x128xf32>
    %40 = arith.maximumf %38, %39 : vector<128x128xf32>
    %cst_21 = arith.constant dense<0.000000e+00> : vector<128xf32>
    %41 = vector.multi_reduction <add>, %40, %cst_21 [1] : vector<128x128xf32> to vector<128xf32>
    %42 = vector.shape_cast %41 : vector<128xf32> to vector<128x1xf32>
    %cst_22 = arith.constant 3.125000e-02 : f32
    %43 = vector.broadcast %cst_22 : f32 to vector<128x1xf32>
    %44 = arith.mulf %42, %43 : vector<128x1xf32>
    %45 = arith.mulf %40, %40 : vector<128x128xf32>
    %cst_23 = arith.constant dense<0.000000e+00> : vector<128xf32>
    %46 = vector.multi_reduction <add>, %45, %cst_23 [1] : vector<128x128xf32> to vector<128xf32>
    %47 = vector.shape_cast %46 : vector<128xf32> to vector<128x1xf32>
    %cst_24 = arith.constant 3.125000e-02 : f32
    %48 = vector.broadcast %cst_24 : f32 to vector<128x1xf32>
    %49 = arith.mulf %47, %48 : vector<128x1xf32>
    %50 = arith.mulf %44, %44 : vector<128x1xf32>
    %51 = arith.subf %49, %50 : vector<128x1xf32>
    %52 = vector.broadcast %44 : vector<128x1xf32> to vector<128x128xf32>
    %53 = arith.subf %40, %52 : vector<128x128xf32>
    %cst_25 = arith.constant 9.99999974E-6 : f32
    %54 = vector.broadcast %cst_25 : f32 to vector<128x1xf32>
    %55 = arith.addf %51, %54 : vector<128x1xf32>
    %56 = math.rsqrt %55 : vector<128x1xf32>
    %57 = vector.broadcast %56 : vector<128x1xf32> to vector<128x128xf32>
    %58 = arith.mulf %53, %57 : vector<128x128xf32>
    %c0_26 = arith.constant 0 : index
    %c0_27 = arith.constant 0 : index
    %59 = vector.load %arg9[%c0_26, %c0_27] : memref<1x128xf32, #tpu.memory_space<vmem>>, vector<1x128xf32>
    %60 = vector.broadcast %59 : vector<1x128xf32> to vector<128x128xf32>
    %61 = arith.mulf %58, %60 : vector<128x128xf32>
    %c0_28 = arith.constant 0 : index
    %c0_29 = arith.constant 0 : index
    %62 = vector.load %arg10[%c0_28, %c0_29] : memref<1x128xf32, #tpu.memory_space<vmem>>, vector<1x128xf32>
    %63 = vector.broadcast %62 : vector<1x128xf32> to vector<128x128xf32>
    %64 = arith.addf %61, %63 : vector<128x128xf32>
    %c0_30 = arith.constant 0 : index
    %c0_31 = arith.constant 0 : index
    %65 = vector.load %arg11[%c0_30, %c0_31] : memref<128x256xbf16, #tpu.memory_space<vmem>>, vector<128x256xbf16>
    %66 = arith.truncf %64 : vector<128x128xf32> to vector<128x128xbf16>
    %cst_32 = arith.constant dense<0.000000e+00> : vector<128x256xf32>
    %67 = tpu.matmul %66, %65, %cst_32 {dimension_numbers = #tpu.dot_dimension_numbers<[1], [0], [0], [1], [0, 0, 1, 1], [], []>} : vector<128x128xbf16>, vector<128x256xbf16>, vector<128x256xf32> -> vector<128x256xf32>
    %c0_33 = arith.constant 0 : index
    %c0_34 = arith.constant 0 : index
    %68 = vector.load %arg12[%c0_33, %c0_34] : memref<1x256xf32, #tpu.memory_space<vmem>>, vector<1x256xf32>
    %69 = vector.broadcast %68 : vector<1x256xf32> to vector<128x256xf32>
    %70 = arith.addf %67, %69 : vector<128x256xf32>
    %71 = vector.extract_strided_slice %70 {offsets = [0, 0], sizes = [128, 128], strides = [1, 1]} : vector<128x256xf32> to vector<128x128xf32>
    %72 = vector.extract_strided_slice %70 {offsets = [0, 128], sizes = [128, 128], strides = [1, 1]} : vector<128x256xf32> to vector<128x128xf32>
    %c0_35 = arith.constant 0 : index
    %c0_36 = arith.constant 0 : index
    %73 = vector.load %arg24[%c0_35, %c0_36] : memref<128x128xf32, #tpu.memory_space<vmem>>, vector<128x128xf32>
    tpu.vector_store %arg24[%c0_35, %c0_36], %71 {strides = array<i32>} : memref<128x128xf32, #tpu.memory_space<vmem>>, vector<128x128xf32>,
    %c0_37 = arith.constant 0 : index
    %c0_38 = arith.constant 0 : index
    %74 = vector.load %arg25[%c0_37, %c0_38] : memref<128x128xf32, #tpu.memory_space<vmem>>, vector<128x128xf32>
    tpu.vector_store %arg25[%c0_37, %c0_38], %72 {strides = array<i32>} : memref<128x128xf32, #tpu.memory_space<vmem>>, vector<128x128xf32>,
    %c0_39 = arith.constant 0 : index
    %c0_40 = arith.constant 0 : index
    %75 = vector.load %arg2[%c0_39, %c0_40] : memref<128x128xf32, #tpu.memory_space<vmem>>, vector<128x128xf32>
    %cst_41 = arith.constant 5.000000e-01 : f32
    %76 = vector.broadcast %cst_41 : f32 to vector<128x128xf32>
    %77 = arith.mulf %76, %72 : vector<128x128xf32>
    %78 = math.exp %77 : vector<128x128xf32>
    %79 = arith.mulf %75, %78 : vector<128x128xf32>
    %80 = arith.addf %71, %79 : vector<128x128xf32>
    %c0_42 = arith.constant 0 : index
    %c0_43 = arith.constant 0 : index
    %81 = vector.load %arg13[%c0_42, %c0_43] : memref<128x128xbf16, #tpu.memory_space<vmem>>, vector<128x128xbf16>
    %82 = arith.truncf %80 : vector<128x128xf32> to vector<128x128xbf16>
    %cst_44 = arith.constant dense<0.000000e+00> : vector<128x128xf32>
    %83 = tpu.matmul %82, %81, %cst_44 {dimension_numbers = #tpu.dot_dimension_numbers<[1], [0], [0], [1], [0, 0, 1, 1], [], []>} : vector<128x128xbf16>, vector<128x128xbf16>, vector<128x128xf32> -> vector<128x128xf32>
    %c0_45 = arith.constant 0 : index
    %c0_46 = arith.constant 0 : index
    %84 = vector.load %arg14[%c0_45, %c0_46] : memref<1x128xf32, #tpu.memory_space<vmem>>, vector<1x128xf32>
    %85 = vector.broadcast %84 : vector<1x128xf32> to vector<128x128xf32>
    %86 = arith.addf %83, %85 : vector<128x128xf32>
    %cst_47 = arith.constant 0.000000e+00 : f32
    %87 = vector.broadcast %cst_47 : f32 to vector<128x128xf32>
    %88 = arith.maximumf %86, %87 : vector<128x128xf32>
    %cst_48 = arith.constant dense<0.000000e+00> : vector<128xf32>
    %89 = vector.multi_reduction <add>, %88, %cst_48 [1] : vector<128x128xf32> to vector<128xf32>
    %90 = vector.shape_cast %89 : vector<128xf32> to vector<128x1xf32>
    %cst_49 = arith.constant 3.125000e-02 : f32
    %91 = vector.broadcast %cst_49 : f32 to vector<128x1xf32>
    %92 = arith.mulf %90, %91 : vector<128x1xf32>
    %93 = arith.mulf %88, %88 : vector<128x128xf32>
    %cst_50 = arith.constant dense<0.000000e+00> : vector<128xf32>
    %94 = vector.multi_reduction <add>, %93, %cst_50 [1] : vector<128x128xf32> to vector<128xf32>
    %95 = vector.shape_cast %94 : vector<128xf32> to vector<128x1xf32>
    %cst_51 = arith.constant 3.125000e-02 : f32
    %96 = vector.broadcast %cst_51 : f32 to vector<128x1xf32>
    %97 = arith.mulf %95, %96 : vector<128x1xf32>
    %98 = arith.mulf %92, %92 : vector<128x1xf32>
    %99 = arith.subf %97, %98 : vector<128x1xf32>
    %100 = vector.broadcast %92 : vector<128x1xf32> to vector<128x128xf32>
    %101 = arith.subf %88, %100 : vector<128x128xf32>
    %cst_52 = arith.constant 9.99999974E-6 : f32
    %102 = vector.broadcast %cst_52 : f32 to vector<128x1xf32>
    %103 = arith.addf %99, %102 : vector<128x1xf32>
    %104 = math.rsqrt %103 : vector<128x1xf32>
    %105 = vector.broadcast %104 : vector<128x1xf32> to vector<128x128xf32>
    %106 = arith.mulf %101, %105 : vector<128x128xf32>
    %c0_53 = arith.constant 0 : index
    %c0_54 = arith.constant 0 : index
    %107 = vector.load %arg15[%c0_53, %c0_54] : memref<1x128xf32, #tpu.memory_space<vmem>>, vector<1x128xf32>
    %108 = vector.broadcast %107 : vector<1x128xf32> to vector<128x128xf32>
    %109 = arith.mulf %106, %108 : vector<128x128xf32>
    %c0_55 = arith.constant 0 : index
    %c0_56 = arith.constant 0 : index
    %110 = vector.load %arg16[%c0_55, %c0_56] : memref<1x128xf32, #tpu.memory_space<vmem>>, vector<1x128xf32>
    %111 = vector.broadcast %110 : vector<1x128xf32> to vector<128x128xf32>
    %112 = arith.addf %109, %111 : vector<128x128xf32>
    %c0_57 = arith.constant 0 : index
    %c0_58 = arith.constant 0 : index
    %113 = vector.load %arg17[%c0_57, %c0_58] : memref<128x128xbf16, #tpu.memory_space<vmem>>, vector<128x128xbf16>
    %114 = arith.truncf %112 : vector<128x128xf32> to vector<128x128xbf16>
    %cst_59 = arith.constant dense<0.000000e+00> : vector<128x128xf32>
    %115 = tpu.matmul %114, %113, %cst_59 {dimension_numbers = #tpu.dot_dimension_numbers<[1], [0], [0], [1], [0, 0, 1, 1], [], []>} : vector<128x128xbf16>, vector<128x128xbf16>, vector<128x128xf32> -> vector<128x128xf32>
    %c0_60 = arith.constant 0 : index
    %c0_61 = arith.constant 0 : index
    %116 = vector.load %arg18[%c0_60, %c0_61] : memref<1x128xf32, #tpu.memory_space<vmem>>, vector<1x128xf32>
    %117 = vector.broadcast %116 : vector<1x128xf32> to vector<128x128xf32>
    %118 = arith.addf %115, %117 : vector<128x128xf32>
    %cst_62 = arith.constant 0.000000e+00 : f32
    %119 = vector.broadcast %cst_62 : f32 to vector<128x128xf32>
    %120 = arith.maximumf %118, %119 : vector<128x128xf32>
    %cst_63 = arith.constant dense<0.000000e+00> : vector<128xf32>
    %121 = vector.multi_reduction <add>, %120, %cst_63 [1] : vector<128x128xf32> to vector<128xf32>
    %122 = vector.shape_cast %121 : vector<128xf32> to vector<128x1xf32>
    %cst_64 = arith.constant 3.125000e-02 : f32
    %123 = vector.broadcast %cst_64 : f32 to vector<128x1xf32>
    %124 = arith.mulf %122, %123 : vector<128x1xf32>
    %125 = arith.mulf %120, %120 : vector<128x128xf32>
    %cst_65 = arith.constant dense<0.000000e+00> : vector<128xf32>
    %126 = vector.multi_reduction <add>, %125, %cst_65 [1] : vector<128x128xf32> to vector<128xf32>
    %127 = vector.shape_cast %126 : vector<128xf32> to vector<128x1xf32>
    %cst_66 = arith.constant 3.125000e-02 : f32
    %128 = vector.broadcast %cst_66 : f32 to vector<128x1xf32>
    %129 = arith.mulf %127, %128 : vector<128x1xf32>
    %130 = arith.mulf %124, %124 : vector<128x1xf32>
    %131 = arith.subf %129, %130 : vector<128x1xf32>
    %132 = vector.broadcast %124 : vector<128x1xf32> to vector<128x128xf32>
    %133 = arith.subf %120, %132 : vector<128x128xf32>
    %cst_67 = arith.constant 9.99999974E-6 : f32
    %134 = vector.broadcast %cst_67 : f32 to vector<128x1xf32>
    %135 = arith.addf %131, %134 : vector<128x1xf32>
    %136 = math.rsqrt %135 : vector<128x1xf32>
    %137 = vector.broadcast %136 : vector<128x1xf32> to vector<128x128xf32>
    %138 = arith.mulf %133, %137 : vector<128x128xf32>
    %c0_68 = arith.constant 0 : index
    %c0_69 = arith.constant 0 : index
    %139 = vector.load %arg19[%c0_68, %c0_69] : memref<1x128xf32, #tpu.memory_space<vmem>>, vector<1x128xf32>
    %140 = vector.broadcast %139 : vector<1x128xf32> to vector<128x128xf32>
    %141 = arith.mulf %138, %140 : vector<128x128xf32>
    %c0_70 = arith.constant 0 : index
    %c0_71 = arith.constant 0 : index
    %142 = vector.load %arg20[%c0_70, %c0_71] : memref<1x128xf32, #tpu.memory_space<vmem>>, vector<1x128xf32>
    %143 = vector.broadcast %142 : vector<1x128xf32> to vector<128x128xf32>
    %144 = arith.addf %141, %143 : vector<128x128xf32>
    %c0_72 = arith.constant 0 : index
    %c0_73 = arith.constant 0 : index
    %145 = vector.load %arg21[%c0_72, %c0_73] : memref<128x128xbf16, #tpu.memory_space<vmem>>, vector<128x128xbf16>
    %146 = arith.truncf %144 : vector<128x128xf32> to vector<128x128xbf16>
    %cst_74 = arith.constant dense<0.000000e+00> : vector<128x128xf32>
    %147 = tpu.matmul %146, %145, %cst_74 {dimension_numbers = #tpu.dot_dimension_numbers<[1], [0], [0], [1], [0, 0, 1, 1], [], []>} : vector<128x128xbf16>, vector<128x128xbf16>, vector<128x128xf32> -> vector<128x128xf32>
    %c0_75 = arith.constant 0 : index
    %c0_76 = arith.constant 0 : index
    %148 = vector.load %arg22[%c0_75, %c0_76] : memref<1x128xf32, #tpu.memory_space<vmem>>, vector<1x128xf32>
    %149 = vector.broadcast %148 : vector<1x128xf32> to vector<128x128xf32>
    %150 = arith.addf %147, %149 : vector<128x128xf32>
    %151 = arith.truncf %150 : vector<128x128xf32> to vector<128x128xbf16>
    %c0_77 = arith.constant 0 : index
    %c0_78 = arith.constant 0 : index
    %152 = vector.load %arg23[%c0_77, %c0_78] : memref<128x128xbf16, #tpu.memory_space<vmem>>, vector<128x128xbf16>
    tpu.vector_store %arg23[%c0_77, %c0_78], %151 {strides = array<i32>} : memref<128x128xbf16, #tpu.memory_space<vmem>>, vector<128x128xbf16>,
    return
  }
  func.func @transform_0(%arg0: i32) -> (i32, i32) {
    %c0_i32 = arith.constant 0 : i32
    %c0_i32_0 = arith.constant 0 : i32
    return %arg0, %c0_i32 : i32, i32
  }
  func.func @transform_1(%arg0: i32) -> (i32, i32) {
    %c0_i32 = arith.constant 0 : i32
    %c0_i32_0 = arith.constant 0 : i32
    return %arg0, %c0_i32 : i32, i32
  }
  func.func @transform_2(%arg0: i32) -> (i32, i32) {
    %c0_i32 = arith.constant 0 : i32
    %c0_i32_0 = arith.constant 0 : i32
    %c0_i32_1 = arith.constant 0 : i32
    return %c0_i32, %c0_i32_0 : i32, i32
  }
  func.func @transform_3(%arg0: i32) -> (i32, i32) {
    %c0_i32 = arith.constant 0 : i32
    %c0_i32_0 = arith.constant 0 : i32
    %c0_i32_1 = arith.constant 0 : i32
    return %c0_i32, %c0_i32_0 : i32, i32
  }
  func.func @transform_4(%arg0: i32) -> (i32, i32) {
    %c0_i32 = arith.constant 0 : i32
    %c0_i32_0 = arith.constant 0 : i32
    %c0_i32_1 = arith.constant 0 : i32
    return %c0_i32, %c0_i32_0 : i32, i32
  }
  func.func @transform_5(%arg0: i32) -> (i32, i32) {
    %c0_i32 = arith.constant 0 : i32
    %c0_i32_0 = arith.constant 0 : i32
    %c0_i32_1 = arith.constant 0 : i32
    return %c0_i32, %c0_i32_0 : i32, i32
  }
  func.func @transform_6(%arg0: i32) -> (i32, i32) {
    %c0_i32 = arith.constant 0 : i32
    %c0_i32_0 = arith.constant 0 : i32
    %c0_i32_1 = arith.constant 0 : i32
    return %c0_i32, %c0_i32_0 : i32, i32
  }
  func.func @transform_7(%arg0: i32) -> (i32, i32) {
    %c0_i32 = arith.constant 0 : i32
    %c0_i32_0 = arith.constant 0 : i32
    %c0_i32_1 = arith.constant 0 : i32
    return %c0_i32, %c0_i32_0 : i32, i32
  }
  func.func @transform_8(%arg0: i32) -> (i32, i32) {
    %c0_i32 = arith.constant 0 : i32
    %c0_i32_0 = arith.constant 0 : i32
    %c0_i32_1 = arith.constant 0 : i32
    return %c0_i32, %c0_i32_0 : i32, i32
  }
  func.func @transform_9(%arg0: i32) -> (i32, i32) {
    %c0_i32 = arith.constant 0 : i32
    %c0_i32_0 = arith.constant 0 : i32
    %c0_i32_1 = arith.constant 0 : i32
    return %c0_i32, %c0_i32_0 : i32, i32
  }
  func.func @transform_10(%arg0: i32) -> (i32, i32) {
    %c0_i32 = arith.constant 0 : i32
    %c0_i32_0 = arith.constant 0 : i32
    %c0_i32_1 = arith.constant 0 : i32
    return %c0_i32, %c0_i32_0 : i32, i32
  }
  func.func @transform_11(%arg0: i32) -> (i32, i32) {
    %c0_i32 = arith.constant 0 : i32
    %c0_i32_0 = arith.constant 0 : i32
    %c0_i32_1 = arith.constant 0 : i32
    return %c0_i32, %c0_i32_0 : i32, i32
  }
  func.func @transform_12(%arg0: i32) -> (i32, i32) {
    %c0_i32 = arith.constant 0 : i32
    %c0_i32_0 = arith.constant 0 : i32
    %c0_i32_1 = arith.constant 0 : i32
    return %c0_i32, %c0_i32_0 : i32, i32
  }
  func.func @transform_13(%arg0: i32) -> (i32, i32) {
    %c0_i32 = arith.constant 0 : i32
    %c0_i32_0 = arith.constant 0 : i32
    %c0_i32_1 = arith.constant 0 : i32
    return %c0_i32, %c0_i32_0 : i32, i32
  }
  func.func @transform_14(%arg0: i32) -> (i32, i32) {
    %c0_i32 = arith.constant 0 : i32
    %c0_i32_0 = arith.constant 0 : i32
    %c0_i32_1 = arith.constant 0 : i32
    return %c0_i32, %c0_i32_0 : i32, i32
  }
  func.func @transform_15(%arg0: i32) -> (i32, i32) {
    %c0_i32 = arith.constant 0 : i32
    %c0_i32_0 = arith.constant 0 : i32
    %c0_i32_1 = arith.constant 0 : i32
    return %c0_i32, %c0_i32_0 : i32, i32
  }
  func.func @transform_16(%arg0: i32) -> (i32, i32) {
    %c0_i32 = arith.constant 0 : i32
    %c0_i32_0 = arith.constant 0 : i32
    %c0_i32_1 = arith.constant 0 : i32
    return %c0_i32, %c0_i32_0 : i32, i32
  }
  func.func @transform_17(%arg0: i32) -> (i32, i32) {
    %c0_i32 = arith.constant 0 : i32
    %c0_i32_0 = arith.constant 0 : i32
    %c0_i32_1 = arith.constant 0 : i32
    return %c0_i32, %c0_i32_0 : i32, i32
  }
  func.func @transform_18(%arg0: i32) -> (i32, i32) {
    %c0_i32 = arith.constant 0 : i32
    %c0_i32_0 = arith.constant 0 : i32
    %c0_i32_1 = arith.constant 0 : i32
    return %c0_i32, %c0_i32_0 : i32, i32
  }
  func.func @transform_19(%arg0: i32) -> (i32, i32) {
    %c0_i32 = arith.constant 0 : i32
    %c0_i32_0 = arith.constant 0 : i32
    %c0_i32_1 = arith.constant 0 : i32
    return %c0_i32, %c0_i32_0 : i32, i32
  }
  func.func @transform_20(%arg0: i32) -> (i32, i32) {
    %c0_i32 = arith.constant 0 : i32
    %c0_i32_0 = arith.constant 0 : i32
    %c0_i32_1 = arith.constant 0 : i32
    return %c0_i32, %c0_i32_0 : i32, i32
  }
  func.func @transform_21(%arg0: i32) -> (i32, i32) {
    %c0_i32 = arith.constant 0 : i32
    %c0_i32_0 = arith.constant 0 : i32
    %c0_i32_1 = arith.constant 0 : i32
    return %c0_i32, %c0_i32_0 : i32, i32
  }
  func.func @transform_22(%arg0: i32) -> (i32, i32) {
    %c0_i32 = arith.constant 0 : i32
    %c0_i32_0 = arith.constant 0 : i32
    return %arg0, %c0_i32 : i32, i32
  }
  func.func @transform_23(%arg0: i32) -> (i32, i32) {
    %c0_i32 = arith.constant 0 : i32
    %c0_i32_0 = arith.constant 0 : i32
    return %arg0, %c0_i32 : i32, i32
  }
  func.func @transform_24(%arg0: i32) -> (i32, i32) {
    %c0_i32 = arith.constant 0 : i32
    %c0_i32_0 = arith.constant 0 : i32
    return %arg0, %c0_i32 : i32, i32
  }
}

module attributes {stable_mosaic.version = 11 : i64} {
  func.func @_gram_sigmoid_kernel(%arg0: i32, %arg1: i32, %arg2: memref<128x128xbf16, #tpu.memory_space<vmem>>, %arg3: memref<128x128xbf16, #tpu.memory_space<vmem>>, %arg4: memref<128x128xf32, #tpu.memory_space<vmem>>) attributes {dimension_semantics = [#tpu.dimension_semantics<parallel>, #tpu.dimension_semantics<parallel>], iteration_bounds = array<i64: 2, 2>, scalar_prefetch = 0 : i64, scratch_operands = 0 : i64, tpu.core_type = #tpu.core_type<tc>, window_params = [{transform_indices = @transform_0, window_bounds = array<i64: 128, 128>}, {transform_indices = @transform_1, window_bounds = array<i64: 128, 128>}, {transform_indices = @transform_2, window_bounds = array<i64: 128, 128>}]} {
    %c0 = arith.constant 0 : index
    %c0_0 = arith.constant 0 : index
    %0 = vector.load %arg2[%c0, %c0_0] : memref<128x128xbf16, #tpu.memory_space<vmem>>, vector<128x128xbf16>
    %c0_1 = arith.constant 0 : index
    %c0_2 = arith.constant 0 : index
    %1 = vector.load %arg3[%c0_1, %c0_2] : memref<128x128xbf16, #tpu.memory_space<vmem>>, vector<128x128xbf16>
    %cst = arith.constant dense<0.000000e+00> : vector<128x128xf32>
    %2 = tpu.matmul %0, %1, %cst {dimension_numbers = #tpu.dot_dimension_numbers<[1], [1], [0], [0], [0, 0, 1, 0], [], []>} : vector<128x128xbf16>, vector<128x128xbf16>, vector<128x128xf32> -> vector<128x128xf32>
    %cst_3 = arith.constant 0.000000e+00 : f32
    %3 = vector.broadcast %cst_3 : f32 to vector<128x128xf32>
    %4 = arith.subf %3, %2 : vector<128x128xf32>
    %5 = math.exp %4 : vector<128x128xf32>
    %cst_4 = arith.constant 1.000000e+00 : f32
    %6 = vector.broadcast %cst_4 : f32 to vector<128x128xf32>
    %7 = arith.addf %6, %5 : vector<128x128xf32>
    %cst_5 = arith.constant 1.000000e+00 : f32
    %8 = vector.broadcast %cst_5 : f32 to vector<128x128xf32>
    %9 = arith.divf %8, %7 : vector<128x128xf32>
    %c0_6 = arith.constant 0 : index
    %c0_7 = arith.constant 0 : index
    %10 = vector.load %arg4[%c0_6, %c0_7] : memref<128x128xf32, #tpu.memory_space<vmem>>, vector<128x128xf32>
    tpu.vector_store %arg4[%c0_6, %c0_7], %9 {strides = array<i32>} : memref<128x128xf32, #tpu.memory_space<vmem>>, vector<128x128xf32>,
    return
  }
  func.func @transform_0(%arg0: i32, %arg1: i32) -> (i32, i32) {
    %c0_i32 = arith.constant 0 : i32
    %c0_i32_0 = arith.constant 0 : i32
    return %arg0, %c0_i32 : i32, i32
  }
  func.func @transform_1(%arg0: i32, %arg1: i32) -> (i32, i32) {
    %c0_i32 = arith.constant 0 : i32
    %c0_i32_0 = arith.constant 0 : i32
    return %arg1, %c0_i32 : i32, i32
  }
  func.func @transform_2(%arg0: i32, %arg1: i32) -> (i32, i32) {
    %c0_i32 = arith.constant 0 : i32
    return %arg0, %arg1 : i32, i32
  }
}

</mosaic_0001>

<bundles_post_ra>
// kernel: vgae_forward.3
= control target key start
LH: loop header
LB: loop body
LE: loop exit
PB: predicated region body
PF: predicated region fallthrough
CT: control target
= control target key end

     0   :  { %7 = vsyncpa [#allocation3], 0  ;;  %s1519_s0 = inlined_call_operand.vmem [shape: bf16[256,128], index: 0, kind: input, shape index: {}, may-alias: {0,1}]   ;;  %s1520_s1 = inlined_call_operand.vmem [shape: bf16[256,128], index: 1, kind: input, shape index: {}, may-alias: {0,1}]   ;;  %s1521_s2 = inlined_call_operand.hbm [shape: f32[256,256], index: 2, kind: output, shape index: {}]  }
   0x1   :  { %9 = vsyncpa [#allocation3 + $0x1], 0  ;;  %s1156_s9 = smov 0   ;;  %s1158_s10 = smov 0  }
   0x2   :  { %s1160_s11 = smov 0   ;;  %s1162_s12 = smov 0  }
   0x3   :  { %s1164_s13 = smov 0   ;;  %s1166_s14 = smov 0  }
   0x4   :  { %s1168_s15 = smov 0   ;;  %s1170_s16 = smov 0  }
   0x5 LB: > { %s783_s17 = sadd.s32 4294967295, %s1136_s16   ;;  %s784_s18 = sadd.s32 4294967294, %s1136_s16   ;;  %s1136_s16 = sphi %s1170_s16, %s15_s16   ;;  %s1132_s15 = sphi %s1168_s15, %s1548_s15   ;;  %s1128_s14 = sphi %s1166_s14, %s1547_s14   ;;  %s1124_s13 = sphi %s1164_s13, %s1546_s13   ;;  %s1120_s12 = sphi %s1162_s12, %s1545_s12   ;;  %s1116_s11 = sphi %s1160_s11, %s1544_s11   ;;  %s1112_s10 = sphi %s1158_s10, %s1543_s10   ;;  %s1108_s9 = sphi %s1156_s9, %s1542_s9  }
   0x6   : > { %s24_s19 = sadd.s32 1, %s1128_s14  ;;  %s27_s20 = sadd.s32 1, %s1132_s15 }
   0x7   : > { %p25_p0 = scmp.ge.s32.totalorder %s24_s19, 2  ;;  %p98_p1 = scmp.ne.s32.totalorder %s1116_s11, %s1112_s10 }
   0x8   : > { %p99_p2 = scmp.eq.s32.totalorder %s783_s17, 3  ;;  %p104_p5 = scmp.ne.s32.totalorder %s1112_s10, %s1108_s9 }
   0x9   : > { %s1550_s19 = smov (%p25_p0, %s24_s19), 0  ;;  %s1552_s20 = smov (!%p25_p0, %s27_s20), %s1132_s15 }
   0xa   : > { %s84_s21 = ssub.s32 %s1128_s14, %s1550_s19  ;;  %p1207_p3 = por %p99_p2, %p98_p1 }
   0xb   : > { %p29_p4 = scmp.ge.s32.totalorder %s1552_s20, 2  ;;  %p105_p6 = scmp.eq.s32.totalorder %s784_s18, 3 }
   0xc   : > { %p787_p7 = scmp.ge.s32.totalorder %s1136_s16, 1  ;;  %p141_p9 = scmp.lt.s32.totalorder %s1136_s16, 5 }
   0xd   : > { %s1554_s20 = smov (%p29_p4, %s1552_s20), 0  ;;  %p1216_p8 = por %p105_p6, %p104_p5 }
   0xe   : > { %s83_s24 = ssub.s32 %s1132_s15, %s1554_s20  ;;  %s88_s25 = sadd.s32 1, %s1116_s11 }
   0xf   : > { %s85_s26 = sor.u32 %s84_s21, %s83_s24  ;;  %p142_p10 = pnand %p787_p7, %p141_p9 }
  0x10   : > { %p86_p11 = scmp.eq.s32.totalorder %s85_s26, 0  ;;  %s791_s28 = sshll.u32 (!%p142_p10), %s1120_s12, 4 }
  0x11   : > { %145 = sbr.rel (%p142_p10) target bundleno = 300 (0x12c), region = 28  ;;  %p175_p12 = scmp.lt.s32.totalorder (!%p142_p10), %s791_s28, 31 }
  0x12   : > { %s1225_s27 = scalar_select %p86_p11, %s1116_s11, %s88_s25  }
  0x13   : > { %s789_s5 = sshll.u32 (!%p142_p10), %s1124_s13, 4  ;;  %s165_s18 = sand.u32 (!%p142_p10), 1, %s1112_s10  }
  0x14   : > { %p169_p13 = scmp.lt.s32.totalorder (!%p142_p10), %s789_s5, 31  ;;  %s1277_s21 = sshll.u32 (!%p142_p10), %s165_s18, 7 }
  0x15   : > { %s1313_s24 = scalar_lea.vmem (!%p142_p10), [#allocation2], %s1277_s21  ;;  %s879_s25 = sshll.u32 (!%p142_p10), %s1124_s13, 5 }
  0x16   : > { %s1556_s28 = smov (!%p175_p12, %s791_s28), 31  ;;  %s1558_s5 = smov (!%p169_p13, %s789_s5), 31 }
  0x17   : > { %s792_s29 = sshll.u32 %s1556_s28, 2  ;;  %s790_s6 = sshll.u32 %s1558_s5, 2 }
  0x18   : > { %s1231_s4 = scalar_lea.vmem %s1520_s1, %s792_s29  ;;  %s172_s17 = scalar_lea.vmem %s1519_s0, %s790_s6 }
  0x19   : > { %v878_v0 = vld [vmem:[%s1231_s4 + $0x38] sm:$0xff]  ;;  %v877_v1 = vld [vmem:[%s1231_s4 + $0x30] sm:$0xff]  ;;  %v876_v2 = vld [vmem:[%s1231_s4 + $0x28] sm:$0xff]  ;;  %s1452_s13 = sadd.s32 %s1120_s12, %s879_s25  ;;  %s693_s30 = sshll.u32 %s1313_s24, 4  ;;  %s1474_s30 = int_to_ptr.vmem [resolvable:$true] %s693_s30 }
  0x1a   : > { %309 = vmatpush.bf16.xpose.msra.mxu0 %v878_v0  ;;  %880 = vmatpush.bf16.xpose.msra.mxu1 %v878_v0  ;;  %v875_v3 = vld [vmem:[%s1231_s4 + $0x20] sm:$0xff]  ;;  %v874_v4 = vld [vmem:[%s1231_s4 + $0x18] sm:$0xff]  ;;  %v873_v5 = vld [vmem:[%s1231_s4 + $0x10] sm:$0xff]  ;;  %s860_s12 = sshll.u32 %s1452_s13, 3 }
  0x1b   : > { %881 = vmatpush.bf16.xpose.msra.mxu2 %v878_v0  ;;  %882 = vmatpush.bf16.xpose.msra.mxu3 %v878_v0  ;;  %v872_v6 = vld [vmem:[%s1231_s4 + $0x8] sm:$0xff]  ;;  %v871_v7 = vld [vmem:[%s1231_s4] sm:$0xff]  ;;  %v865_v9 = vld [vmem:[%s172_s17 + $0x10] sm:$0xff]  ;;  %s692_s29 = scalar_lea.hbm %s1521_s2, %s860_s12  ;;  %s679_s4 = scalar_lea.sflag [#allocation3], %s165_s18 }
  0x1c   : > { %v863_v8 = vld [vmem:[%s172_s17] sm:$0xff]  ;;  %v869_v11 = vld [vmem:[%s172_s17 + $0x30] sm:$0xff]  ;;  %v864_v12 = vld [vmem:[%s172_s17 + $0x8] sm:$0xff]  ;;  %s695_s3 = sshll.u32 %s692_s29, 4  ;;  %s696_s3 = int_to_ptr.hbm [resolvable:$true] %s695_s3 }
  0x1d   : > { %v867_v10 = vld [vmem:[%s172_s17 + $0x20] sm:$0xff]  ;;  %v866_v13 = vld [vmem:[%s172_s17 + $0x18] sm:$0xff]  ;;  %v868_v14 = vld [vmem:[%s172_s17 + $0x28] sm:$0xff]  ;;  %s1056_s5 = sshra.s32 %s696_s3, 4  ;;  %s1057_s5 = int_to_ptr.hbm [resolvable:$true] %s1056_s5 }
  0x1e   : > { %v870_v15 = vld [vmem:[%s172_s17 + $0x38] sm:$0xff]  ;;  %s1058_s6 = scalar_lea.hbm %s1057_s5, 128  ;;  %s1062_s17 = scalar_lea.hbm %s1521_s2, 512 }
  0x1f   : > { %p1059_p0 = scmp.ne.s32.totalorder %s1057_s5, %s1058_s6  ;;  %p1063_p4 = scmp.lt.s32.totalorder %s1057_s5, %s1521_s2 }
  0x20   : > { %p1064_p5 = scmp.lt.s32.totalorder %s1062_s17, %s1058_s6 }
  0x21   : > { %p1060_p1 = pnand %p1059_p0, %p1207_p3 }
  0x22   : > { %310 = vmatpush.bf16.xpose.msra.mxu0 %v877_v1  ;;  %883 = vmatpush.bf16.xpose.msra.mxu1 %v877_v1  ;;  %p1065_p6 = por %p1064_p5, %p1063_p4 }
  0x23   : > { %884 = vmatpush.bf16.xpose.msra.mxu2 %v877_v1  ;;  %885 = vmatpush.bf16.xpose.msra.mxu3 %v877_v1  ;;  %p1061_p2 = pneg %p1060_p1 }
  0x25   : > { %p1066_p7 = pnand %p1065_p6, %p1061_p2 }
  0x2a   : > { %311 = vmatpush.bf16.xpose.msra.mxu0 %v876_v2  ;;  %886 = vmatpush.bf16.xpose.msra.mxu1 %v876_v2 }
  0x2b   : > { %887 = vmatpush.bf16.xpose.msra.mxu2 %v876_v2  ;;  %888 = vmatpush.bf16.xpose.msra.mxu3 %v876_v2 }
  0x32   : > { %312 = vmatpush.bf16.xpose.msra.mxu0 %v875_v3  ;;  %889 = vmatpush.bf16.xpose.msra.mxu1 %v875_v3 }
  0x33   : > { %890 = vmatpush.bf16.xpose.msra.mxu2 %v875_v3  ;;  %891 = vmatpush.bf16.xpose.msra.mxu3 %v875_v3 }
  0x3a   : > { %313 = vmatpush.bf16.xpose.msra.mxu0 %v874_v4  ;;  %892 = vmatpush.bf16.xpose.msra.mxu1 %v874_v4 }
  0x3b   : > { %893 = vmatpush.bf16.xpose.msra.mxu2 %v874_v4  ;;  %894 = vmatpush.bf16.xpose.msra.mxu3 %v874_v4 }
  0x42   : > { %314 = vmatpush.bf16.xpose.msra.mxu0 %v873_v5  ;;  %895 = vmatpush.bf16.xpose.msra.mxu1 %v873_v5 }
  0x43   : > { %896 = vmatpush.bf16.xpose.msra.mxu2 %v873_v5  ;;  %897 = vmatpush.bf16.xpose.msra.mxu3 %v873_v5 }
  0x4a   : > { %315 = vmatpush.bf16.xpose.msra.mxu0 %v872_v6  ;;  %898 = vmatpush.bf16.xpose.msra.mxu1 %v872_v6 }
  0x4b   : > { %899 = vmatpush.bf16.xpose.msra.mxu2 %v872_v6  ;;  %900 = vmatpush.bf16.xpose.msra.mxu3 %v872_v6 }
  0x52   : > { %316 = vmatpush.bf16.xpose.msra.mxu0 %v871_v7  ;;  %901 = vmatpush.bf16.xpose.msra.mxu1 %v871_v7 }
  0x53   : > { %902 = vmatpush.bf16.xpose.msra.mxu2 %v871_v7  ;;  %903 = vmatpush.bf16.xpose.msra.mxu3 %v871_v7 }
  0x59   : > { %317 = vmatmul.bf16.vlgmr.msra.gmra.mxu0 %v863_v8  ;;  %327 = vmatmul.bf16.vlgmr.msra.gmra.mxu1 %v865_v9 }
  0x5a   : > { %337 = vmatmul.bf16.vlgmr.msra.gmra.mxu2 %v867_v10  ;;  %347 = vmatmul.bf16.vlgmr.msra.gmra.mxu3 %v869_v11 }
  0x69   : > { %322 = vmatmul.bf16.gmra.mxu0 %v864_v12  ;;  %332 = vmatmul.bf16.gmra.mxu1 %v866_v13 }
  0x6a   : > { %342 = vmatmul.bf16.gmra.mxu2 %v868_v14  ;;  %352 = vmatmul.bf16.gmra.mxu3 %v870_v15 }
  0xd6   : > { %v318_v16 = vpop.f32.mrf.mxu0  ;;  %v328_v17 = vpop.f32.mrf.mxu1 }
  0xd7   : > { %v358_v18 = vsub.f32 0.0, %v318_v16  ;;  %v362_v19 = vsub.f32 0.0, %v328_v17 }
  0xd9   : > { %v374_v20 = vmul.f32 1.442695, %v358_v18  ;;  %v382_v21 = vmul.f32 1.442695, %v362_v19 }
  0xdb   : > { %978 = vpow2.f32 %v374_v20 }
  0xdc   : > { %980 = vpow2.f32 %v382_v21 }
  0xdd   : > { %v338_v22 = vpop.f32.mrf.mxu2  ;;  %v348_v23 = vpop.f32.mrf.mxu3 }
  0xde   : > { %v366_v24 = vsub.f32 0.0, %v338_v22  ;;  %v370_v25 = vsub.f32 0.0, %v348_v23  ;;  %v320_v26 = vpop.f32.mrf.mxu0  ;;  %v330_v27 = vpop.f32.mrf.mxu1 }
  0xdf   : > { %v359_v28 = vsub.f32 0.0, %v320_v26  ;;  %v363_v29 = vsub.f32 0.0, %v330_v27 }
  0xe0   : > { %v390_v30 = vmul.f32 1.442695, %v366_v24  ;;  %v398_v31 = vmul.f32 1.442695, %v370_v25 }
  0xe1   : > { %v979_v32 = vpop.eup %978  ;;  %v376_v35 = vmul.f32 1.442695, %v359_v28  ;;  %v384_v37 = vmul.f32 1.442695, %v363_v29 }
  0xe2   : > { %v981_v33 = vpop.eup %980  ;;  %v1245_v34 = vadd.f32 1.0, %v979_v32  ;;  %982 = vpow2.f32 %v390_v30 }
  0xe3   : > { %v1247_v36 = vadd.f32 1.0, %v981_v33  ;;  %984 = vpow2.f32 %v398_v31 }
  0xe4   : > { %986 = vrcp.f32 %v1245_v34  ;;  %v431_v41 = vand.u32 2147483647, %v1245_v34  ;;  %v433_v42 = vand.u32 2147483648, %v1245_v34  ;;  %vm427_vm0 = vweird.f32 %v1245_v34 }
  0xe5   : > { %988 = vrcp.f32 %v1247_v36  ;;  %v340_v38 = vpop.f32.mrf.mxu2  ;;  %v350_v39 = vpop.f32.mrf.mxu3  ;;  %v491_v45 = vand.u32 2147483647, %v1247_v36  ;;  %v493_v49 = vand.u32 2147483648, %v1247_v36  ;;  %vm487_vm1 = vweird.f32 %v1247_v36 }
  0xe6   : > { %990 = vpow2.f32 %v376_v35  ;;  %v367_v40 = vsub.f32 0.0, %v340_v38  ;;  %v323_v43 = vpop.f32.mrf.mxu0  ;;  %v371_v47 = vsub.f32 0.0, %v350_v39  ;;  %v333_v54 = vpop.f32.mrf.mxu1  ;;  %vm1262_vm2 = vcmp.eq.f32.partialorder %v431_v41, 8.507059e+37 }
  0xe7   : > { %992 = vpow2.f32 %v384_v37  ;;  %v360_v53 = vsub.f32 0.0, %v323_v43  ;;  %v434_v58 = vor.u32 1.1754944e-38, %v433_v42  ;;  %vm1269_vm3 = vcmp.eq.f32.partialorder %v491_v45, 8.507059e+37 }
  0xe8   : > { %v983_v44 = vpop.eup %982  ;;  %v392_v46 = vmul.f32 1.442695, %v367_v40  ;;  %v400_v62 = vmul.f32 1.442695, %v371_v47  ;;  %v494_v1 = vor.u32 1.1754944e-38, %v493_v49  ;;  %v364_v2 = vsub.f32 0.0, %v333_v54 }
  0xe9   : > { %v985_v48 = vpop.eup %984  ;;  %v1255_v50 = vadd.f32 1.0, %v983_v44  ;;  %v378_v5 = vmul.f32 1.442695, %v360_v53 }
  0xea   : > { %v987_v51 = vpop.eup %986  ;;  %v1259_v52 = vadd.f32 1.0, %v985_v48  ;;  %v1287_v15 = vmul.f32 1.442695, %v364_v2 }
  0xeb   : > { %v989_v55 = vpop.eup %988  ;;  %v423_v56 = vmul.f32 %v987_v51, %v1245_v34  ;;  %994 = vrcp.f32 %v1255_v50  ;;  %vm428_vm4 = vweird.f32 %v987_v51  ;;  %v551_v4 = vand.u32 2147483647, %v1255_v50 }
  0xec   : > { %v991_v59 = vpop.eup %990  ;;  %v483_v60 = vmul.f32 %v989_v55, %v1247_v36  ;;  %996 = vpow2.f32 %v392_v46  ;;  %v553_v7 = vand.u32 2147483648, %v1255_v50  ;;  %vm488_vm5 = vweird.f32 %v989_v55  ;;  %vm429_vm6 = vmor %vm427_vm0, %vm428_vm4 }
  0xed   : > { %v993_v63 = vpop.eup %992  ;;  %v424_v0 = vsub.f32 1.0, %v423_v56  ;;  %998 = vrcp.f32 %v1259_v52  ;;  %v1280_v8 = vadd.f32 1.0, %v991_v59  ;;  %v611_v11 = vand.u32 2147483647, %v1259_v52  ;;  %v1295_v19 = vpop.f32.mrf.mxu2  ;;  %vm489_vm9 = vmor %vm487_vm1, %vm488_vm5 }
  0xee   : > { %v484_v3 = vsub.f32 1.0, %v483_v60  ;;  %v1282_v9 = vadd.f32 1.0, %v993_v63  ;;  %1000 = vpow2.f32 %v400_v62  ;;  %v613_v14 = vand.u32 2147483648, %v1259_v52  ;;  %v353_v46 = vpop.f32.mrf.mxu3 }
  0xef   : > { %v425_v6 = vmul.f32 %v987_v51, %v424_v0  ;;  %1002 = vrcp.f32 %v1280_v8  ;;  %vm547_vm7 = vweird.f32 %v1255_v50  ;;  %vm607_vm8 = vweird.f32 %v1259_v52 }
  0xf0   : > { %v485_v10 = vmul.f32 %v989_v55, %v484_v3  ;;  %vm1300_vm10 = vcmp.eq.f32.partialorder %v551_v4, 8.507059e+37  ;;  %v554_v23 = vor.u32 1.1754944e-38, %v553_v7  ;;  %1004 = vrcp.f32 %v1282_v9 }
  0xf1   : > { %v995_v12 = vpop.eup %994  ;;  %v426_v13 = vadd.f32 %v987_v51, %v425_v6  ;;  %vm1308_vm11 = vcmp.eq.f32.partialorder %v611_v11, 8.507059e+37  ;;  %v614_v30 = vor.u32 1.1754944e-38, %v613_v14  ;;  %v446_v31 = vand.u32 2147483647, %v1280_v8 }
  0xf2   : > { %v997_v16 = vpop.eup %996  ;;  %v486_v17 = vadd.f32 %v989_v55, %v485_v10  ;;  %v543_v18 = vmul.f32 %v995_v12, %v1255_v50  ;;  %v368_v32 = vsub.f32 0.0, %v1295_v19  ;;  %vm548_vm12 = vweird.f32 %v995_v12 }
  0xf3   : > { %v999_v20 = vpop.eup %998  ;;  %v430_v21 = vsel %vm429_vm6, %v987_v51, %v426_v13  ;;  %v1321_v36 = vadd.f32 1.0, %v997_v16  ;;  %vm442_vm14 = vweird.f32 %v1280_v8  ;;  %v448_v38 = vand.u32 2147483648, %v1280_v8  ;;  %vm549_vm15 = vmor %vm547_vm7, %vm548_vm12 }
  0xf4   : > { %v435_v24 = vsel %vm1262_vm2, %v434_v58, %v430_v21  ;;  %v490_v25 = vsel %vm489_vm9, %v989_v55, %v486_v17  ;;  %v544_v26 = vsub.f32 1.0, %v543_v18  ;;  %v603_v27 = vmul.f32 %v999_v20, %v1259_v52  ;;  %v1001_v33 = vpop.eup %1000  ;;  %v335_v18 = vpop.f32.mrf.mxu1 }
  0xf5   : > { %662 = vst [vmem:[%s1313_s24] sm:$0xff] %v435_v24  ;;  %v495_v29 = vsel %vm1269_vm3, %v494_v1, %v490_v25  ;;  %v1003_v37 = vpop.eup %1002  ;;  %vm608_vm13 = vweird.f32 %v999_v20  ;;  %1006 = vpow2.f32 %v378_v5  ;;  %v1326_v42 = vadd.f32 1.0, %v1001_v33  ;;  %v325_v1 = vpop.f32.mrf.mxu0 }
  0xf6   : > { %666 = vst [vmem:[%s1313_s24 + $0x20] sm:$0xff] %v495_v29  ;;  %v545_v34 = vmul.f32 %v995_v12, %v544_v26  ;;  %v604_v35 = vsub.f32 1.0, %v603_v27  ;;  %v438_v41 = vmul.f32 %v1003_v37, %v1280_v8  ;;  %v1005_v43 = vpop.eup %1004  ;;  %vm1330_vm0 = vcmp.eq.f32.partialorder %v446_v31, 8.507059e+37  ;;  %vm609_vm2 = vmor %vm607_vm8, %vm608_vm13  ;;  %v345_v19 = vpop.f32.mrf.mxu2 }
  0xf7   : > { %vm502_vm1 = vweird.f32 %v1282_v9  ;;  %v506_v45 = vand.u32 2147483647, %v1282_v9  ;;  %1008 = vrcp.f32 %v1321_v36  ;;  %v498_v51 = vmul.f32 %v1005_v43, %v1282_v9  ;;  %v355_v22 = vpop.f32.mrf.mxu3 }
  0xf8   : > { %v546_v39 = vadd.f32 %v995_v12, %v545_v34  ;;  %v605_v40 = vmul.f32 %v999_v20, %v604_v35  ;;  %v439_v49 = vsub.f32 1.0, %v438_v41  ;;  %vm443_vm3 = vweird.f32 %v1003_v37 }
  0xf9   : > { %v508_v53 = vand.u32 2147483648, %v1282_v9  ;;  %v566_v54 = vand.u32 2147483647, %v1321_v36  ;;  %v499_v57 = vsub.f32 1.0, %v498_v51  ;;  %1010 = vrcp.f32 %v1326_v42  ;;  %vm444_vm6 = vmor %vm442_vm14, %vm443_vm3 }
  0xfa   : > { %v550_v47 = vsel %vm549_vm15, %v995_v12, %v546_v39  ;;  %v606_v48 = vadd.f32 %v999_v20, %v605_v40  ;;  %v440_v56 = vmul.f32 %v1003_v37, %v439_v49  ;;  %v449_v60 = vor.u32 1.1754944e-38, %v448_v38 }
  0xfb   : > { %v555_v50 = vsel %vm1300_vm10, %v554_v23, %v550_v47  ;;  %v1007_v58 = vpop.eup %1006  ;;  %vm1349_vm4 = vcmp.eq.f32.partialorder %v506_v45, 8.507059e+37  ;;  %v568_v52 = vand.u32 2147483648, %v1321_v36  ;;  %v500_v63 = vmul.f32 %v1005_v43, %v499_v57 }
  0xfc   : > { %670 = vst [vmem:[%s1313_s24 + $0x40] sm:$0xff] %v555_v50  ;;  %v610_v55 = vsel %vm609_vm2, %v999_v20, %v606_v48  ;;  %v441_v62 = vadd.f32 %v1003_v37, %v440_v56  ;;  %vm503_vm5 = vweird.f32 %v1005_v43  ;;  %v1355_v0 = vadd.f32 1.0, %v1007_v58 }
  0xfd   : > { %v615_v59 = vsel %vm1308_vm11, %v614_v30, %v610_v55  ;;  %v1009_v2 = vpop.eup %1008  ;;  %v509_v3 = vor.u32 1.1754944e-38, %v508_v53  ;;  %vm562_vm7 = vweird.f32 %v1321_v36  ;;  %1012 = vpow2.f32 %v1287_v15  ;;  %vm504_vm9 = vmor %vm502_vm1, %vm503_vm5 }
  0xfe   : > { %674 = vst [vmem:[%s1313_s24 + $0x60] sm:$0xff] %v615_v59  ;;  %v394_v4 = vmul.f32 1.442695, %v368_v32  ;;  %v445_v5 = vsel %vm444_vm6, %v1003_v37, %v441_v62  ;;  %v501_v6 = vadd.f32 %v1005_v43, %v500_v63  ;;  %v558_v7 = vmul.f32 %v1009_v2, %v1321_v36 }
  0xff   : > { %vm1363_vm8 = vcmp.eq.f32.partialorder %v566_v54, 8.507059e+37  ;;  %v372_v11 = vsub.f32 0.0, %v353_v46  ;;  %v450_v8 = vsel %vm1330_vm0, %v449_v60, %v445_v5  ;;  %v569_v12 = vor.u32 1.1754944e-38, %v568_v52  ;;  %v1011_v14 = vpop.eup %1010 }
 0x100   : > { %1014 = vrcp.f32 %v1355_v0  ;;  %v361_v13 = vsub.f32 0.0, %v325_v1  ;;  %663 = vst [vmem:[%s1313_s24 + $0x8] sm:$0xff] %v450_v8  ;;  %v505_v15 = vsel %vm504_vm9, %v1005_v43, %v501_v6  ;;  %v559_v16 = vsub.f32 1.0, %v558_v7 }
 0x101   : > { %vm622_vm10 = vweird.f32 %v1326_v42  ;;  %v626_v17 = vand.u32 2147483647, %v1326_v42  ;;  %v510_v20 = vsel %vm1349_vm4, %v509_v3, %v505_v15  ;;  %v618_v9 = vmul.f32 %v1011_v14, %v1326_v42 }
 0x102   : > { %v628_v21 = vand.u32 2147483648, %v1326_v42  ;;  %1016 = vpow2.f32 %v394_v4  ;;  %667 = vst [vmem:[%s1313_s24 + $0x28] sm:$0xff] %v510_v20  ;;  %v560_v23 = vmul.f32 %v1009_v2, %v559_v16  ;;  %vm563_vm11 = vweird.f32 %v1009_v2 }
 0x103   : > { %vm623_vm12 = vweird.f32 %v1011_v14  ;;  %v402_v24 = vmul.f32 1.442695, %v372_v11  ;;  %v1013_v25 = vpop.eup %1012  ;;  %v619_v26 = vsub.f32 1.0, %v618_v9  ;;  %v380_v27 = vmul.f32 1.442695, %v361_v13  ;;  %vm564_vm13 = vmor %vm562_vm7, %vm563_vm11 }
 0x104   : > { %v365_v28 = vsub.f32 0.0, %v335_v18  ;;  %v369_v29 = vsub.f32 0.0, %v345_v19  ;;  %v561_v30 = vadd.f32 %v1009_v2, %v560_v23  ;;  %v1381_v31 = vadd.f32 1.0, %v1013_v25  ;;  %vm624_vm0 = vmor %vm622_vm10, %vm623_vm12 }
 0x105   : > { %1018 = vpow2.f32 %v402_v24  ;;  %v373_v32 = vsub.f32 0.0, %v355_v22  ;;  %v620_v34 = vmul.f32 %v1011_v14, %v619_v26  ;;  %vm1385_vm14 = vcmp.eq.f32.partialorder %v626_v17, 8.507059e+37 }
 0x106   : > { %v1015_v33 = vpop.eup %1014  ;;  %1020 = vpow2.f32 %v380_v27  ;;  %v388_v35 = vmul.f32 1.442695, %v365_v28  ;;  %v396_v37 = vmul.f32 1.442695, %v369_v29  ;;  %v565_v38 = vsel %vm564_vm13, %v1009_v2, %v561_v30 }
 0x107   : > { %v453_v40 = vmul.f32 %v1015_v33, %v1355_v0  ;;  %1022 = vrcp.f32 %v1381_v31  ;;  %v570_v43 = vsel %vm1363_vm8, %v569_v12, %v565_v38  ;;  %v621_v44 = vadd.f32 %v1011_v14, %v620_v34 }
 0x108   : > { %v1017_v41 = vpop.eup %1016  ;;  %v629_v36 = vor.u32 1.1754944e-38, %v628_v21  ;;  %vm457_vm15 = vweird.f32 %v1355_v0  ;;  %671 = vst [vmem:[%s1313_s24 + $0x48] sm:$0xff] %v570_v43  ;;  %v461_v46 = vand.u32 2147483647, %v1355_v0  ;;  %1024 = vpow2.f32 %v388_v35 }
 0x109   : > { %v454_v45 = vsub.f32 1.0, %v453_v40  ;;  %v1399_v47 = vadd.f32 1.0, %v1017_v41  ;;  %v625_v48 = vsel %vm624_vm0, %v1011_v14, %v621_v44  ;;  %v463_v49 = vand.u32 2147483648, %v1355_v0 }
 0x10a   : > { %1026 = vpow2.f32 %v396_v37  ;;  %v404_v51 = vmul.f32 1.442695, %v373_v32  ;;  %v630_v53 = vsel %vm1385_vm14, %v629_v36, %v625_v48  ;;  %vm458_vm1 = vweird.f32 %v1015_v33 }
 0x10b   : > { %v1019_v50 = vpop.eup %1018  ;;  %v455_v54 = vmul.f32 %v1015_v33, %v454_v45  ;;  %1028 = vrcp.f32 %v1399_v47  ;;  %675 = vst [vmem:[%s1313_s24 + $0x68] sm:$0xff] %v630_v53  ;;  %vm459_vm2 = vmor %vm457_vm15, %vm458_vm1  ;;  %v464_v59 = vor.u32 1.1754944e-38, %v463_v49  ;;  %vm462_vm3 = vcmp.eq.f32.partialorder %v461_v46, 8.507059e+37 }
 0x10c   : > { %v1021_v42 = vpop.eup %1020  ;;  %v1406_v55 = vadd.f32 1.0, %v1019_v50  ;;  %1030 = vpow2.f32 %v404_v51  ;;  %v521_v2 = vand.u32 2147483647, %v1381_v31  ;;  %v523_v0 = vand.u32 2147483648, %v1381_v31 }
 0x10d   : > { %v1023_v56 = vpop.eup %1022  ;;  %v456_v57 = vadd.f32 %v1015_v33, %v455_v54  ;;  %v1408_v58 = vadd.f32 1.0, %v1021_v42  ;;  %vm517_vm4 = vweird.f32 %v1381_v31  ;;  %v581_v7 = vand.u32 2147483647, %v1399_v47 }
 0x10e   : > { %v513_v60 = vmul.f32 %v1023_v56, %v1381_v31  ;;  %v1025_v61 = vpop.eup %1024  ;;  %1032 = vrcp.f32 %v1406_v55  ;;  %vm518_vm5 = vweird.f32 %v1023_v56  ;;  %vm522_vm6 = vcmp.eq.f32.partialorder %v521_v2, 8.507059e+37 }
 0x10f   : > { %v460_v52 = vsel %vm459_vm2, %v1015_v33, %v456_v57  ;;  %1034 = vrcp.f32 %v1408_v58  ;;  %v1421_v10 = vadd.f32 1.0, %v1025_v61  ;;  %vm519_vm7 = vmor %vm517_vm4, %vm518_vm5  ;;  %v524_v14 = vor.u32 1.1754944e-38, %v523_v0 }
 0x110   : > { %v1027_v62 = vpop.eup %1026  ;;  %v465_v63 = vsel %vm462_vm3, %v464_v59, %v460_v52  ;;  %v514_v1 = vsub.f32 1.0, %v513_v60  ;;  %v583_v15 = vand.u32 2147483648, %v1399_v47  ;;  %vm577_vm9 = vweird.f32 %v1399_v47 }
 0x111   : > { %v1029_v3 = vpop.eup %1028  ;;  %664 = vst [vmem:[%s1313_s24 + $0x10] sm:$0xff] %v465_v63  ;;  %v1423_v12 = vadd.f32 1.0, %v1027_v62  ;;  %1036 = vrcp.f32 %v1421_v10  ;;  %vm1431_vm10 = vcmp.eq.f32.partialorder %v581_v7, 8.507059e+37  ;;  %v641_v25 = vand.u32 2147483647, %v1406_v55 }
 0x112   : > { %v515_v4 = vmul.f32 %v1023_v56, %v514_v1  ;;  %v573_v5 = vmul.f32 %v1029_v3, %v1399_v47  ;;  %v1031_v6 = vpop.eup %1030  ;;  %vm578_vm8 = vweird.f32 %v1029_v3  ;;  %v584_v26 = vor.u32 1.1754944e-38, %v583_v15 }
 0x113   : > { %v1428_v20 = vadd.f32 1.0, %v1031_v6  ;;  %1038 = vrcp.f32 %v1423_v12  ;;  %vm579_vm11 = vmor %vm577_vm9, %vm578_vm8  ;;  %v643_v27 = vand.u32 2147483648, %v1406_v55  ;;  %v478_v29 = vand.u32 2147483648, %v1408_v58 }
 0x114   : > { %v516_v11 = vadd.f32 %v1023_v56, %v515_v4  ;;  %v574_v8 = vsub.f32 1.0, %v573_v5  ;;  %v1033_v13 = vpop.eup %1032  ;;  %v476_v35 = vand.u32 2147483647, %v1408_v58  ;;  %vm637_vm14 = vweird.f32 %v1406_v55 }
 0x115   : > { %v1035_v16 = vpop.eup %1034  ;;  %v633_v19 = vmul.f32 %v1033_v13, %v1406_v55  ;;  %vm638_vm12 = vweird.f32 %v1033_v13  ;;  %1040 = vrcp.f32 %v1428_v20  ;;  %vm642_vm15 = vcmp.eq.f32.partialorder %v641_v25, 8.507059e+37 }
 0x116   : > { %v520_v17 = vsel %vm519_vm7, %v1023_v56, %v516_v11  ;;  %v575_v18 = vmul.f32 %v1029_v3, %v574_v8  ;;  %v468_v22 = vmul.f32 %v1035_v16, %v1408_v58  ;;  %vm473_vm13 = vweird.f32 %v1035_v16  ;;  %vm639_vm0 = vmor %vm637_vm14, %vm638_vm12 }
 0x117   : > { %v525_v9 = vsel %vm522_vm6, %v524_v14, %v520_v17  ;;  %v634_v24 = vsub.f32 1.0, %v633_v19  ;;  %v1037_v32 = vpop.eup %1036  ;;  %v644_v39 = vor.u32 1.1754944e-38, %v643_v27  ;;  %vm472_vm1 = vweird.f32 %v1408_v58 }
 0x118   : > { %668 = vst [vmem:[%s1313_s24 + $0x30] sm:$0xff] %v525_v9  ;;  %v576_v23 = vadd.f32 %v1029_v3, %v575_v18  ;;  %v469_v28 = vsub.f32 1.0, %v468_v22  ;;  %v528_v38 = vmul.f32 %v1037_v32, %v1421_v10  ;;  %v479_v41 = vor.u32 1.1754944e-38, %v478_v29  ;;  %vm474_vm2 = vmor %vm472_vm1, %vm473_vm13 }
 0x119   : > { %v635_v31 = vmul.f32 %v1033_v13, %v634_v24  ;;  %v1039_v43 = vpop.eup %1038  ;;  %v536_v45 = vand.u32 2147483647, %v1421_v10  ;;  %v538_v46 = vand.u32 2147483648, %v1421_v10  ;;  %vm477_vm3 = vcmp.eq.f32.partialorder %v476_v35, 8.507059e+37 }
 0x11a   : > { %v580_v30 = vsel %vm579_vm11, %v1029_v3, %v576_v23  ;;  %v470_v34 = vmul.f32 %v1035_v16, %v469_v28  ;;  %v529_v36 = vsub.f32 1.0, %v528_v38  ;;  %v588_v49 = vmul.f32 %v1039_v43, %v1423_v12 }
 0x11b   : > { %v585_v33 = vsel %vm1431_vm10, %v584_v26, %v580_v30  ;;  %v636_v37 = vadd.f32 %v1033_v13, %v635_v31  ;;  %v1041_v51 = vpop.eup %1040  ;;  %vm533_vm4 = vweird.f32 %v1037_v32  ;;  %vm532_vm5 = vweird.f32 %v1421_v10 }
 0x11c   : > { %672 = vst [vmem:[%s1313_s24 + $0x50] sm:$0xff] %v585_v33  ;;  %v471_v40 = vadd.f32 %v1035_v16, %v470_v34  ;;  %v530_v53 = vmul.f32 %v1037_v32, %v529_v36  ;;  %v589_v54 = vsub.f32 1.0, %v588_v49  ;;  %v648_v42 = vmul.f32 %v1041_v51, %v1428_v20  ;;  %vm534_vm7 = vmor %vm532_vm5, %vm533_vm4 }
 0x11d   : > { %v640_v44 = vsel %vm639_vm0, %v1033_v13, %v636_v37  ;;  %vm537_vm6 = vcmp.eq.f32.partialorder %v536_v45, 8.507059e+37  ;;  %v539_v56 = vor.u32 1.1754944e-38, %v538_v46  ;;  %v598_v57 = vand.u32 2147483648, %v1423_v12 }
 0x11e   : > { %v645_v47 = vsel %vm642_vm15, %v644_v39, %v640_v44  ;;  %v475_v48 = vsel %vm474_vm2, %v1035_v16, %v471_v40  ;;  %v531_v55 = vadd.f32 %v1037_v32, %v530_v53  ;;  %v590_v58 = vmul.f32 %v1039_v43, %v589_v54 }
 0x11f   : > { %676 = vst [vmem:[%s1313_s24 + $0x70] sm:$0xff] %v645_v47  ;;  %v480_v50 = vsel %vm477_vm3, %v479_v41, %v475_v48  ;;  %vm593_vm8 = vweird.f32 %v1039_v43  ;;  %v596_v59 = vand.u32 2147483647, %v1423_v12  ;;  %v649_v60 = vsub.f32 1.0, %v648_v42 }
 0x120   : > { %665 = vst [vmem:[%s1313_s24 + $0x18] sm:$0xff] %v480_v50  ;;  %v535_v61 = vsel %vm534_vm7, %v1037_v32, %v531_v55  ;;  %vm592_vm9 = vweird.f32 %v1423_v12  ;;  %v656_v52 = vand.u32 2147483647, %v1428_v20  ;;  %v658_v62 = vand.u32 2147483648, %v1428_v20 }
 0x121   : > { %v540_v63 = vsel %vm537_vm6, %v539_v56, %v535_v61  ;;  %v591_v1 = vadd.f32 %v1039_v43, %v590_v58  ;;  %v650_v2 = vmul.f32 %v1041_v51, %v649_v60  ;;  %vm653_vm10 = vweird.f32 %v1041_v51  ;;  %vm594_vm11 = vmor %vm592_vm9, %vm593_vm8 }
 0x122   : > { %669 = vst [vmem:[%s1313_s24 + $0x38] sm:$0xff] %v540_v63  ;;  %v599_v3 = vor.u32 1.1754944e-38, %v598_v57  ;;  %vm597_vm12 = vcmp.eq.f32.partialorder %v596_v59, 8.507059e+37  ;;  %vm652_vm13 = vweird.f32 %v1428_v20  ;;  %v659_v6 = vor.u32 1.1754944e-38, %v658_v62 }
 0x123   : > { %v595_v0 = vsel %vm594_vm11, %v1039_v43, %v591_v1  ;;  %v651_v4 = vadd.f32 %v1041_v51, %v650_v2  ;;  %vm654_vm14 = vmor %vm652_vm13, %vm653_vm10  ;;  %vm657_vm15 = vcmp.eq.f32.partialorder %v656_v52, 8.507059e+37 }
 0x124   : > { %v600_v5 = vsel %vm597_vm12, %v599_v3, %v595_v0 }
 0x125   : > { %673 = vst [vmem:[%s1313_s24 + $0x58] sm:$0xff] %v600_v5  ;;  %v655_v7 = vsel %vm654_vm14, %v1041_v51, %v651_v4 }
 0x126   : > { %v660_v10 = vsel %vm657_vm15, %v659_v6, %v655_v7 }
 0x127   : > { %677 = vst [vmem:[%s1313_s24 + $0x78] sm:$0xff] %v660_v10 }
 0x128   : > { %1069 = shalt.err (!%p1066_p7)
}
 0x129   : > { %s1138_s18 = smov 128   ;;  %s1139_s24 = smov 256  }
 0x12a   : > { %s1140_s13 = smov 8  }
 0x12b   : > { %904 = dma.vmem_to_hbm [thread:$0]  (%p1207_p3), %s1474_s30, 2048, %s696_s3, %s679_s4, %s1138_s18, %s1139_s24, %s1140_s13  }
 0x12c PF: > { %p910_p9 = scmp.ge.s32.totalorder %s1136_s16, 2  ;;  %s710_s12 = sand.u32 1, %s1108_s9  }
 0x12d   : > { %s711_s26 = scalar_lea.sflag [#allocation3], %s710_s12 }
 0x12e   : > { %p907_p10 = pnand %p910_p9, %p1216_p8 }
 0x130   : > { %p908_p11 = pneg %p907_p10 }
 0x132   : > { %1103 = dma.done.wait (%p908_p11), %s711_s26, 2048  }
 0x133   : > { %1105 = vsyncadd (%p908_p11), %s711_s26, 4294965248  ;;  %s15_s16 = sadd.s32 1, %s1136_s16   ;;  %s1542_s9 = smov %s1112_s10 }
 0x134   : > { %p12_p12 = scmp.ge.s32.totalorder %s15_s16, 6   ;;  %s1543_s10 = smov %s1116_s11 }
 0x135   : > { %s1544_s11 = smov %s1225_s27  ;;  %s1545_s12 = smov %s1128_s14 }
 0x136   : > { %s1546_s13 = smov %s1132_s15  ;;  %s1547_s14 = smov %s1550_s19 }
 0x137   : > { %s1548_s15 = smov %s1554_s20  ;;  %14 = sbr.rel (!%p12_p12) target bundleno = 5 (0x5), region = 66 }
 0x13c   :  { %717 = vsyncpa [#allocation3], 1 }
 0x13d   :  { %719 = vsyncpa [#allocation3 + $0x1], 1 }

// kernel: vgae_forward.2
= control target key start
LH: loop header
LB: loop body
LE: loop exit
PB: predicated region body
PF: predicated region fallthrough
CT: control target
= control target key end

     0   :  { %s5704_s0 = inlined_call_operand.vmem [shape: f32[256,128], index: 0, kind: input, shape index: {}]   ;;  %s5705_s1 = inlined_call_operand.vmem [shape: f32[256,128], index: 1, kind: input, shape index: {}]   ;;  %s5706_s2 = inlined_call_operand.vmem [shape: bf16[128,128], index: 2, kind: input, shape index: {}]   ;;  %s5707_s3 = inlined_call_operand.vmem [shape: f32[1,128], index: 3, kind: input, shape index: {}]   ;;  %s5708_s4 = inlined_call_operand.vmem [shape: f32[1,128], index: 4, kind: input, shape index: {}]   ;;  %s5709_s5 = inlined_call_operand.vmem [shape: f32[1,128], index: 5, kind: input, shape index: {}]   ;;  %s5710_s6 = inlined_call_operand.vmem [shape: bf16[128,128], index: 6, kind: input, shape index: {}]   ;;  %s5711_s7 = inlined_call_operand.vmem [shape: f32[1,128], index: 7, kind: input, shape index: {}]   ;;  %s5712_s8 = inlined_call_operand.vmem [shape: f32[1,128], index: 8, kind: input, shape index: {}]   ;;  %s5713_s9 = inlined_call_operand.vmem [shape: f32[1,128], index: 9, kind: input, shape index: {}]   ;;  %s5714_s10 = inlined_call_operand.vmem [shape: bf16[128,256], index: 10, kind: input, shape index: {}]   ;;  %s5715_s11 = inlined_call_operand.vmem [shape: f32[1,256], index: 11, kind: input, shape index: {}]   ;;  %s5716_s12 = inlined_call_operand.vmem [shape: bf16[128,128], index: 12, kind: input, shape index: {}]   ;;  %s5717_s13 = inlined_call_operand.vmem [shape: f32[1,128], index: 13, kind: input, shape index: {}]   ;;  %s5718_s14 = inlined_call_operand.vmem [shape: f32[1,128], index: 14, kind: input, shape index: {}]   ;;  %s5719_s15 = inlined_call_operand.vmem [shape: f32[1,128], index: 15, kind: input, shape index: {}]   ;;  %s5720_s16 = inlined_call_operand.vmem [shape: bf16[128,128], index: 16, kind: input, shape index: {}]   ;;  %s5721_s17 = inlined_call_operand.vmem [shape: f32[1,128], index: 17, kind: input, shape index: {}]   ;;  %s5722_s18 = inlined_call_operand.vmem [shape: f32[1,128], index: 18, kind: input, shape index: {}]   ;;  %s5723_s19 = inlined_call_operand.vmem [shape: f32[1,128], index: 19, kind: input, shape index: {}]   ;;  %s5724_s20 = inlined_call_operand.vmem [shape: bf16[128,128], index: 20, kind: input, shape index: {}]   ;;  %s5725_s21 = inlined_call_operand.vmem [shape: f32[1,128], index: 21, kind: input, shape index: {}]   ;;  %s5726_s22 = inlined_call_operand.vmem [shape: bf16[256,128], index: 22, kind: output, shape index: {0}]   ;;  %s5727_s23 = inlined_call_operand.vmem [shape: f32[256,128], index: 23, kind: output, shape index: {1}]   ;;  %s5728_s24 = inlined_call_operand.vmem [shape: f32[256,128], index: 24, kind: output, shape index: {2}]  }
   0x1   :  { %5731 = sst [smem:[#allocation2_spill]] %s5704_s0 }
   0x2   :  { %5732 = sst [smem:[#allocation3_spill]] %s5705_s1 }
   0x3   :  { %5733 = sst [smem:[#allocation4_spill]] %s5706_s2 }
   0x4   :  { %5734 = sst [smem:[#allocation5_spill]] %s5707_s3 }
   0x5   :  { %5735 = sst [smem:[#allocation6_spill]] %s5708_s4 }
   0x6   :  { %5736 = sst [smem:[#allocation7_spill]] %s5709_s5  ;;  %s4249_s5 = smov 0  }
   0x7   :  { %5737 = sst [smem:[#allocation8_spill]] %s5710_s6 }
   0x8   :  { %5738 = sst [smem:[#allocation9_spill]] %s5711_s7 }
   0x9   :  { %5739 = sst [smem:[#allocation10_spill]] %s5712_s8 }
   0xa LB: > { %s3567_s26 = sadd.s32 4294967295, %s4122_s5   ;;  %p3571_p0 = scmp.ge.s32.totalorder %s4122_s5, 1  ;;  %s4122_s5 = sphi %s4249_s5, %s35_s5  }
   0xb   : > { %p679_p1 = scmp.lt.s32.totalorder %s4122_s5, 3 }
   0xd   : > { %p680_p2 = pnand %p3571_p0, %p679_p1 }
   0xe   : > { %s5740_s6 = sld [smem:[#allocation4_spill]] (!%p680_p2)  ;;  %s3572_s30 = sshll.u32 (!%p680_p2), %s3567_s26, 4 }
   0xf   : > { %683 = sbr.rel (%p680_p2) target bundleno = 1621 (0x655), region = 108  ;;  %p761_p3 = scmp.lt.s32.totalorder (!%p680_p2), %s3572_s30, 31 }
  0x10   : > { %s5741_s7 = sld [smem:[#allocation2_spill]] (!%p680_p2) }
  0x11   : > { %s5742_s26 = sld [smem:[#allocation5_spill]] (!%p680_p2) }
  0x12   : > { %s5743_s29 = sld [smem:[#allocation8_spill]] (!%p680_p2) }
  0x13   : > { %s5744_s1 = sld [smem:[#allocation6_spill]] (!%p680_p2) }
  0x14   : > { %v3815_v0 = vld [vmem:[%s5740_s6 + $0x38] sm:$0xff]  ;;  %v3814_v1 = vld [vmem:[%s5740_s6 + $0x30] sm:$0xff]  ;;  %v3813_v2 = vld [vmem:[%s5740_s6 + $0x28] sm:$0xff]  ;;  %s5762_s30 = smov (!%p761_p3, %s3572_s30), 31  ;;  %s5745_s2 = sld [smem:[#allocation7_spill]] }
  0x15   : > { %882 = vmatpush.bf16.msra.mxu0 %v3815_v0  ;;  %3911 = vmatpush.bf16.msra.mxu3 %v3815_v0  ;;  %v3812_v3 = vld [vmem:[%s5740_s6 + $0x20] sm:$0xff]  ;;  %v3811_v4 = vld [vmem:[%s5740_s6 + $0x18] sm:$0xff]  ;;  %v3810_v5 = vld [vmem:[%s5740_s6 + $0x10] sm:$0xff]  ;;  %s4278_s27 = sshll.u32 %s5762_s30, 3  ;;  %s5760_s28 = sld [smem:[#allocation3_spill]] }
  0x16   : > { %v3809_v6 = vld [vmem:[%s5740_s6 + $0x8] sm:$0xff]  ;;  %s4287_s3 = scalar_lea.vmem %s5741_s7, %s4278_s27  ;;  %v3808_v7 = vld [vmem:[%s5740_s6] sm:$0xff]  ;;  %s5089_s0 = scalar_lea.vmem %s5727_s23, %s4278_s27 }
  0x17   : > { %v790_v8 = vld [vmem:[%s4287_s3] sm:$0xff]  ;;  %v791_v9 = vld [vmem:[%s4287_s3 + $0x8] sm:$0xff]  ;;  %v792_v14 = vld [vmem:[%s4287_s3 + $0x10] sm:$0xff]  ;;  %s5102_s4 = scalar_lea.vmem %s5728_s24, %s4278_s27 }
  0x18   : > { %v794_v10 = vld [vmem:[%s4287_s3 + $0x20] sm:$0xff]  ;;  %v795_v11 = vld [vmem:[%s4287_s3 + $0x28] sm:$0xff]  ;;  %v822_v12 = vpack.c.bf16 %v791_v9, %v790_v8  ;;  %v793_v15 = vld [vmem:[%s4287_s3 + $0x18] sm:$0xff] }
  0x19   : > { %883 = vmatpush.bf16.msra.mxu0 %v3814_v1  ;;  %3912 = vmatpush.bf16.msra.mxu3 %v3814_v1  ;;  %v824_v13 = vpack.c.bf16 %v795_v11, %v794_v10  ;;  %v796_v16 = vld [vmem:[%s4287_s3 + $0x30] sm:$0xff]  ;;  %v797_v17 = vld [vmem:[%s4287_s3 + $0x38] sm:$0xff]  ;;  %v823_v18 = vpack.c.bf16 %v793_v15, %v792_v14  ;;  %v798_v20 = vld [vmem:[%s4287_s3 + $0x40] sm:$0xff] }
  0x1a   : > { %v825_v19 = vpack.c.bf16 %v797_v17, %v796_v16  ;;  %v799_v21 = vld [vmem:[%s4287_s3 + $0x48] sm:$0xff]  ;;  %v800_v23 = vld [vmem:[%s4287_s3 + $0x50] sm:$0xff]  ;;  %v801_v24 = vld [vmem:[%s4287_s3 + $0x58] sm:$0xff] }
  0x1b   : > { %v826_v22 = vpack.c.bf16 %v799_v21, %v798_v20  ;;  %v827_v25 = vpack.c.bf16 %v801_v24, %v800_v23  ;;  %v802_v26 = vld [vmem:[%s4287_s3 + $0x60] sm:$0xff]  ;;  %v803_v27 = vld [vmem:[%s4287_s3 + $0x68] sm:$0xff]  ;;  %v804_v29 = vld [vmem:[%s4287_s3 + $0x70] sm:$0xff] }
  0x1c   : > { %v828_v28 = vpack.c.bf16 %v803_v27, %v802_v26  ;;  %v805_v30 = vld [vmem:[%s4287_s3 + $0x78] sm:$0xff]  ;;  %v4311_v32 = vld [vmem:[%s5742_s26] ss:$0 sm:$0xff]  ;;  %s5758_s3 = sld [smem:[#allocation9_spill]] }
  0x1d   : > { %884 = vmatpush.bf16.msra.mxu0 %v3813_v2  ;;  %3913 = vmatpush.bf16.msra.mxu3 %v3813_v2  ;;  %v829_v31 = vpack.c.bf16 %v805_v30, %v804_v29 }
  0x21   : > { %885 = vmatpush.bf16.msra.mxu0 %v3812_v3  ;;  %3914 = vmatpush.bf16.msra.mxu3 %v3812_v3 }
  0x25   : > { %886 = vmatpush.bf16.msra.mxu0 %v3811_v4  ;;  %3915 = vmatpush.bf16.msra.mxu3 %v3811_v4 }
  0x29   : > { %887 = vmatpush.bf16.msra.mxu0 %v3810_v5  ;;  %3916 = vmatpush.bf16.msra.mxu3 %v3810_v5 }
  0x2d   : > { %888 = vmatpush.bf16.msra.mxu0 %v3809_v6  ;;  %3917 = vmatpush.bf16.msra.mxu3 %v3809_v6 }
  0x31   : > { %889 = vmatpush.bf16.msra.mxu0 %v3808_v7  ;;  %3918 = vmatpush.bf16.msra.mxu3 %v3808_v7 }
  0x34   : > { %890 = vmatmul.bf16.vlgmr.msra.gmra.mxu0 %v822_v12  ;;  %900 = vmatmul.bf16.vlgmr.msra.gmra.mxu3 %v824_v13 }
  0x44   : > { %895 = vmatmul.bf16.gmra.mxu0 %v823_v18  ;;  %905 = vmatmul.bf16.gmra.mxu3 %v825_v19 }
  0x54   : > { %910 = vmatmul.bf16.gmra.mxu3 %v826_v22 }
  0x64   : > { %915 = vmatmul.bf16.gmra.mxu3 %v827_v25 }
  0x74   : > { %920 = vmatmul.bf16.gmra.mxu3 %v828_v28 }
  0x84   : > { %925 = vmatmul.bf16.gmra.mxu3 %v829_v31 }
  0xb1   : > { %v891_v33 = vpop.f32.mrf.mxu0 }
  0xb2   : > { %v892_v34 = vadd.f32 %v4311_v32, %v891_v33  ;;  %v3823_v33 = vld [vmem:[%s5743_s29 + $0x38] sm:$0xff] }
  0xb3   : > { %1415 = vmatpush.bf16.msrb.mxu0 %v3823_v33  ;;  %3919 = vmatpush.bf16.msra.mxu1 %v3823_v33 }
  0xb4   : > { %v4314_v35 = vmax.f32 %v892_v34, 0.0 }
  0xb6   : > { %947 = vadd.xlane.f32.xlu0 %v4314_v35  ;;  %v995_v36 = vmul.f32 %v4314_v35, %v4314_v35 }
  0xb7   : > { %v901_v37 = vpop.f32.mrf.mxu3 }
  0xb8   : > { %1011 = vadd.xlane.f32.xlu1 %v995_v36  ;;  %v902_v51 = vadd.f32 %v4311_v32, %v901_v37  ;;  %v3822_v36 = vld [vmem:[%s5743_s29 + $0x30] sm:$0xff]  ;;  %v3820_v37 = vld [vmem:[%s5743_s29 + $0x20] sm:$0xff] }
  0xb9   : > { %v893_v38 = vpop.f32.mrf.mxu0  ;;  %1416 = vmatpush.bf16.msrb.mxu0 %v3822_v36  ;;  %3920 = vmatpush.bf16.msra.mxu1 %v3822_v36 }
  0xba   : > { %v894_v39 = vadd.f32 %v4311_v32, %v893_v38  ;;  %v4341_v56 = vmax.f32 %v902_v51, 0.0  ;;  %v3819_v38 = vld [vmem:[%s5743_s29 + $0x18] sm:$0xff] }
  0xbc   : > { %v4320_v40 = vmax.f32 %v894_v39, 0.0  ;;  %v999_v60 = vmul.f32 %v4341_v56, %v4341_v56  ;;  %v3818_v39 = vld [vmem:[%s5743_s29 + $0x10] sm:$0xff] }
  0xbe   : > { %949 = vadd.xlane.f32.xlu0 %v4320_v40  ;;  %v996_v41 = vmul.f32 %v4320_v40, %v4320_v40 }
  0xbf   : > { %v903_v42 = vpop.f32.mrf.mxu3 }
  0xc0   : > { %1013 = vadd.xlane.f32.xlu1 %v996_v41  ;;  %v904_v48 = vadd.f32 %v4311_v32, %v903_v42 }
  0xc1   : > { %v896_v43 = vpop.f32.mrf.mxu0 }
  0xc2   : > { %v897_v44 = vadd.f32 %v4311_v32, %v896_v43  ;;  %v4334_v52 = vmax.f32 %v904_v48, 0.0 }
  0xc4   : > { %v4326_v45 = vmax.f32 %v897_v44, 0.0  ;;  %v1000_v0 = vmul.f32 %v4334_v52, %v4334_v52  ;;  %v3817_v44 = vld [vmem:[%s5743_s29 + $0x8] sm:$0xff] }
  0xc6   : > { %951 = vadd.xlane.f32.xlu2 %v4326_v45  ;;  %v997_v46 = vmul.f32 %v4326_v45, %v4326_v45 }
  0xc7   : > { %v906_v47 = vpop.f32.mrf.mxu3 }
  0xc8   : > { %1015 = vadd.xlane.f32.xlu0 %v997_v46  ;;  %v907_v57 = vadd.f32 %v4311_v32, %v906_v47 }
  0xc9   : > { %v898_v49 = vpop.f32.mrf.mxu0 }
  0xca   : > { %v899_v50 = vadd.f32 %v4311_v32, %v898_v49  ;;  %v4345_v58 = vmax.f32 %v907_v57, 0.0  ;;  %v3816_v49 = vld [vmem:[%s5743_s29] sm:$0xff] }
  0xcc   : > { %v4336_v53 = vmax.f32 %v899_v50, 0.0  ;;  %v1001_v4 = vmul.f32 %v4345_v58, %v4345_v58 }
  0xce   : > { %953 = vadd.xlane.f32.xlu2 %v4336_v53  ;;  %v998_v54 = vmul.f32 %v4336_v53, %v4336_v53 }
  0xcf   : > { %v908_v55 = vpop.f32.mrf.mxu3 }
  0xd0   : > { %957 = vadd.xlane.f32.xlu0 %v4334_v52  ;;  %1017 = vadd.xlane.f32.xlu1 %v998_v54  ;;  %v909_v59 = vadd.f32 %v4311_v32, %v908_v55 }
  0xd2   : > { %v4351_v62 = vmax.f32 %v909_v59, 0.0 }
  0xd4   : > { %v1002_v1 = vmul.f32 %v4351_v62, %v4351_v62 }
  0xd6   : > { %955 = vadd.xlane.f32.xlu2 %v4341_v56 }
  0xd7   : > { %v911_v61 = vpop.f32.mrf.mxu3 }
  0xd8   : > { %959 = vadd.xlane.f32.xlu0 %v4345_v58  ;;  %1019 = vadd.xlane.f32.xlu1 %v999_v60  ;;  %v912_v63 = vadd.f32 %v4311_v32, %v911_v61 }
  0xda   : > { %v4359_v3 = vmax.f32 %v912_v63, 0.0 }
  0xdc   : > { %v1003_v6 = vmul.f32 %v4359_v3, %v4359_v3 }
  0xde   : > { %1021 = vadd.xlane.f32.xlu2 %v1000_v0 }
  0xdf   : > { %v913_v2 = vpop.f32.mrf.mxu3 }
  0xe0   : > { %961 = vadd.xlane.f32.xlu1 %v4351_v62  ;;  %1025 = vadd.xlane.f32.xlu0 %v1002_v1  ;;  %v914_v5 = vadd.f32 %v4311_v32, %v913_v2 }
  0xe2   : > { %v4367_v8 = vmax.f32 %v914_v5, 0.0 }
  0xe4   : > { %v1004_v10 = vmul.f32 %v4367_v8, %v4367_v8 }
  0xe6   : > { %1023 = vadd.xlane.f32.xlu2 %v1001_v4 }
  0xe7   : > { %v916_v7 = vpop.f32.mrf.mxu3 }
  0xe8   : > { %963 = vadd.xlane.f32.xlu1 %v4359_v3  ;;  %1027 = vadd.xlane.f32.xlu0 %v1003_v6  ;;  %v917_v9 = vadd.f32 %v4311_v32, %v916_v7 }
  0xea   : > { %v4374_v12 = vmax.f32 %v917_v9, 0.0 }
  0xec   : > { %v1005_v15 = vmul.f32 %v4374_v12, %v4374_v12 }
  0xee   : > { %965 = vadd.xlane.f32.xlu2 %v4367_v8 }
  0xef   : > { %v918_v11 = vpop.f32.mrf.mxu3 }
  0xf0   : > { %v919_v13 = vadd.f32 %v4311_v32, %v918_v11  ;;  %1029 = vadd.xlane.f32.xlu1 %v1004_v10 }
  0xf2   : > { %v4377_v14 = vmax.f32 %v919_v13, 0.0 }
  0xf4   : > { %969 = vadd.xlane.f32.xlu0 %v4377_v14  ;;  %v1006_v19 = vmul.f32 %v4377_v14, %v4377_v14 }
  0xf6   : > { %967 = vadd.xlane.f32.xlu2 %v4374_v12 }
  0xf7   : > { %v921_v16 = vpop.f32.mrf.mxu3 }
  0xf8   : > { %v922_v17 = vadd.f32 %v4311_v32, %v921_v16  ;;  %1031 = vadd.xlane.f32.xlu1 %v1005_v15 }
  0xfa   : > { %v4384_v18 = vmax.f32 %v922_v17, 0.0 }
  0xfc   : > { %971 = vadd.xlane.f32.xlu0 %v4384_v18  ;;  %v1007_v23 = vmul.f32 %v4384_v18, %v4384_v18 }
  0xfe   : > { %1033 = vadd.xlane.f32.xlu2 %v1006_v19 }
  0xff   : > { %v923_v20 = vpop.f32.mrf.mxu3 }
 0x100   : > { %v924_v21 = vadd.f32 %v4311_v32, %v923_v20 }
 0x102   : > { %v4390_v22 = vmax.f32 %v924_v21, 0.0 }
 0x104   : > { %973 = vadd.xlane.f32.xlu1 %v4390_v22  ;;  %v1008_v24 = vmul.f32 %v4390_v22, %v4390_v22 }
 0x106   : > { %1035 = vadd.xlane.f32.xlu2 %v1007_v23  ;;  %1037 = vadd.xlane.f32.xlu0 %v1008_v24 }
 0x107   : > { %v926_v25 = vpop.f32.mrf.mxu3 }
 0x108   : > { %v927_v26 = vadd.f32 %v4311_v32, %v926_v25 }
 0x10a   : > { %v4398_v27 = vmax.f32 %v927_v26, 0.0 }
 0x10c   : > { %975 = vadd.xlane.f32.xlu1 %v4398_v27  ;;  %v1009_v28 = vmul.f32 %v4398_v27, %v4398_v27 }
 0x10e   : > { %1039 = vadd.xlane.f32.xlu0 %v1009_v28 }
 0x10f   : > { %v928_v29 = vpop.f32.mrf.mxu3 }
 0x110   : > { %v929_v30 = vadd.f32 %v4311_v32, %v928_v29  ;;  %v3821_v32 = vld [vmem:[%s5743_s29 + $0x28] sm:$0xff] }
 0x111   : > { %1417 = vmatpush.bf16.msrb.mxu0 %v3821_v32  ;;  %3921 = vmatpush.bf16.msra.mxu1 %v3821_v32 }
 0x112   : > { %v4404_v31 = vmax.f32 %v929_v30, 0.0 }
 0x114   : > { %977 = vadd.xlane.f32.xlu2 %v4404_v31  ;;  %v1010_v34 = vmul.f32 %v4404_v31, %v4404_v31 }
 0x115   : > { %1418 = vmatpush.bf16.msrb.mxu0 %v3820_v37  ;;  %3922 = vmatpush.bf16.msra.mxu1 %v3820_v37 }
 0x116   : > { %1041 = vadd.xlane.f32.xlu1 %v1010_v34 }
 0x119   : > { %1419 = vmatpush.bf16.msrb.mxu0 %v3819_v38  ;;  %3923 = vmatpush.bf16.msra.mxu1 %v3819_v38 }
 0x11d   : > { %1420 = vmatpush.bf16.msrb.mxu0 %v3818_v39  ;;  %3924 = vmatpush.bf16.msra.mxu1 %v3818_v39 }
 0x121   : > { %1421 = vmatpush.bf16.msrb.mxu0 %v3817_v44  ;;  %3925 = vmatpush.bf16.msra.mxu1 %v3817_v44 }
 0x125   : > { %1422 = vmatpush.bf16.msrb.mxu0 %v3816_v49  ;;  %3926 = vmatpush.bf16.msra.mxu1 %v3816_v49 }
 0x129   : > { %v948_v41 = vpop.xlane.xlu0 %947 }
 0x12a   : > { %v979_v42 = vmul.f32 0.03125, %v948_v41 }
 0x12b   : > { %v1012_v43 = vpop.xlane.xlu1 %1011 }
 0x12c   : > { %v1059_v46 = vmul.f32 %v979_v42, %v979_v42  ;;  %v1043_v47 = vmul.f32 0.03125, %v1012_v43  ;;  %v1091_v33 = vsub.f32 %v4314_v35, %v979_v42  ;;  %v4454_v43 = vld [vmem:[%s5744_s1] ss:$0 sm:$0xff] }
 0x12e   : > { %v1075_v48 = vsub.f32 %v1043_v47, %v1059_v46 }
 0x130   : > { %v1107_v50 = vadd.f32 1e-05, %v1075_v48 }
 0x131   : > { %v950_v51 = vpop.xlane.xlu0 %949 }
 0x132   : > { %3956 = vrsqrt.f32 %v1107_v50  ;;  %v980_v54 = vmul.f32 0.03125, %v950_v51  ;;  %vm1129_vm1 = vweird.f32 %v1107_v50 }
 0x133   : > { %v1014_v55 = vpop.xlane.xlu1 %1013 }
 0x134   : > { %v1060_v57 = vmul.f32 %v980_v54, %v980_v54  ;;  %v1044_v59 = vmul.f32 0.03125, %v1014_v55  ;;  %v1092_v42 = vsub.f32 %v4320_v40, %v980_v54 }
 0x136   : > { %v1076_v60 = vsub.f32 %v1044_v59, %v1060_v57  ;;  %v4467_v59 = vld [vmem:[%s5745_s2] ss:$0 sm:$0xff]  ;;  %s5759_s2 = sld [smem:[#allocation10_spill]] }
 0x138   : > { %v3957_v61 = vpop.eup %3956  ;;  %v1108_v63 = vadd.f32 1e-05, %v1076_v60 }
 0x139   : > { %v1124_v0 = vmul.f32 %v3957_v61, %v1107_v50  ;;  %v952_v1 = vpop.xlane.xlu2 %951  ;;  %vm1130_vm0 = vweird.f32 %v3957_v61 }
 0x13a   : > { %3958 = vrsqrt.f32 %v1108_v63  ;;  %v4433_v2 = vmul.f32 0.03125, %v952_v1  ;;  %vm1131_vm2 = vmor %vm1129_vm1, %vm1130_vm0  ;;  %vm1139_vm4 = vweird.f32 %v1108_v63 }
 0x13b   : > { %v1125_v4 = vmul.f32 %v3957_v61, %v1124_v0  ;;  %v1016_v5 = vpop.xlane.xlu0 %1015 }
 0x13c   : > { %v1061_v6 = vmul.f32 %v4433_v2, %v4433_v2  ;;  %v1045_v7 = vmul.f32 0.03125, %v1016_v5 }
 0x13d   : > { %v1126_v9 = vmul.f32 0.5, %v1125_v4 }
 0x13e   : > { %v1077_v10 = vsub.f32 %v1045_v7, %v1061_v6 }
 0x13f   : > { %v1127_v11 = vsub.f32 1.5, %v1126_v9 }
 0x140   : > { %v3959_v13 = vpop.eup %3958  ;;  %v4437_v15 = vadd.f32 1e-05, %v1077_v10 }
 0x141   : > { %v1134_v16 = vmul.f32 %v3959_v13, %v1108_v63  ;;  %v954_v17 = vpop.xlane.xlu2 %953  ;;  %v1128_v19 = vmul.f32 %v3957_v61, %v1127_v11  ;;  %vm1140_vm3 = vweird.f32 %v3959_v13 }
 0x142   : > { %3960 = vrsqrt.f32 %v4437_v15  ;;  %v4440_v20 = vmul.f32 0.03125, %v954_v17  ;;  %vm1141_vm5 = vmor %vm1139_vm4, %vm1140_vm3  ;;  %vm1149_vm7 = vweird.f32 %v4437_v15 }
 0x143   : > { %v1135_v21 = vmul.f32 %v3959_v13, %v1134_v16  ;;  %v958_v23 = vpop.xlane.xlu0 %957  ;;  %v1018_v24 = vpop.xlane.xlu1 %1017  ;;  %v1132_v29 = vsel %vm1131_vm2, %v3957_v61, %v1128_v19 }
 0x144   : > { %v1062_v25 = vmul.f32 %v4440_v20, %v4440_v20  ;;  %v1046_v26 = vmul.f32 0.03125, %v1018_v24  ;;  %v1283_v41 = vmul.f32 %v1132_v29, %v1091_v33  ;;  %v4469_v54 = vmul.f32 0.03125, %v958_v23 }
 0x145   : > { %v1136_v28 = vmul.f32 0.5, %v1135_v21 }
 0x146   : > { %v1078_v30 = vsub.f32 %v1046_v26, %v1062_v25  ;;  %v1303_v57 = vmul.f32 %v4454_v43, %v1283_v41  ;;  %v1064_v1 = vmul.f32 %v4469_v54, %v4469_v54 }
 0x147   : > { %v1137_v34 = vsub.f32 1.5, %v1136_v28 }
 0x148   : > { %v4445_v36 = vpop.eup %3960  ;;  %v4447_v32 = vadd.f32 1e-05, %v1078_v30  ;;  %v1323_v6 = vadd.f32 %v4467_v59, %v1303_v57  ;;  %v1093_v30 = vsub.f32 %v4326_v45, %v4433_v2 }
 0x149   : > { %v1138_v37 = vmul.f32 %v3959_v13, %v1137_v34  ;;  %v1144_v38 = vmul.f32 %v4445_v36, %v4437_v15  ;;  %v956_v39 = vpop.xlane.xlu2 %955  ;;  %vm1150_vm6 = vweird.f32 %v4445_v36 }
 0x14a   : > { %3962 = vrsqrt.f32 %v4447_v32  ;;  %v4457_v35 = vmul.f32 0.03125, %v956_v39  ;;  %vm4485_vm8 = vmor %vm1149_vm7, %vm1150_vm6  ;;  %vm1159_vm10 = vweird.f32 %v4447_v32 }
 0x14b   : > { %v1142_v44 = vsel %vm1141_vm5, %v3959_v13, %v1138_v37  ;;  %v1145_v46 = vmul.f32 %v4445_v36, %v1144_v38  ;;  %v960_v47 = vpop.xlane.xlu0 %959  ;;  %v1020_v48 = vpop.xlane.xlu1 %1019 }
 0x14c   : > { %v1063_v49 = vmul.f32 %v4457_v35, %v4457_v35  ;;  %v1047_v50 = vmul.f32 0.03125, %v1020_v48  ;;  %v1284_v55 = vmul.f32 %v1142_v44, %v1092_v42  ;;  %v4489_v26 = vmul.f32 0.03125, %v960_v47 }
 0x14d   : > { %v1146_v51 = vmul.f32 0.5, %v1145_v46  ;;  %v1094_v44 = vsub.f32 %v4336_v53, %v4440_v20 }
 0x14e   : > { %v1079_v60 = vsub.f32 %v1047_v50, %v1063_v49  ;;  %v1304_v61 = vmul.f32 %v4454_v43, %v1284_v55  ;;  %v1065_v37 = vmul.f32 %v4489_v26, %v4489_v26 }
 0x14f   : > { %v1147_v40 = vsub.f32 1.5, %v1146_v51 }
 0x150   : > { %v3963_v63 = vpop.eup %3962  ;;  %v4472_v0 = vadd.f32 1e-05, %v1079_v60  ;;  %v1324_v7 = vadd.f32 %v4467_v59, %v1304_v61 }
 0x151   : > { %v1154_v4 = vmul.f32 %v3963_v63, %v4447_v32  ;;  %v1022_v5 = vpop.xlane.xlu2 %1021  ;;  %v1148_v9 = vmul.f32 %v4445_v36, %v1147_v40  ;;  %vm1160_vm9 = vweird.f32 %v3963_v63 }
 0x152   : > { %3964 = vrsqrt.f32 %v4472_v0  ;;  %v1048_v10 = vmul.f32 0.03125, %v1022_v5  ;;  %v1355_v16 = vpack.c.bf16 %v1324_v7, %v1323_v6  ;;  %vm1161_vm11 = vmor %vm1159_vm10, %vm1160_vm9  ;;  %vm1169_vm13 = vweird.f32 %v4472_v0 }
 0x153   : > { %v1155_v11 = vmul.f32 %v3963_v63, %v1154_v4  ;;  %v962_v13 = vpop.xlane.xlu1 %961  ;;  %v1026_v17 = vpop.xlane.xlu0 %1025  ;;  %v1152_v15 = vsel %vm4485_vm8, %v4445_v36, %v1148_v9 }
 0x154   : > { %v1080_v19 = vsub.f32 %v1048_v10, %v1064_v1  ;;  %v4483_v21 = vmul.f32 0.03125, %v962_v13  ;;  %v1050_v23 = vmul.f32 0.03125, %v1026_v17  ;;  %1423 = vmatmul.bf16.vlgmr.msrb.gmra.mxu0 %v1355_v16  ;;  %v1285_v42 = vmul.f32 %v1152_v15, %v1093_v30 }
 0x155   : > { %v1156_v25 = vmul.f32 0.5, %v1155_v11 }
 0x156   : > { %v4491_v28 = vadd.f32 1e-05, %v1080_v19  ;;  %v1066_v29 = vmul.f32 %v4483_v21, %v4483_v21  ;;  %v1305_v60 = vmul.f32 %v4454_v43, %v1285_v42 }
 0x157   : > { %v1157_v33 = vsub.f32 1.5, %v1156_v25 }
 0x158   : > { %v4500_v34 = vpop.eup %3964  ;;  %3966 = vrsqrt.f32 %v4491_v28  ;;  %v1082_v38 = vsub.f32 %v1050_v23, %v1066_v29  ;;  %v1325_v7 = vadd.f32 %v4467_v59, %v1305_v60  ;;  %vm1179_vm0 = vweird.f32 %v4491_v28 }
 0x159   : > { %v1158_v39 = vmul.f32 %v3963_v63, %v1157_v33  ;;  %v1164_v41 = vmul.f32 %v4500_v34, %v4472_v0  ;;  %v1024_v36 = vpop.xlane.xlu2 %1023  ;;  %vm1170_vm12 = vweird.f32 %v4500_v34  ;;  %v1097_v33 = vsub.f32 %v4345_v58, %v4489_v26 }
 0x15a   : > { %v4508_v45 = vadd.f32 1e-05, %v1082_v38  ;;  %v1049_v2 = vmul.f32 0.03125, %v1024_v36  ;;  %vm4541_vm14 = vmor %vm1169_vm13, %vm1170_vm12  ;;  %v1095_v36 = vsub.f32 %v4341_v56, %v4457_v35  ;;  %v1098_v58 = vsub.f32 %v4351_v62, %v4483_v21 }
 0x15b   : > { %v1165_v46 = vmul.f32 %v4500_v34, %v1164_v41  ;;  %v964_v47 = vpop.xlane.xlu1 %963  ;;  %v1028_v48 = vpop.xlane.xlu0 %1027  ;;  %v1162_v49 = vsel %vm1161_vm11, %v3963_v63, %v1158_v39 }
 0x15c   : > { %3968 = vrsqrt.f32 %v4508_v45  ;;  %v1081_v32 = vsub.f32 %v1049_v2, %v1065_v37  ;;  %v4514_v50 = vmul.f32 0.03125, %v964_v47  ;;  %v1051_v55 = vmul.f32 0.03125, %v1028_v48 }
 0x15d   : > { %v1166_v51 = vmul.f32 0.5, %v1165_v46  ;;  %v1286_v57 = vmul.f32 %v1162_v49, %v1094_v44  ;;  %vm1199_vm2 = vweird.f32 %v4508_v45 }
 0x15e   : > { %v3967_v40 = vpop.eup %3966  ;;  %v4517_v61 = vadd.f32 1e-05, %v1081_v32  ;;  %v1067_v53 = vmul.f32 %v4514_v50, %v4514_v50 }
 0x15f   : > { %v1167_v20 = vsub.f32 1.5, %v1166_v51  ;;  %v1174_v1 = vmul.f32 %v3967_v40, %v4491_v28  ;;  %v1306_v63 = vmul.f32 %v4454_v43, %v1286_v57  ;;  %vm1180_vm15 = vweird.f32 %v3967_v40 }
 0x160   : > { %3970 = vrsqrt.f32 %v4517_v61  ;;  %v1083_v5 = vsub.f32 %v1051_v55, %v1067_v53  ;;  %vm1181_vm1 = vmor %vm1179_vm0, %vm1180_vm15  ;;  %vm1189_vm4 = vweird.f32 %v4517_v61 }
 0x161   : > { %v1175_v4 = vmul.f32 %v3967_v40, %v1174_v1  ;;  %v966_v6 = vpop.xlane.xlu2 %965  ;;  %v1326_v9 = vadd.f32 %v4467_v59, %v1306_v63  ;;  %v1168_v13 = vmul.f32 %v4500_v34, %v1167_v20 }
 0x162   : > { %v4526_v10 = vpop.eup %3968  ;;  %v4529_v11 = vmul.f32 0.03125, %v966_v6  ;;  %v4537_v29 = vadd.f32 1e-05, %v1083_v5 }
 0x163   : > { %v1176_v16 = vmul.f32 0.5, %v1175_v4  ;;  %v1194_v17 = vmul.f32 %v4526_v10, %v4508_v45  ;;  %v1030_v19 = vpop.xlane.xlu1 %1029  ;;  %v1356_v23 = vpack.c.bf16 %v1326_v9, %v1325_v7  ;;  %v1172_v0 = vsel %vm4541_vm14, %v4500_v34, %v1168_v13 }
 0x164   : > { %v1068_v24 = vmul.f32 %v4529_v11, %v4529_v11  ;;  %v1052_v15 = vmul.f32 0.03125, %v1030_v19  ;;  %3972 = vrsqrt.f32 %v4537_v29  ;;  %v1287_v49 = vmul.f32 %v1172_v0, %v1095_v36 }
 0x165   : > { %v1177_v25 = vsub.f32 1.5, %v1176_v16  ;;  %1428 = vmatmul.bf16.gmra.mxu0 %v1356_v23  ;;  %v1195_v38 = vmul.f32 %v4526_v10, %v1194_v17  ;;  %v1096_v34 = vsub.f32 %v4334_v52, %v4469_v54  ;;  %vm1200_vm5 = vweird.f32 %v4526_v10 }
 0x166   : > { %v4539_v30 = vpop.eup %3970  ;;  %v1084_v42 = vsub.f32 %v1052_v15, %v1068_v24  ;;  %v1307_v53 = vmul.f32 %v4454_v43, %v1287_v49  ;;  %vm4599_vm7 = vmor %vm1199_vm2, %vm1200_vm5  ;;  %vm1209_vm8 = vweird.f32 %v4537_v29 }
 0x167   : > { %v1178_v37 = vmul.f32 %v3967_v40, %v1177_v25  ;;  %v1184_v39 = vmul.f32 %v4539_v30, %v4517_v61  ;;  %v970_v41 = vpop.xlane.xlu0 %969  ;;  %v1196_v32 = vmul.f32 0.5, %v1195_v38  ;;  %vm1190_vm3 = vweird.f32 %v4539_v30 }
 0x168   : > { %v4556_v46 = vadd.f32 1e-05, %v1084_v42  ;;  %v4563_v55 = vmul.f32 0.03125, %v970_v41  ;;  %v1327_v13 = vadd.f32 %v4467_v59, %v1307_v53  ;;  %vm4587_vm6 = vmor %vm1189_vm4, %vm1190_vm3 }
 0x169   : > { %v1185_v2 = vmul.f32 %v4539_v30, %v1184_v39  ;;  %v968_v44 = vpop.xlane.xlu2 %967  ;;  %v1182_v48 = vsel %vm1181_vm1, %v3967_v40, %v1178_v37  ;;  %v1197_v20 = vsub.f32 1.5, %v1196_v32 }
 0x16a   : > { %v4558_v47 = vmul.f32 0.03125, %v968_v44  ;;  %3974 = vrsqrt.f32 %v4556_v46  ;;  %v1288_v51 = vmul.f32 %v1182_v48, %v1096_v34  ;;  %v4568_v40 = vpop.eup %3972  ;;  %v1070_v54 = vmul.f32 %v4563_v55, %v4563_v55 }
 0x16b   : > { %v1186_v56 = vmul.f32 0.5, %v1185_v2  ;;  %v1032_v35 = vpop.xlane.xlu1 %1031  ;;  %v1198_v16 = vmul.f32 %v4526_v10, %v1197_v20  ;;  %v1204_v17 = vmul.f32 %v4568_v40, %v4537_v29  ;;  %vm1210_vm9 = vweird.f32 %v4568_v40 }
 0x16c   : > { %v1069_v57 = vmul.f32 %v4558_v47, %v4558_v47  ;;  %v1053_v60 = vmul.f32 0.03125, %v1032_v35  ;;  %v1308_v52 = vmul.f32 %v4454_v43, %v1288_v51  ;;  %vm1219_vm10 = vweird.f32 %v4556_v46  ;;  %vm4639_vm12 = vmor %vm1209_vm8, %vm1210_vm9 }
 0x16d   : > { %v1187_v28 = vsub.f32 1.5, %v1186_v56  ;;  %v1205_v41 = vmul.f32 %v4568_v40, %v1204_v17  ;;  %v1100_v17 = vsub.f32 %v4367_v8, %v4529_v11 }
 0x16e   : > { %v1328_v5 = vadd.f32 %v4467_v59, %v1308_v52  ;;  %v1085_v7 = vsub.f32 %v1053_v60, %v1069_v57 }
 0x16f   : > { %v1188_v1 = vmul.f32 %v4539_v30, %v1187_v28  ;;  %v972_v63 = vpop.xlane.xlu0 %971  ;;  %v1206_v49 = vmul.f32 0.5, %v1205_v41 }
 0x170   : > { %v4577_v6 = vpop.eup %3974  ;;  %v1357_v61 = vpack.c.bf16 %v1328_v5, %v1327_v13  ;;  %v4603_v38 = vadd.f32 1e-05, %v1085_v7  ;;  %v4616_v42 = vmul.f32 0.03125, %v972_v63 }
 0x171   : > { %v1034_v4 = vpop.xlane.xlu2 %1033  ;;  %v1214_v19 = vmul.f32 %v4577_v6, %v4556_v46  ;;  %v1192_v15 = vsel %vm4587_vm6, %v4539_v30, %v1188_v1  ;;  %v1202_v30 = vsel %vm4599_vm7, %v4526_v10, %v1198_v16  ;;  %v1207_v51 = vsub.f32 1.5, %v1206_v49 }
 0x172   : > { %v1054_v9 = vmul.f32 0.03125, %v1034_v4  ;;  %1433 = vmatmul.bf16.vlgmr.msra.gmra.mxu1 %v1357_v61  ;;  %v1289_v45 = vmul.f32 %v1192_v15, %v1097_v33  ;;  %v1290_v48 = vmul.f32 %v1202_v30, %v1098_v58  ;;  %v1071_v10 = vmul.f32 %v4616_v42, %v4616_v42 }
 0x173   : > { %v1215_v25 = vmul.f32 %v4577_v6, %v1214_v19  ;;  %vm1220_vm11 = vweird.f32 %v4577_v6  ;;  %v1208_v4 = vmul.f32 %v4568_v40, %v1207_v51  ;;  %v1099_v61 = vsub.f32 %v4359_v3, %v4514_v50 }
 0x174   : > { %v1086_v24 = vsub.f32 %v1054_v9, %v1070_v54  ;;  %v1309_v32 = vmul.f32 %v4454_v43, %v1289_v45  ;;  %v1310_v28 = vmul.f32 %v4454_v43, %v1290_v48  ;;  %vm1221_vm13 = vmor %vm1219_vm10, %vm1220_vm11  ;;  %vm1229_vm14 = vweird.f32 %v4603_v38 }
 0x175   : > { %v1216_v36 = vmul.f32 0.5, %v1215_v25 }
 0x176   : > { %v4605_v39 = vadd.f32 1e-05, %v1086_v24  ;;  %v1329_v20 = vadd.f32 %v4467_v59, %v1309_v32  ;;  %v1330_v63 = vadd.f32 %v4467_v59, %v1310_v28  ;;  %v1212_v24 = vsel %vm4639_vm12, %v4568_v40, %v1208_v4 }
 0x177   : > { %v974_v0 = vpop.xlane.xlu1 %973  ;;  %v1217_v56 = vsub.f32 1.5, %v1216_v36  ;;  %v1291_v33 = vmul.f32 %v1212_v24, %v1099_v61 }
 0x178   : > { %3976 = vrsqrt.f32 %v4605_v39  ;;  %v4614_v26 = vmul.f32 0.03125, %v974_v0  ;;  %v1358_v9 = vpack.c.bf16 %v1330_v63, %v1329_v20  ;;  %vm1239_vm0 = vweird.f32 %v4605_v39 }
 0x179   : > { %v1036_v2 = vpop.xlane.xlu2 %1035  ;;  %v1038_v44 = vpop.xlane.xlu0 %1037  ;;  %3978 = vrsqrt.f32 %v4603_v38  ;;  %v1218_v52 = vmul.f32 %v4577_v6, %v1217_v56  ;;  %v1102_v20 = vsub.f32 %v4377_v14, %v4563_v55 }
 0x17a   : > { %v1055_v34 = vmul.f32 0.03125, %v1036_v2  ;;  %v1072_v62 = vmul.f32 %v4614_v26, %v4614_v26  ;;  %v1056_v21 = vmul.f32 0.03125, %v1038_v44  ;;  %v1311_v2 = vmul.f32 %v4454_v43, %v1291_v33 }
 0x17b   : > { %v1222_v16 = vsel %vm1221_vm13, %v4577_v6, %v1218_v52 }
 0x17c   : > { %v1087_v57 = vsub.f32 %v1055_v34, %v1071_v10  ;;  %v1088_v53 = vsub.f32 %v1056_v21, %v1072_v62  ;;  %v1292_v6 = vmul.f32 %v1222_v16, %v1100_v17 }
 0x17e   : > { %v4624_v35 = vpop.eup %3976  ;;  %v4645_v7 = vadd.f32 1e-05, %v1087_v57  ;;  %v4647_v46 = vadd.f32 1e-05, %v1088_v53  ;;  %v1312_v40 = vmul.f32 %v4454_v43, %v1292_v6  ;;  %v1103_v6 = vsub.f32 %v4384_v18, %v4616_v42 }
 0x17f   : > { %v4627_v60 = vpop.eup %3978  ;;  %v1234_v54 = vmul.f32 %v4624_v35, %v4605_v39  ;;  %v976_v1 = vpop.xlane.xlu1 %975  ;;  %vm1240_vm1 = vweird.f32 %v4624_v35 }
 0x180   : > { %v1224_v5 = vmul.f32 %v4627_v60, %v4603_v38  ;;  %3980 = vrsqrt.f32 %v4645_v7  ;;  %v4663_v11 = vmul.f32 0.03125, %v976_v1  ;;  %vm1230_vm15 = vweird.f32 %v4627_v60  ;;  %vm1241_vm3 = vmor %vm1239_vm0, %vm1240_vm1 }
 0x181   : > { %v1235_v13 = vmul.f32 %v4624_v35, %v1234_v54  ;;  %3982 = vrsqrt.f32 %v4647_v46  ;;  %v1040_v41 = vpop.xlane.xlu0 %1039  ;;  %v1332_v49 = vadd.f32 %v4467_v59, %v1312_v40  ;;  %v1331_v38 = vadd.f32 %v4467_v59, %v1311_v2  ;;  %vm4687_vm2 = vmor %vm1229_vm14, %vm1230_vm15 }
 0x182   : > { %1438 = vmatmul.bf16.gmra.mxu1 %v1358_v9  ;;  %v1225_v19 = vmul.f32 %v4627_v60, %v1224_v5  ;;  %v1073_v45 = vmul.f32 %v4663_v11, %v4663_v11  ;;  %v1057_v36 = vmul.f32 0.03125, %v1040_v41  ;;  %v1101_v1 = vsub.f32 %v4374_v12, %v4558_v47 }
 0x183   : > { %v1236_v15 = vmul.f32 0.5, %v1235_v13  ;;  %v1359_v28 = vpack.c.bf16 %v1332_v49, %v1331_v38  ;;  %vm1249_vm4 = vweird.f32 %v4645_v7  ;;  %vm1259_vm6 = vweird.f32 %v4647_v46 }
 0x184   : > { %v1226_v37 = vmul.f32 0.5, %v1225_v19  ;;  %v1089_v21 = vsub.f32 %v1057_v36, %v1073_v45 }
 0x185   : > { %v1237_v3 = vsub.f32 1.5, %v1236_v15  ;;  %v1104_v15 = vsub.f32 %v4390_v22, %v4614_v26 }
 0x186   : > { %v4668_v58 = vpop.eup %3980  ;;  %v1227_v44 = vsub.f32 1.5, %v1226_v37  ;;  %v1121_v52 = vadd.f32 1e-05, %v1089_v21 }
 0x187   : > { %v978_v23 = vpop.xlane.xlu2 %977  ;;  %v4670_v50 = vpop.eup %3982  ;;  %v1238_v10 = vmul.f32 %v4624_v35, %v1237_v3  ;;  %v1244_v34 = vmul.f32 %v4668_v58, %v4645_v7  ;;  %vm1250_vm5 = vweird.f32 %v4668_v58 }
 0x188   : > { %v4661_v25 = vmul.f32 0.03125, %v978_v23  ;;  %v1254_v62 = vmul.f32 %v4670_v50, %v4647_v46  ;;  %v1228_v32 = vmul.f32 %v4627_v60, %v1227_v44  ;;  %vm1260_vm7 = vweird.f32 %v4670_v50  ;;  %vm1251_vm8 = vmor %vm1249_vm4, %vm1250_vm5 }
 0x189   : > { %v1042_v8 = vpop.xlane.xlu1 %1041  ;;  %v1245_v51 = vmul.f32 %v4668_v58, %v1244_v34  ;;  %v1242_v53 = vsel %vm1241_vm3, %v4624_v35, %v1238_v10  ;;  %vm1261_vm9 = vmor %vm1259_vm6, %vm1260_vm7  ;;  %vm1269_vm12 = vweird.f32 %v1121_v52  ;;  %v1105_v44 = vsub.f32 %v4398_v27, %v4663_v11 }
 0x18a   : > { %v1074_v0 = vmul.f32 %v4661_v25, %v4661_v25  ;;  %v1058_v30 = vmul.f32 0.03125, %v1042_v8  ;;  %v1255_v57 = vmul.f32 %v4670_v50, %v1254_v62  ;;  %v1232_v54 = vsel %vm4687_vm2, %v4627_v60, %v1228_v32 }
 0x18b   : > { %v1294_v63 = vmul.f32 %v1242_v53, %v1102_v20  ;;  %v1246_v4 = vmul.f32 0.5, %v1245_v51  ;;  %v1293_v5 = vmul.f32 %v1232_v54, %v1101_v1  ;;  %v1106_v36 = vsub.f32 %v4404_v31, %v4661_v25  ;;  %v4732_v31 = vld [vmem:[%s5758_s3] ss:$0 sm:$0xff] }
 0x18c   : > { %v1090_v48 = vsub.f32 %v1058_v30, %v1074_v0  ;;  %v1256_v29 = vmul.f32 0.5, %v1255_v57 }
 0x18d   : > { %v1314_v35 = vmul.f32 %v4454_v43, %v1294_v63  ;;  %v1247_v9 = vsub.f32 1.5, %v1246_v4  ;;  %v1313_v55 = vmul.f32 %v4454_v43, %v1293_v5  ;;  %v3838_v5 = vld [vmem:[%s5714_s10 + $0x74] sm:$0xf] }
 0x18e   : > { %v1122_v56 = vadd.f32 1e-05, %v1090_v48  ;;  %v1257_v13 = vsub.f32 1.5, %v1256_v29 }
 0x18f   : > { %v1334_v47 = vadd.f32 %v4467_v59, %v1314_v35  ;;  %v1248_v60 = vmul.f32 %v4668_v58, %v1247_v9  ;;  %v1333_v7 = vadd.f32 %v4467_v59, %v1313_v55  ;;  %v3706_v35 = vld [vmem:[%s5714_s10 + $0x78] sm:$0xf0] }
 0x190   : > { %3984 = vrsqrt.f32 %v1122_v56  ;;  %v1258_v16 = vmul.f32 %v4670_v50, %v1257_v13  ;;  %vm1279_vm10 = vweird.f32 %v1122_v56  ;;  %v3709_v9 = vor.u32 %v3838_v5, %v3706_v35  ;;  %v3688_v5 = vld [vmem:[%s5714_s10 + $0x50] sm:$0xf]  ;;  %v3835_v35 = vld [vmem:[%s5714_s10 + $0x54] sm:$0xf0] }
 0x191   : > { %3986 = vrsqrt.f32 %v1121_v52  ;;  %v1360_v23 = vpack.c.bf16 %v1334_v47, %v1333_v7  ;;  %v1252_v61 = vsel %vm1251_vm8, %v4668_v58, %v1248_v60  ;;  %v3836_v7 = vld [vmem:[%s5714_s10 + $0x64] sm:$0xf] }
 0x192   : > { %1443 = vmatmul.bf16.gmra.mxu1 %v1359_v28  ;;  %v1262_v46 = vsel %vm1261_vm9, %v4670_v50, %v1258_v16  ;;  %v1295_v33 = vmul.f32 %v1252_v61, %v1103_v6  ;;  %2031 = vmatpush.bf16.msrb.mxu3 %v3709_v9  ;;  %v3689_v9 = vor.u32 %v3835_v35, %v3688_v5 }
 0x193   : > { %v1296_v37 = vmul.f32 %v1262_v46, %v1104_v15  ;;  %v3834_v15 = vld [vmem:[%s5714_s10 + $0x54] sm:$0xf] }
 0x194   : > { %v1315_v30 = vmul.f32 %v4454_v43, %v1295_v33 }
 0x195   : > { %v1316_v40 = vmul.f32 %v4454_v43, %v1296_v37 }
 0x196   : > { %v3985_v14 = vpop.eup %3984  ;;  %v1335_v50 = vadd.f32 %v4467_v59, %v1315_v30 }
 0x197   : > { %v3987_v12 = vpop.eup %3986  ;;  %v1274_v17 = vmul.f32 %v3985_v14, %v1122_v56  ;;  %vm1280_vm11 = vweird.f32 %v3985_v14  ;;  %v1336_v18 = vadd.f32 %v4467_v59, %v1316_v40 }
 0x198   : > { %v1264_v19 = vmul.f32 %v3987_v12, %v1121_v52  ;;  %vm1270_vm13 = vweird.f32 %v3987_v12  ;;  %vm1281_vm14 = vmor %vm1279_vm10, %vm1280_vm11 }
 0x199   : > { %v1275_v24 = vmul.f32 %v3985_v14, %v1274_v17  ;;  %vm1271_vm15 = vmor %vm1269_vm12, %vm1270_vm13  ;;  %v1361_v42 = vpack.c.bf16 %v1336_v18, %v1335_v50  ;;  %v3832_v18 = vld [vmem:[%s5714_s10 + $0x44] sm:$0xf] }
 0x19a   : > { %v1265_v8 = vmul.f32 %v3987_v12, %v1264_v19  ;;  %v3698_v19 = vld [vmem:[%s5714_s10 + $0x68] sm:$0xf0] }
 0x19b   : > { %v1276_v41 = vmul.f32 0.5, %v1275_v24 }
 0x19c   : > { %v1266_v0 = vmul.f32 0.5, %v1265_v8  ;;  %v3690_v8 = vld [vmem:[%s5714_s10 + $0x58] sm:$0xf0] }
 0x19d   : > { %v1277_v3 = vsub.f32 1.5, %v1276_v41  ;;  %v3693_v33 = vor.u32 %v3834_v15, %v3690_v8 }
 0x19e   : > { %v1267_v58 = vsub.f32 1.5, %v1266_v0 }
 0x19f   : > { %v1278_v22 = vmul.f32 %v3985_v14, %v1277_v3 }
 0x1a0   : > { %v1268_v26 = vmul.f32 %v3987_v12, %v1267_v58 }
 0x1a1   : > { %v1282_v45 = vsel %vm1281_vm14, %v3985_v14, %v1278_v22  ;;  %v3682_v22 = vld [vmem:[%s5714_s10 + $0x48] sm:$0xf0] }
 0x1a2   : > { %1448 = vmatmul.bf16.gmra.mxu1 %v1360_v23  ;;  %v1272_v2 = vsel %vm1271_vm15, %v3987_v12, %v1268_v26  ;;  %v1298_v48 = vmul.f32 %v1282_v45, %v1106_v36  ;;  %v3701_v23 = vor.u32 %v3836_v7, %v3698_v19  ;;  %v3685_v26 = vor.u32 %v3832_v18, %v3682_v22 }
 0x1a3   : > { %v1297_v49 = vmul.f32 %v1272_v2, %v1105_v44  ;;  %v3830_v44 = vld [vmem:[%s5714_s10 + $0x34] sm:$0xf] }
 0x1a4   : > { %v1318_v10 = vmul.f32 %v4454_v43, %v1298_v48  ;;  %2032 = vmatpush.bf16.msrb.mxu3 %v3701_v23  ;;  %v3674_v48 = vld [vmem:[%s5714_s10 + $0x38] sm:$0xf0] }
 0x1a5   : > { %v1317_v34 = vmul.f32 %v4454_v43, %v1297_v49  ;;  %v3677_v49 = vor.u32 %v3830_v44, %v3674_v48  ;;  %v3656_v44 = vld [vmem:[%s5714_s10 + $0x10] sm:$0xf] }
 0x1a6   : > { %v1338_v62 = vadd.f32 %v4467_v59, %v1318_v10 }
 0x1a7   : > { %v1337_v21 = vadd.f32 %v4467_v59, %v1317_v34 }
 0x1a8   : > { %2033 = vmatpush.bf16.msrb.mxu3 %v3693_v33 }
 0x1a9   : > { %v1362_v38 = vpack.c.bf16 %v1338_v62, %v1337_v21 }
 0x1ac   : > { %2034 = vmatpush.bf16.msrb.mxu3 %v3685_v26 }
 0x1b0   : > { %2035 = vmatpush.bf16.msrb.mxu3 %v3677_v49 }
 0x1b2   : > { %1453 = vmatmul.bf16.gmra.mxu1 %v1361_v42 }
 0x1c2   : > { %1458 = vmatmul.bf16.gmra.mxu1 %v1362_v38 }
 0x1d1   : > { %v1424_v25 = vpop.f32.mrf.mxu0 }
 0x1d2   : > { %v1425_v27 = vadd.f32 %v4732_v31, %v1424_v25 }
 0x1d4   : > { %v4735_v11 = vmax.f32 %v1425_v27, 0.0 }
 0x1d6   : > { %1480 = vadd.xlane.f32.xlu2 %v4735_v11  ;;  %v1528_v43 = vmul.f32 %v4735_v11, %v4735_v11 }
 0x1d8   : > { %1544 = vadd.xlane.f32.xlu1 %v1528_v43 }
 0x1d9   : > { %v1426_v32 = vpop.f32.mrf.mxu0 }
 0x1da   : > { %v1427_v59 = vadd.f32 %v4732_v31, %v1426_v32 }
 0x1dc   : > { %v4741_v39 = vmax.f32 %v1427_v59, 0.0  ;;  %v3704_v59 = vld [vmem:[%s5714_s10 + $0x70] sm:$0xf] }
 0x1de   : > { %1482 = vadd.xlane.f32.xlu0 %v4741_v39  ;;  %v1529_v56 = vmul.f32 %v4741_v39, %v4741_v39 }
 0x1e0   : > { %1546 = vadd.xlane.f32.xlu2 %v1529_v56  ;;  %v3839_v56 = vld [vmem:[%s5714_s10 + $0x74] sm:$0xf0] }
 0x1e2   : > { %v1429_v28 = vpop.f32.mrf.mxu0 }
 0x1e3   : > { %v1430_v51 = vadd.f32 %v4732_v31, %v1429_v28  ;;  %v3705_v28 = vor.u32 %v3839_v56, %v3704_v59  ;;  %v3648_v59 = vld [vmem:[%s5714_s10] sm:$0xf] }
 0x1e5   : > { %v4747_v57 = vmax.f32 %v1430_v51, 0.0  ;;  %1982 = vmatpush.bf16.msra.mxu0 %v3705_v28  ;;  %3927 = vmatpush.bf16.msra.mxu2 %v3705_v28 }
 0x1e7   : > { %1484 = vadd.xlane.f32.xlu0 %v4747_v57  ;;  %v1530_v53 = vmul.f32 %v4747_v57, %v4747_v57 }
 0x1e9   : > { %1548 = vadd.xlane.f32.xlu2 %v1530_v53 }
 0x1ea   : > { %v1431_v20 = vpop.f32.mrf.mxu0 }
 0x1eb   : > { %v1432_v52 = vadd.f32 %v4732_v31, %v1431_v20  ;;  %v3696_v20 = vld [vmem:[%s5714_s10 + $0x60] sm:$0xf] }
 0x1ed   : > { %v4753_v54 = vmax.f32 %v1432_v52, 0.0  ;;  %v3837_v52 = vld [vmem:[%s5714_s10 + $0x64] sm:$0xf0] }
 0x1ef   : > { %1486 = vadd.xlane.f32.xlu1 %v4753_v54  ;;  %v1531_v1 = vmul.f32 %v4753_v54, %v4753_v54  ;;  %v1434_v63 = vpop.f32.mrf.mxu1 }
 0x1f0   : > { %v1435_v4 = vadd.f32 %v4732_v31, %v1434_v63 }
 0x1f1   : > { %1550 = vadd.xlane.f32.xlu0 %v1531_v1  ;;  %v3697_v1 = vor.u32 %v3837_v52, %v3696_v20 }
 0x1f2   : > { %v4759_v29 = vmax.f32 %v1435_v4, 0.0 }
 0x1f3   : > { %1983 = vmatpush.bf16.msra.mxu0 %v3697_v1  ;;  %3928 = vmatpush.bf16.msra.mxu2 %v3697_v1 }
 0x1f4   : > { %v1532_v13 = vmul.f32 %v4759_v29, %v4759_v29 }
 0x1f7   : > { %1488 = vadd.xlane.f32.xlu1 %v4759_v29  ;;  %v1436_v14 = vpop.f32.mrf.mxu1  ;;  %1984 = vmatpush.bf16.msra.mxu0 %v3689_v9 }
 0x1f8   : > { %v1437_v55 = vadd.f32 %v4732_v31, %v1436_v14  ;;  %3929 = vmatpush.bf16.msra.mxu2 %v3689_v9 }
 0x1f9   : > { %1552 = vadd.xlane.f32.xlu0 %v1532_v13 }
 0x1fa   : > { %v4771_v12 = vmax.f32 %v1437_v55, 0.0  ;;  %v3680_v55 = vld [vmem:[%s5714_s10 + $0x40] sm:$0xf] }
 0x1fc   : > { %1490 = vadd.xlane.f32.xlu2 %v4771_v12  ;;  %v1533_v47 = vmul.f32 %v4771_v12, %v4771_v12 }
 0x1ff   : > { %1554 = vadd.xlane.f32.xlu1 %v1533_v47  ;;  %v1439_v60 = vpop.f32.mrf.mxu1  ;;  %v3833_v47 = vld [vmem:[%s5714_s10 + $0x44] sm:$0xf0] }
 0x200   : > { %v1440_v16 = vadd.f32 %v4732_v31, %v1439_v60  ;;  %v3828_v60 = vld [vmem:[%s5714_s10 + $0x24] sm:$0xf]  ;;  %v3681_v7 = vor.u32 %v3833_v47, %v3680_v55 }
 0x202   : > { %v4777_v17 = vmax.f32 %v1440_v16, 0.0  ;;  %v3666_v16 = vld [vmem:[%s5714_s10 + $0x28] sm:$0xf0]  ;;  %1985 = vmatpush.bf16.msra.mxu0 %v3681_v7  ;;  %3930 = vmatpush.bf16.msra.mxu2 %v3681_v7 }
 0x203   : > { %v3669_v23 = vor.u32 %v3828_v60, %v3666_v16 }
 0x204   : > { %1492 = vadd.xlane.f32.xlu2 %v4777_v17  ;;  %v1534_v24 = vmul.f32 %v4777_v17, %v4777_v17 }
 0x205   : > { %2036 = vmatpush.bf16.msrb.mxu3 %v3669_v23 }
 0x207   : > { %1556 = vadd.xlane.f32.xlu1 %v1534_v24  ;;  %v1441_v61 = vpop.f32.mrf.mxu1 }
 0x208   : > { %v1442_v46 = vadd.f32 %v4732_v31, %v1441_v61  ;;  %v3672_v61 = vld [vmem:[%s5714_s10 + $0x30] sm:$0xf] }
 0x20a   : > { %v4789_v6 = vmax.f32 %v1442_v46, 0.0  ;;  %v3831_v46 = vld [vmem:[%s5714_s10 + $0x34] sm:$0xf0] }
 0x20b   : > { %v3673_v15 = vor.u32 %v3831_v46, %v3672_v61 }
 0x20c   : > { %1494 = vadd.xlane.f32.xlu0 %v4789_v6  ;;  %v1535_v37 = vmul.f32 %v4789_v6, %v4789_v6 }
 0x20d   : > { %1986 = vmatpush.bf16.msra.mxu0 %v3673_v15  ;;  %3931 = vmatpush.bf16.msra.mxu2 %v3673_v15 }
 0x20e   : > { %1558 = vadd.xlane.f32.xlu2 %v1535_v37 }
 0x20f   : > { %v1444_v41 = vpop.f32.mrf.mxu1 }
 0x210   : > { %v1445_v0 = vadd.f32 %v4732_v31, %v1444_v41 }
 0x212   : > { %v4801_v30 = vmax.f32 %v1445_v0, 0.0 }
 0x214   : > { %1496 = vadd.xlane.f32.xlu0 %v4801_v30  ;;  %v1536_v40 = vmul.f32 %v4801_v30, %v4801_v30 }
 0x216   : > { %1560 = vadd.xlane.f32.xlu2 %v1536_v40  ;;  %v3664_v40 = vld [vmem:[%s5714_s10 + $0x20] sm:$0xf] }
 0x217   : > { %v1446_v3 = vpop.f32.mrf.mxu1 }
 0x218   : > { %v1447_v58 = vadd.f32 %v4732_v31, %v1446_v3  ;;  %v3829_v3 = vld [vmem:[%s5714_s10 + $0x24] sm:$0xf0] }
 0x219   : > { %v3665_v22 = vor.u32 %v3829_v3, %v3664_v40 }
 0x21a   : > { %v4807_v50 = vmax.f32 %v1447_v58, 0.0 }
 0x21b   : > { %1987 = vmatpush.bf16.msra.mxu0 %v3665_v22  ;;  %3932 = vmatpush.bf16.msra.mxu2 %v3665_v22 }
 0x21c   : > { %1498 = vadd.xlane.f32.xlu1 %v4807_v50  ;;  %v1537_v42 = vmul.f32 %v4807_v50, %v4807_v50 }
 0x21e   : > { %1562 = vadd.xlane.f32.xlu0 %v1537_v42 }
 0x21f   : > { %v1449_v45 = vpop.f32.mrf.mxu1 }
 0x220   : > { %v1450_v36 = vadd.f32 %v4732_v31, %v1449_v45  ;;  %v3826_v45 = vld [vmem:[%s5714_s10 + $0x14] sm:$0xf] }
 0x222   : > { %v4819_v2 = vmax.f32 %v1450_v36, 0.0  ;;  %v3658_v36 = vld [vmem:[%s5714_s10 + $0x18] sm:$0xf0] }
 0x223   : > { %v3661_v49 = vor.u32 %v3826_v45, %v3658_v36 }
 0x224   : > { %1500 = vadd.xlane.f32.xlu1 %v4819_v2  ;;  %v1538_v10 = vmul.f32 %v4819_v2, %v4819_v2 }
 0x225   : > { %2037 = vmatpush.bf16.msrb.mxu3 %v3661_v49 }
 0x226   : > { %1564 = vadd.xlane.f32.xlu0 %v1538_v10  ;;  %v3827_v10 = vld [vmem:[%s5714_s10 + $0x14] sm:$0xf0] }
 0x227   : > { %v1451_v34 = vpop.f32.mrf.mxu1 }
 0x228   : > { %v1452_v62 = vadd.f32 %v4732_v31, %v1451_v34 }
 0x22a   : > { %v4831_v21 = vmax.f32 %v1452_v62, 0.0  ;;  %v3657_v62 = vor.u32 %v3827_v10, %v3656_v44  ;;  %v4947_v44 = vld [vmem:[%s5759_s2] ss:$0 sm:$0xff]  ;;  %s5116_s2 = scalar_lea.vmem %s5760_s28, %s4278_s27 }
 0x22c   : > { %1502 = vadd.xlane.f32.xlu2 %v4831_v21  ;;  %v1539_v38 = vmul.f32 %v4831_v21, %v4831_v21  ;;  %1988 = vmatpush.bf16.msra.mxu0 %v3657_v62 }
 0x22d   : > { %3933 = vmatpush.bf16.msra.mxu2 %v3657_v62 }
 0x22e   : > { %1566 = vadd.xlane.f32.xlu1 %v1539_v38 }
 0x22f   : > { %v1454_v25 = vpop.f32.mrf.mxu1 }
 0x230   : > { %v1455_v27 = vadd.f32 %v4732_v31, %v1454_v25 }
 0x232   : > { %v4837_v43 = vmax.f32 %v1455_v27, 0.0  ;;  %v3824_v27 = vld [vmem:[%s5714_s10 + $0x4] sm:$0xf] }
 0x234   : > { %1504 = vadd.xlane.f32.xlu2 %v4837_v43  ;;  %v1540_v32 = vmul.f32 %v4837_v43, %v4837_v43 }
 0x236   : > { %1568 = vadd.xlane.f32.xlu1 %v1540_v32  ;;  %v3650_v32 = vld [vmem:[%s5714_s10 + $0x8] sm:$0xf0] }
 0x237   : > { %v1456_v51 = vpop.f32.mrf.mxu1 }
 0x238   : > { %v1457_v53 = vadd.f32 %v4732_v31, %v1456_v51  ;;  %v3653_v51 = vor.u32 %v3824_v27, %v3650_v32 }
 0x23a   : > { %v4855_v63 = vmax.f32 %v1457_v53, 0.0  ;;  %v3825_v53 = vld [vmem:[%s5714_s10 + $0x4] sm:$0xf0]  ;;  %2038 = vmatpush.bf16.msrb.mxu3 %v3653_v51 }
 0x23b   : > { %v3649_v20 = vor.u32 %v3825_v53, %v3648_v59  ;;  %v4957_v59 = vld [vmem:[%s5713_s9] ss:$0 sm:$0xff] }
 0x23c   : > { %1506 = vadd.xlane.f32.xlu0 %v4855_v63  ;;  %v1541_v4 = vmul.f32 %v4855_v63, %v4855_v63 }
 0x23d   : > { %1989 = vmatpush.bf16.msra.mxu0 %v3649_v20  ;;  %3934 = vmatpush.bf16.msra.mxu2 %v3649_v20 }
 0x23e   : > { %1570 = vadd.xlane.f32.xlu2 %v1541_v4 }
 0x23f   : > { %v1459_v13 = vpop.f32.mrf.mxu1 }
 0x240   : > { %v1460_v14 = vadd.f32 %v4732_v31, %v1459_v13 }
 0x242   : > { %v4879_v19 = vmax.f32 %v1460_v14, 0.0 }
 0x244   : > { %1508 = vadd.xlane.f32.xlu0 %v4879_v19  ;;  %v1542_v24 = vmul.f32 %v4879_v19, %v4879_v19 }
 0x246   : > { %1572 = vadd.xlane.f32.xlu2 %v1542_v24 }
 0x247   : > { %v1461_v33 = vpop.f32.mrf.mxu1 }
 0x248   : > { %v1462_v41 = vadd.f32 %v4732_v31, %v1461_v33 }
 0x249   : > { %v1481_v8 = vpop.xlane.xlu2 %1480 }
 0x24a   : > { %v4890_v37 = vmul.f32 0.03125, %v1481_v8  ;;  %v4901_v26 = vmax.f32 %v1462_v41, 0.0 }
 0x24b   : > { %v1545_v0 = vpop.xlane.xlu1 %1544 }
 0x24c   : > { %v1592_v58 = vmul.f32 %v4890_v37, %v4890_v37  ;;  %v1576_v18 = vmul.f32 0.03125, %v1545_v0  ;;  %1510 = vadd.xlane.f32.xlu1 %v4901_v26  ;;  %v1543_v31 = vmul.f32 %v4901_v26, %v4901_v26 }
 0x24e   : > { %v1608_v42 = vsub.f32 %v1576_v18, %v1592_v58  ;;  %1574 = vadd.xlane.f32.xlu0 %v1543_v31  ;;  %v1624_v18 = vsub.f32 %v4735_v11, %v4890_v37 }
 0x250   : > { %v1640_v48 = vadd.f32 1e-05, %v1608_v42 }
 0x251   : > { %v1483_v34 = vpop.xlane.xlu0 %1482 }
 0x252   : > { %3988 = vrsqrt.f32 %v1640_v48  ;;  %v4918_v38 = vmul.f32 0.03125, %v1483_v34  ;;  %vm1662_vm1 = vweird.f32 %v1640_v48 }
 0x253   : > { %v1547_v25 = vpop.xlane.xlu2 %1546 }
 0x254   : > { %v1593_v56 = vmul.f32 %v4918_v38, %v4918_v38  ;;  %v1577_v28 = vmul.f32 0.03125, %v1547_v25  ;;  %v1625_v10 = vsub.f32 %v4741_v39, %v4918_v38 }
 0x256   : > { %v1609_v52 = vsub.f32 %v1577_v28, %v1593_v56 }
 0x258   : > { %v3989_v1 = vpop.eup %3988  ;;  %v1641_v4 = vadd.f32 1e-05, %v1609_v52 }
 0x259   : > { %v1657_v5 = vmul.f32 %v3989_v1, %v1640_v48  ;;  %vm1663_vm0 = vweird.f32 %v3989_v1 }
 0x25a   : > { %v1485_v35 = vpop.xlane.xlu0 %1484  ;;  %3990 = vrsqrt.f32 %v1641_v4  ;;  %vm1664_vm2 = vmor %vm1662_vm1, %vm1663_vm0  ;;  %vm1672_vm4 = vweird.f32 %v1641_v4 }
 0x25b   : > { %v4934_v9 = vmul.f32 0.03125, %v1485_v35  ;;  %v1658_v13 = vmul.f32 %v3989_v1, %v1657_v5 }
 0x25c   : > { %v1549_v14 = vpop.xlane.xlu2 %1548 }
 0x25d   : > { %v1594_v55 = vmul.f32 %v4934_v9, %v4934_v9  ;;  %v1578_v47 = vmul.f32 0.03125, %v1549_v14  ;;  %v1659_v60 = vmul.f32 0.5, %v1658_v13 }
 0x25f   : > { %v1610_v16 = vsub.f32 %v1578_v47, %v1594_v55  ;;  %v1660_v7 = vsub.f32 1.5, %v1659_v60 }
 0x260   : > { %v3991_v23 = vpop.eup %3990 }
 0x261   : > { %v1642_v24 = vadd.f32 1e-05, %v1610_v16  ;;  %v1661_v61 = vmul.f32 %v3989_v1, %v1660_v7  ;;  %v1667_v46 = vmul.f32 %v3991_v23, %v1641_v4  ;;  %vm1673_vm3 = vweird.f32 %v3991_v23 }
 0x262   : > { %v1487_v15 = vpop.xlane.xlu1 %1486  ;;  %vm1674_vm5 = vmor %vm1672_vm4, %vm1673_vm3 }
 0x263   : > { %3992 = vrsqrt.f32 %v1642_v24  ;;  %v4938_v8 = vmul.f32 0.03125, %v1487_v15  ;;  %v1668_v33 = vmul.f32 %v3991_v23, %v1667_v46  ;;  %v1665_v3 = vsel %vm1664_vm2, %v3989_v1, %v1661_v61 }
 0x264   : > { %v1551_v41 = vpop.xlane.xlu0 %1550  ;;  %v1816_v45 = vmul.f32 %v1665_v3, %v1624_v18  ;;  %vm1682_vm7 = vweird.f32 %v1642_v24  ;;  %v1626_v46 = vsub.f32 %v4747_v57, %v4934_v9 }
 0x265   : > { %v1595_v0 = vmul.f32 %v4938_v8, %v4938_v8  ;;  %v1579_v40 = vmul.f32 0.03125, %v1551_v41  ;;  %v1669_v58 = vmul.f32 0.5, %v1668_v33  ;;  %v1627_v3 = vsub.f32 %v4753_v54, %v4938_v8 }
 0x266   : > { %v1836_v32 = vmul.f32 %v4947_v44, %v1816_v45 }
 0x267   : > { %v1611_v22 = vsub.f32 %v1579_v40, %v1595_v0  ;;  %v1670_v42 = vsub.f32 1.5, %v1669_v58 }
 0x268   : > { %v1856_v52 = vadd.f32 %v4957_v59, %v1836_v32 }
 0x269   : > { %v3993_v31 = vpop.eup %3992  ;;  %v1643_v36 = vadd.f32 1e-05, %v1611_v22  ;;  %v1671_v48 = vmul.f32 %v3991_v23, %v1670_v42 }
 0x26a   : > { %v1677_v49 = vmul.f32 %v3993_v31, %v1642_v24  ;;  %v1489_v11 = vpop.xlane.xlu1 %1488  ;;  %vm1683_vm6 = vweird.f32 %v3993_v31 }
 0x26b   : > { %3994 = vrsqrt.f32 %v1643_v36  ;;  %v1675_v37 = vsel %vm1674_vm5, %v3991_v23, %v1671_v48  ;;  %v4951_v62 = vmul.f32 0.03125, %v1489_v11  ;;  %vm1684_vm8 = vmor %vm1682_vm7, %vm1683_vm6  ;;  %vm1692_vm10 = vweird.f32 %v1643_v36 }
 0x26c   : > { %v1678_v34 = vmul.f32 %v3993_v31, %v1677_v49  ;;  %v1817_v25 = vmul.f32 %v1675_v37, %v1625_v10  ;;  %v1553_v27 = vpop.xlane.xlu0 %1552 }
 0x26d   : > { %v1596_v39 = vmul.f32 %v4951_v62, %v4951_v62  ;;  %v1580_v38 = vmul.f32 0.03125, %v1553_v27 }
 0x26e   : > { %v1679_v56 = vmul.f32 0.5, %v1678_v34  ;;  %v1837_v28 = vmul.f32 %v4947_v44, %v1817_v25 }
 0x26f   : > { %v1612_v53 = vsub.f32 %v1580_v38, %v1596_v39  ;;  %v1491_v13 = vpop.xlane.xlu2 %1490 }
 0x270   : > { %v1680_v51 = vsub.f32 1.5, %v1679_v56  ;;  %v1857_v1 = vadd.f32 %v4957_v59, %v1837_v28  ;;  %v4964_v47 = vmul.f32 0.03125, %v1491_v13 }
 0x271   : > { %v3995_v20 = vpop.eup %3994  ;;  %v1644_v35 = vadd.f32 1e-05, %v1612_v53 }
 0x272   : > { %v1681_v4 = vmul.f32 %v3993_v31, %v1680_v51  ;;  %v1687_v5 = vmul.f32 %v3995_v20, %v1643_v36  ;;  %v1888_v14 = vpack.c.bf16 %v1857_v1, %v1856_v52  ;;  %v1555_v60 = vpop.xlane.xlu1 %1554  ;;  %v1597_v7 = vmul.f32 %v4964_v47, %v4964_v47 }
 0x273   : > { %3996 = vrsqrt.f32 %v1644_v35  ;;  %v1581_v23 = vmul.f32 0.03125, %v1555_v60  ;;  %vm1693_vm9 = vweird.f32 %v3995_v20  ;;  %vm1702_vm13 = vweird.f32 %v1644_v35 }
 0x274   : > { %v1688_v55 = vmul.f32 %v3995_v20, %v1687_v5  ;;  %1990 = vmatmul.bf16.vlgmr.msra.gmra.mxu0 %v1888_v14  ;;  %2039 = vmatmul.bf16.vlgmr.msrb.gmra.mxu3 %v1888_v14  ;;  %v1685_v61 = vsel %vm1684_vm8, %v3993_v31, %v1681_v4  ;;  %vm1694_vm11 = vmor %vm1692_vm10, %vm1693_vm9  ;;  %v1628_v4 = vsub.f32 %v4759_v29, %v4951_v62 }
 0x275   : > { %v1613_v24 = vsub.f32 %v1581_v23, %v1597_v7  ;;  %v1818_v33 = vmul.f32 %v1685_v61, %v1626_v46  ;;  %v1629_v23 = vsub.f32 %v4771_v12, %v4964_v47 }
 0x276   : > { %v1689_v16 = vmul.f32 0.5, %v1688_v55 }
 0x277   : > { %v1645_v40 = vadd.f32 1e-05, %v1613_v24  ;;  %v1493_v18 = vpop.xlane.xlu2 %1492  ;;  %v1838_v45 = vmul.f32 %v4947_v44, %v1818_v33 }
 0x278   : > { %v1690_v15 = vsub.f32 1.5, %v1689_v16  ;;  %v4972_v22 = vmul.f32 0.03125, %v1493_v18 }
 0x279   : > { %v3997_v41 = vpop.eup %3996  ;;  %3998 = vrsqrt.f32 %v1645_v40  ;;  %v1858_v11 = vadd.f32 %v4957_v59, %v1838_v45  ;;  %vm1712_vm0 = vweird.f32 %v1645_v40 }
 0x27a   : > { %v1691_v0 = vmul.f32 %v3995_v20, %v1690_v15  ;;  %v1697_v58 = vmul.f32 %v3997_v41, %v1644_v35  ;;  %v1557_v57 = vpop.xlane.xlu1 %1556  ;;  %v1598_v48 = vmul.f32 %v4972_v22, %v4972_v22  ;;  %vm1703_vm12 = vweird.f32 %v3997_v41 }
 0x27b   : > { %v1582_v36 = vmul.f32 0.03125, %v1557_v57  ;;  %vm1704_vm14 = vmor %vm1702_vm13, %vm1703_vm12 }
 0x27c   : > { %v1695_v42 = vsel %vm1694_vm11, %v3995_v20, %v1691_v0  ;;  %v1698_v31 = vmul.f32 %v3997_v41, %v1697_v58 }
 0x27d   : > { %v1819_v9 = vmul.f32 %v1695_v42, %v1627_v3  ;;  %v1614_v54 = vsub.f32 %v1582_v36, %v1598_v48 }
 0x27e   : > { %v1699_v49 = vmul.f32 0.5, %v1698_v31 }
 0x27f   : > { %v1839_v10 = vmul.f32 %v4947_v44, %v1819_v9  ;;  %v3999_v34 = vpop.eup %3998  ;;  %v1646_v25 = vadd.f32 1e-05, %v1614_v54  ;;  %v1495_v56 = vpop.xlane.xlu0 %1494 }
 0x280   : > { %v1700_v8 = vsub.f32 1.5, %v1699_v49  ;;  %v1707_v32 = vmul.f32 %v3999_v34, %v1645_v40  ;;  %v4980_v38 = vmul.f32 0.03125, %v1495_v56  ;;  %vm1713_vm15 = vweird.f32 %v3999_v34 }
 0x281   : > { %v1859_v37 = vadd.f32 %v4957_v59, %v1839_v10  ;;  %4000 = vrsqrt.f32 %v1646_v25  ;;  %v1559_v51 = vpop.xlane.xlu2 %1558  ;;  %vm1714_vm1 = vmor %vm1712_vm0, %vm1713_vm15  ;;  %vm1722_vm3 = vweird.f32 %v1646_v25 }
 0x282   : > { %v1701_v27 = vmul.f32 %v3997_v41, %v1700_v8  ;;  %v1708_v28 = vmul.f32 %v3999_v34, %v1707_v32  ;;  %v1599_v53 = vmul.f32 %v4980_v38, %v4980_v38  ;;  %v1583_v20 = vmul.f32 0.03125, %v1559_v51 }
 0x283   : > { %v1889_v39 = vpack.c.bf16 %v1859_v37, %v1858_v11  ;;  %v1630_v37 = vsub.f32 %v4777_v17, %v4972_v22 }
 0x284   : > { %v1709_v52 = vmul.f32 0.5, %v1708_v28  ;;  %v1705_v1 = vsel %vm1704_vm14, %v3997_v41, %v1701_v27  ;;  %v1615_v5 = vsub.f32 %v1583_v20, %v1599_v53  ;;  %v1631_v53 = vsub.f32 %v4789_v6, %v4980_v38 }
 0x285   : > { %1995 = vmatmul.bf16.gmra.mxu0 %v1889_v39  ;;  %2044 = vmatmul.bf16.gmra.mxu3 %v1889_v39  ;;  %v1820_v35 = vmul.f32 %v1705_v1, %v1628_v4 }
 0x286   : > { %v1710_v13 = vsub.f32 1.5, %v1709_v52  ;;  %v1647_v55 = vadd.f32 1e-05, %v1615_v5 }
 0x287   : > { %v4001_v14 = vpop.eup %4000  ;;  %v1497_v7 = vpop.xlane.xlu0 %1496  ;;  %v1840_v41 = vmul.f32 %v4947_v44, %v1820_v35 }
 0x288   : > { %v1711_v60 = vmul.f32 %v3999_v34, %v1710_v13  ;;  %v1717_v16 = vmul.f32 %v4001_v14, %v1646_v25  ;;  %4002 = vrsqrt.f32 %v1647_v55  ;;  %v4988_v61 = vmul.f32 0.03125, %v1497_v7 }
 0x289   : > { %v1561_v15 = vpop.xlane.xlu2 %1560  ;;  %v1860_v18 = vadd.f32 %v4957_v59, %v1840_v41  ;;  %vm1723_vm2 = vweird.f32 %v4001_v14  ;;  %vm1732_vm6 = vweird.f32 %v1647_v55 }
 0x28a   : > { %v1718_v46 = vmul.f32 %v4001_v14, %v1717_v16  ;;  %v1715_v29 = vsel %vm1714_vm1, %v3999_v34, %v1711_v60  ;;  %v1600_v62 = vmul.f32 %v4988_v61, %v4988_v61  ;;  %v1584_v24 = vmul.f32 0.03125, %v1561_v15  ;;  %vm1724_vm4 = vmor %vm1722_vm3, %vm1723_vm2 }
 0x28b   : > { %v1821_v33 = vmul.f32 %v1715_v29, %v1629_v23 }
 0x28c   : > { %v1719_v0 = vmul.f32 0.5, %v1718_v46  ;;  %v1616_v40 = vsub.f32 %v1584_v24, %v1600_v62 }
 0x28d   : > { %v1841_v3 = vmul.f32 %v4947_v44, %v1821_v33 }
 0x28e   : > { %v1720_v58 = vsub.f32 1.5, %v1719_v0  ;;  %v4003_v12 = vpop.eup %4002  ;;  %v1648_v47 = vadd.f32 1e-05, %v1616_v40 }
 0x28f   : > { %v1861_v42 = vadd.f32 %v4957_v59, %v1841_v3  ;;  %v1727_v57 = vmul.f32 %v4003_v12, %v1647_v55  ;;  %v1499_v9 = vpop.xlane.xlu1 %1498  ;;  %vm1733_vm5 = vweird.f32 %v4003_v12 }
 0x290   : > { %v1721_v31 = vmul.f32 %v4001_v14, %v1720_v58  ;;  %4004 = vrsqrt.f32 %v1648_v47  ;;  %v4996_v45 = vmul.f32 0.03125, %v1499_v9  ;;  %vm1734_vm7 = vmor %vm1732_vm6, %vm1733_vm5  ;;  %vm1742_vm9 = vweird.f32 %v1648_v47 }
 0x291   : > { %v1890_v48 = vpack.c.bf16 %v1861_v42, %v1860_v18  ;;  %v1728_v36 = vmul.f32 %v4003_v12, %v1727_v57  ;;  %v1563_v49 = vpop.xlane.xlu0 %1562  ;;  %v1632_v58 = vsub.f32 %v4801_v30, %v4988_v61 }
 0x292   : > { %v1601_v10 = vmul.f32 %v4996_v45, %v4996_v45  ;;  %v1585_v54 = vmul.f32 0.03125, %v1563_v49  ;;  %v1725_v11 = vsel %vm1724_vm4, %v4001_v14, %v1721_v31 }
 0x293   : > { %2000 = vmatmul.bf16.vlgmr.msra.gmra.mxu2 %v1890_v48  ;;  %v1729_v8 = vmul.f32 0.5, %v1728_v36  ;;  %v1822_v25 = vmul.f32 %v1725_v11, %v1630_v37  ;;  %v1633_v36 = vsub.f32 %v4807_v50, %v4996_v45 }
 0x294   : > { %v1617_v34 = vsub.f32 %v1585_v54, %v1601_v10 }
 0x295   : > { %2049 = vmatmul.bf16.gmra.mxu3 %v1890_v48  ;;  %v1730_v27 = vsub.f32 1.5, %v1729_v8  ;;  %v1842_v13 = vmul.f32 %v4947_v44, %v1822_v25 }
 0x296   : > { %v4005_v32 = vpop.eup %4004  ;;  %v1649_v56 = vadd.f32 1e-05, %v1617_v34 }
 0x297   : > { %v1731_v39 = vmul.f32 %v4003_v12, %v1730_v27  ;;  %v1737_v28 = vmul.f32 %v4005_v32, %v1648_v47  ;;  %v1501_v51 = vpop.xlane.xlu1 %1500  ;;  %v1862_v16 = vadd.f32 %v4957_v59, %v1842_v13  ;;  %vm1743_vm8 = vweird.f32 %v4005_v32 }
 0x298   : > { %4006 = vrsqrt.f32 %v1649_v56  ;;  %v5004_v20 = vmul.f32 0.03125, %v1501_v51  ;;  %vm1744_vm10 = vmor %vm1742_vm9, %vm1743_vm8  ;;  %vm1752_vm12 = vweird.f32 %v1649_v56 }
 0x299   : > { %v1738_v52 = vmul.f32 %v4005_v32, %v1737_v28  ;;  %v1565_v1 = vpop.xlane.xlu0 %1564  ;;  %v1735_v17 = vsel %vm1734_vm7, %v4003_v12, %v1731_v39 }
 0x29a   : > { %v1602_v22 = vmul.f32 %v5004_v20, %v5004_v20  ;;  %v1586_v4 = vmul.f32 0.03125, %v1565_v1  ;;  %v1823_v5 = vmul.f32 %v1735_v17, %v1631_v53 }
 0x29b   : > { %v1739_v14 = vmul.f32 0.5, %v1738_v52 }
 0x29c   : > { %v1618_v55 = vsub.f32 %v1586_v4, %v1602_v22  ;;  %v1843_v35 = vmul.f32 %v4947_v44, %v1823_v5 }
 0x29d   : > { %v1740_v60 = vsub.f32 1.5, %v1739_v14 }
 0x29e   : > { %v4007_v6 = vpop.eup %4006  ;;  %v1650_v38 = vadd.f32 1e-05, %v1618_v55  ;;  %v1863_v7 = vadd.f32 %v4957_v59, %v1843_v35  ;;  %v1634_v55 = vsub.f32 %v4819_v2, %v5004_v20 }
 0x29f   : > { %v1741_v23 = vmul.f32 %v4005_v32, %v1740_v60  ;;  %v1747_v46 = vmul.f32 %v4007_v6, %v1649_v56  ;;  %v1503_v15 = vpop.xlane.xlu2 %1502  ;;  %vm1753_vm11 = vweird.f32 %v4007_v6 }
 0x2a0   : > { %4008 = vrsqrt.f32 %v1650_v38  ;;  %v5012_v29 = vmul.f32 0.03125, %v1503_v15  ;;  %v1891_v62 = vpack.c.bf16 %v1863_v7, %v1862_v16  ;;  %vm1754_vm13 = vmor %vm1752_vm12, %vm1753_vm11  ;;  %vm1762_vm15 = vweird.f32 %v1650_v38 }
 0x2a1   : > { %v1748_v24 = vmul.f32 %v4007_v6, %v1747_v46  ;;  %v1567_v33 = vpop.xlane.xlu1 %1566  ;;  %v1745_v3 = vsel %vm1744_vm10, %v4005_v32, %v1741_v23 }
 0x2a2   : > { %v1603_v41 = vmul.f32 %v5012_v29, %v5012_v29  ;;  %v1587_v0 = vmul.f32 0.03125, %v1567_v33  ;;  %v1824_v47 = vmul.f32 %v1745_v3, %v1632_v58  ;;  %v1635_v15 = vsub.f32 %v4831_v21, %v5012_v29 }
 0x2a3   : > { %2005 = vmatmul.bf16.gmra.mxu2 %v1891_v62  ;;  %v1749_v40 = vmul.f32 0.5, %v1748_v24 }
 0x2a4   : > { %v1619_v12 = vsub.f32 %v1587_v0, %v1603_v41  ;;  %v1844_v37 = vmul.f32 %v4947_v44, %v1824_v47 }
 0x2a5   : > { %2054 = vmatmul.bf16.gmra.mxu3 %v1891_v62  ;;  %v1750_v18 = vsub.f32 1.5, %v1749_v40 }
 0x2a6   : > { %v4009_v42 = vpop.eup %4008  ;;  %v1651_v31 = vadd.f32 1e-05, %v1619_v12  ;;  %v1864_v25 = vadd.f32 %v4957_v59, %v1844_v37 }
 0x2a7   : > { %v1751_v57 = vmul.f32 %v4007_v6, %v1750_v18  ;;  %v1757_v9 = vmul.f32 %v4009_v42, %v1650_v38  ;;  %v1505_v48 = vpop.xlane.xlu2 %1504  ;;  %vm1763_vm14 = vweird.f32 %v4009_v42 }
 0x2a8   : > { %4010 = vrsqrt.f32 %v1651_v31  ;;  %v5020_v49 = vmul.f32 0.03125, %v1505_v48  ;;  %vm1764_vm0 = vmor %vm1762_vm15, %vm1763_vm14  ;;  %vm1772_vm2 = vweird.f32 %v1651_v31 }
 0x2a9   : > { %v1758_v10 = vmul.f32 %v4009_v42, %v1757_v9  ;;  %v1569_v54 = vpop.xlane.xlu1 %1568  ;;  %v1755_v30 = vsel %vm1754_vm13, %v4007_v6, %v1751_v57 }
 0x2aa   : > { %v1604_v61 = vmul.f32 %v5020_v49, %v5020_v49  ;;  %v1588_v8 = vmul.f32 0.03125, %v1569_v54  ;;  %v1825_v11 = vmul.f32 %v1755_v30, %v1633_v36  ;;  %v1636_v37 = vsub.f32 %v4837_v43, %v5020_v49 }
 0x2ab   : > { %v1759_v34 = vmul.f32 0.5, %v1758_v10 }
 0x2ac   : > { %v1620_v27 = vsub.f32 %v1588_v8, %v1604_v61  ;;  %v1845_v32 = vmul.f32 %v4947_v44, %v1825_v11 }
 0x2ad   : > { %v1760_v56 = vsub.f32 1.5, %v1759_v34 }
 0x2ae   : > { %v4011_v50 = vpop.eup %4010  ;;  %v1652_v45 = vadd.f32 1e-05, %v1620_v27  ;;  %v1865_v39 = vadd.f32 %v4957_v59, %v1845_v32 }
 0x2af   : > { %v1761_v28 = vmul.f32 %v4009_v42, %v1760_v56  ;;  %v1767_v51 = vmul.f32 %v4011_v50, %v1651_v31  ;;  %v1507_v53 = vpop.xlane.xlu0 %1506  ;;  %vm1773_vm1 = vweird.f32 %v4011_v50 }
 0x2b0   : > { %4012 = vrsqrt.f32 %v1652_v45  ;;  %v5028_v52 = vmul.f32 0.03125, %v1507_v53  ;;  %v1892_v1 = vpack.c.bf16 %v1865_v39, %v1864_v25  ;;  %vm1774_vm3 = vmor %vm1772_vm2, %vm1773_vm1  ;;  %vm1782_vm5 = vweird.f32 %v1652_v45 }
 0x2b1   : > { %v1768_v17 = vmul.f32 %v4011_v50, %v1767_v51  ;;  %v1571_v22 = vpop.xlane.xlu2 %1570  ;;  %v1765_v14 = vsel %vm1764_vm0, %v4009_v42, %v1761_v28 }
 0x2b2   : > { %v1605_v4 = vmul.f32 %v5028_v52, %v5028_v52  ;;  %v1589_v5 = vmul.f32 0.03125, %v1571_v22  ;;  %v1826_v38 = vmul.f32 %v1765_v14, %v1634_v55  ;;  %v1637_v39 = vsub.f32 %v4855_v63, %v5028_v52  ;;  %v3847_v55 = vld [vmem:[%s5716_s12 + $0x38] sm:$0xff] }
 0x2b3   : > { %2010 = vmatmul.bf16.gmra.mxu2 %v1892_v1  ;;  %v1769_v13 = vmul.f32 0.5, %v1768_v17  ;;  %2284 = vmatpush.bf16.msrb.mxu0 %v3847_v55  ;;  %v2115_v55 = vld [vmem:[%s5116_s2 + $0x18] sm:$0xff] }
 0x2b4   : > { %v1621_v35 = vsub.f32 %v1589_v5, %v1605_v4  ;;  %v1846_v40 = vmul.f32 %v4947_v44, %v1826_v38 }
 0x2b5   : > { %2059 = vmatmul.bf16.gmra.mxu3 %v1892_v1  ;;  %v1770_v60 = vsub.f32 1.5, %v1769_v13 }
 0x2b6   : > { %v4013_v6 = vpop.eup %4012  ;;  %v1653_v16 = vadd.f32 1e-05, %v1621_v35  ;;  %v1866_v42 = vadd.f32 %v4957_v59, %v1846_v40 }
 0x2b7   : > { %v1771_v7 = vmul.f32 %v4011_v50, %v1770_v60  ;;  %v1777_v23 = vmul.f32 %v4013_v6, %v1652_v45  ;;  %v1509_v46 = vpop.xlane.xlu0 %1508  ;;  %vm1783_vm4 = vweird.f32 %v4013_v6 }
 0x2b8   : > { %4014 = vrsqrt.f32 %v1653_v16  ;;  %v5036_v62 = vmul.f32 0.03125, %v1509_v46  ;;  %vm1784_vm6 = vmor %vm1782_vm5, %vm1783_vm4  ;;  %vm1792_vm8 = vweird.f32 %v1653_v16  ;;  %v3846_v46 = vld [vmem:[%s5716_s12 + $0x30] sm:$0xff] }
 0x2b9   : > { %v1778_v24 = vmul.f32 %v4013_v6, %v1777_v23  ;;  %v1573_v33 = vpop.xlane.xlu2 %1572  ;;  %v1775_v2 = vsel %vm1774_vm3, %v4011_v50, %v1771_v7  ;;  %2285 = vmatpush.bf16.msrb.mxu0 %v3846_v46 }
 0x2ba   : > { %v1606_v20 = vmul.f32 %v5036_v62, %v5036_v62  ;;  %v1590_v41 = vmul.f32 0.03125, %v1573_v33  ;;  %v1827_v0 = vmul.f32 %v1775_v2, %v1635_v15 }
 0x2bb   : > { %v1779_v3 = vmul.f32 0.5, %v1778_v24 }
 0x2bc   : > { %v1622_v58 = vsub.f32 %v1590_v41, %v1606_v20  ;;  %v1847_v12 = vmul.f32 %v4947_v44, %v1827_v0  ;;  %v3844_v41 = vld [vmem:[%s5716_s12 + $0x20] sm:$0xff] }
 0x2bd   : > { %v1780_v18 = vsub.f32 1.5, %v1779_v3  ;;  %v1896_v0 = vld [vmem:[%s5715_s11] sm:$0x3]  ;;  %v3841_v3 = vld [vmem:[%s5716_s12 + $0x8] sm:$0xff] }
 0x2be   : > { %v4015_v21 = vpop.eup %4014  ;;  %v1654_v29 = vadd.f32 1e-05, %v1622_v58  ;;  %v1867_v31 = vadd.f32 %v4957_v59, %v1847_v12  ;;  %v5080_v40 = vperm.slane %v1896_v0, 0 }
 0x2bf   : > { %v1781_v47 = vmul.f32 %v4013_v6, %v1780_v18  ;;  %v1787_v57 = vmul.f32 %v4015_v21, %v1653_v16  ;;  %v1511_v9 = vpop.xlane.xlu1 %1510  ;;  %vm1793_vm7 = vweird.f32 %v4015_v21  ;;  %v3840_v18 = vld [vmem:[%s5716_s12] sm:$0xff] }
 0x2c0   : > { %4016 = vrsqrt.f32 %v1654_v29  ;;  %v1527_v48 = vmul.f32 0.03125, %v1511_v9  ;;  %v1893_v36 = vpack.c.bf16 %v1867_v31, %v1866_v42  ;;  %vm1794_vm9 = vmor %vm1792_vm8, %vm1793_vm7  ;;  %vm1802_vm11 = vweird.f32 %v1654_v29 }
 0x2c1   : > { %v1788_v10 = vmul.f32 %v4015_v21, %v1787_v57  ;;  %v1575_v54 = vpop.xlane.xlu0 %1574  ;;  %v1785_v11 = vsel %vm1784_vm6, %v4013_v6, %v1781_v47  ;;  %v1638_v6 = vsub.f32 %v4879_v19, %v5036_v62  ;;  %v3845_v19 = vld [vmem:[%s5716_s12 + $0x28] sm:$0xff] }
 0x2c2   : > { %v1607_v30 = vmul.f32 %v1527_v48, %v1527_v48  ;;  %v1591_v61 = vmul.f32 0.03125, %v1575_v54  ;;  %v1828_v50 = vmul.f32 %v1785_v11, %v1636_v37  ;;  %v1639_v23 = vsub.f32 %v4901_v26, %v1527_v48  ;;  %2286 = vmatpush.bf16.msrb.mxu0 %v3845_v19  ;;  %v2112_v37 = vld [vmem:[%s5116_s2] sm:$0xff] }
 0x2c3   : > { %2015 = vmatmul.bf16.gmra.mxu2 %v1893_v36  ;;  %v1789_v8 = vmul.f32 0.5, %v1788_v10 }
 0x2c4   : > { %v1623_v34 = vsub.f32 %v1591_v61, %v1607_v30  ;;  %v1848_v1 = vmul.f32 %v4947_v44, %v1828_v50 }
 0x2c5   : > { %2064 = vmatmul.bf16.gmra.mxu3 %v1893_v36  ;;  %v1790_v27 = vsub.f32 1.5, %v1789_v8 }
 0x2c6   : > { %v4017_v32 = vpop.eup %4016  ;;  %v1655_v56 = vadd.f32 1e-05, %v1623_v34  ;;  %v1868_v4 = vadd.f32 %v4957_v59, %v1848_v1  ;;  %2287 = vmatpush.bf16.msrb.mxu0 %v3844_v41 }
 0x2c7   : > { %v1791_v25 = vmul.f32 %v4015_v21, %v1790_v27  ;;  %v1797_v45 = vmul.f32 %v4017_v32, %v1654_v29  ;;  %vm1803_vm10 = vweird.f32 %v4017_v32 }
 0x2c8   : > { %4018 = vrsqrt.f32 %v1655_v56  ;;  %vm1804_vm12 = vmor %vm1802_vm11, %vm1803_vm10  ;;  %vm1812_vm14 = vweird.f32 %v1655_v56 }
 0x2c9   : > { %v1798_v28 = vmul.f32 %v4017_v32, %v1797_v45  ;;  %v1795_v51 = vsel %vm1794_vm9, %v4015_v21, %v1791_v25  ;;  %v5096_v21 = vperm.slane %v1896_v0, 1 }
 0x2ca   : > { %v1829_v53 = vmul.f32 %v1795_v51, %v1637_v39 }
 0x2cb   : > { %v1799_v43 = vmul.f32 0.5, %v1798_v28 }
 0x2cc   : > { %v1849_v49 = vmul.f32 %v4947_v44, %v1829_v53 }
 0x2cd   : > { %v1800_v17 = vsub.f32 1.5, %v1799_v43 }
 0x2ce   : > { %v4019_v22 = vpop.eup %4018  ;;  %v1869_v5 = vadd.f32 %v4957_v59, %v1849_v49 }
 0x2cf   : > { %v1801_v13 = vmul.f32 %v4017_v32, %v1800_v17  ;;  %v1807_v14 = vmul.f32 %v4019_v22, %v1655_v56  ;;  %vm1813_vm13 = vweird.f32 %v4019_v22 }
 0x2d0   : > { %v1894_v63 = vpack.c.bf16 %v1869_v5, %v1868_v4  ;;  %vm1814_vm15 = vmor %vm1812_vm14, %vm1813_vm13 }
 0x2d1   : > { %v1808_v52 = vmul.f32 %v4019_v22, %v1807_v14  ;;  %v1805_v60 = vsel %vm1804_vm12, %v4017_v32, %v1801_v13  ;;  %v2113_v32 = vld [vmem:[%s5116_s2 + $0x8] sm:$0xff]  ;;  %v2114_v14 = vld [vmem:[%s5116_s2 + $0x10] sm:$0xff] }
 0x2d2   : > { %v1830_v38 = vmul.f32 %v1805_v60, %v1638_v6 }
 0x2d3   : > { %2020 = vmatmul.bf16.gmra.mxu2 %v1894_v63  ;;  %v1809_v35 = vmul.f32 0.5, %v1808_v52 }
 0x2d4   : > { %v1850_v33 = vmul.f32 %v4947_v44, %v1830_v38 }
 0x2d5   : > { %2069 = vmatmul.bf16.gmra.mxu3 %v1894_v63  ;;  %v1810_v16 = vsub.f32 1.5, %v1809_v35 }
 0x2d6   : > { %v1870_v62 = vadd.f32 %v4957_v59, %v1850_v33 }
 0x2d7   : > { %v1811_v7 = vmul.f32 %v4019_v22, %v1810_v16 }
 0x2d9   : > { %v1815_v15 = vsel %vm1814_vm15, %v4019_v22, %v1811_v7 }
 0x2da   : > { %v1831_v24 = vmul.f32 %v1815_v15, %v1639_v23 }
 0x2dc   : > { %v1851_v2 = vmul.f32 %v4947_v44, %v1831_v24  ;;  %v3843_v44 = vld [vmem:[%s5716_s12 + $0x18] sm:$0xff] }
 0x2dd   : > { %2288 = vmatpush.bf16.msrb.mxu0 %v3843_v44 }
 0x2de   : > { %v1871_v26 = vadd.f32 %v4957_v59, %v1851_v2  ;;  %v3842_v59 = vld [vmem:[%s5716_s12 + $0x10] sm:$0xff] }
 0x2e0   : > { %v1895_v20 = vpack.c.bf16 %v1871_v26, %v1870_v62 }
 0x2e1   : > { %2289 = vmatpush.bf16.msrb.mxu0 %v3842_v59  ;;  %v2116_v59 = vld [vmem:[%s5116_s2 + $0x20] sm:$0xff] }
 0x2e3   : > { %2025 = vmatmul.bf16.gmra.mxu2 %v1895_v20 }
 0x2e5   : > { %2074 = vmatmul.bf16.gmra.mxu3 %v1895_v20  ;;  %2290 = vmatpush.bf16.msrb.mxu0 %v3841_v3 }
 0x2e9   : > { %2291 = vmatpush.bf16.msrb.mxu0 %v3840_v18 }
 0x2f1   : > { %v1991_v58 = vpop.f32.mrf.mxu0 }
 0x2f2   : > { %v1992_v12 = vadd.f32 %v1991_v58, %v5080_v40  ;;  %v2117_v58 = vld [vmem:[%s5116_s2 + $0x28] sm:$0xff] }
 0x2f4   : > { %2080 = vst [vmem:[%s5089_s0] sm:$0xff] %v1992_v12 }
 0x2f7   : > { %v2040_v29 = vpop.f32.mrf.mxu3 }
 0x2f8   : > { %v2041_v42 = vadd.f32 %v2040_v29, %v5096_v21 }
 0x2f9   : > { %v1993_v31 = vpop.f32.mrf.mxu0 }
 0x2fa   : > { %2096 = vst [vmem:[%s5102_s4] sm:$0xff] %v2041_v42  ;;  %v2128_v47 = vmul.f32 0.5, %v2041_v42  ;;  %v1994_v57 = vadd.f32 %v1993_v31, %v5080_v40 }
 0x2fc   : > { %2081 = vst [vmem:[%s5089_s0 + $0x8] sm:$0xff] %v1994_v57  ;;  %v2144_v9 = vmul.f32 1.442695, %v2128_v47 }
 0x2fe   : > { %4020 = vpow2.f32 %v2144_v9 }
 0x2ff   : > { %v2042_v48 = vpop.f32.mrf.mxu3 }
 0x300   : > { %v2043_v36 = vadd.f32 %v2042_v48, %v5096_v21 }
 0x302   : > { %v1996_v10 = vpop.f32.mrf.mxu0  ;;  %2097 = vst [vmem:[%s5102_s4 + $0x8] sm:$0xff] %v2043_v36  ;;  %v2129_v54 = vmul.f32 0.5, %v2043_v36 }
 0x303   : > { %v1997_v30 = vadd.f32 %v1996_v10, %v5080_v40 }
 0x304   : > { %v2146_v61 = vmul.f32 1.442695, %v2129_v54  ;;  %v4021_v11 = vpop.eup %4020 }
 0x305   : > { %2082 = vst [vmem:[%s5089_s0 + $0x10] sm:$0xff] %v1997_v30  ;;  %v2176_v25 = vmul.f32 %v4021_v11, %v2112_v37 }
 0x306   : > { %4022 = vpow2.f32 %v2146_v61 }
 0x307   : > { %v2192_v53 = vadd.f32 %v2176_v25, %v1992_v12 }
 0x308   : > { %v2045_v8 = vpop.f32.mrf.mxu3 }
 0x309   : > { %v2046_v34 = vadd.f32 %v2045_v8, %v5096_v21 }
 0x30a   : > { %v1998_v27 = vpop.f32.mrf.mxu0 }
 0x30b   : > { %2098 = vst [vmem:[%s5102_s4 + $0x10] sm:$0xff] %v2046_v34  ;;  %v2130_v56 = vmul.f32 0.5, %v2046_v34  ;;  %v1999_v50 = vadd.f32 %v1998_v27, %v5080_v40  ;;  %v2118_v27 = vld [vmem:[%s5116_s2 + $0x30] sm:$0xff] }
 0x30c   : > { %v4023_v45 = vpop.eup %4022 }
 0x30d   : > { %2083 = vst [vmem:[%s5089_s0 + $0x18] sm:$0xff] %v1999_v50  ;;  %v2177_v39 = vmul.f32 %v4023_v45, %v2113_v32  ;;  %v2148_v28 = vmul.f32 1.442695, %v2130_v56  ;;  %v2119_v56 = vld [vmem:[%s5116_s2 + $0x38] sm:$0xff] }
 0x30f   : > { %v2193_v1 = vadd.f32 %v2177_v39, %v1994_v57  ;;  %4024 = vpow2.f32 %v2148_v28 }
 0x310   : > { %v2047_v51 = vpop.f32.mrf.mxu3 }
 0x311   : > { %v2048_v43 = vadd.f32 %v2047_v51, %v5096_v21  ;;  %v2224_v49 = vpack.c.bf16 %v2193_v1, %v2192_v53 }
 0x313   : > { %2099 = vst [vmem:[%s5102_s4 + $0x18] sm:$0xff] %v2048_v43  ;;  %v2131_v17 = vmul.f32 0.5, %v2048_v43  ;;  %2292 = vmatmul.bf16.vlgmr.msrb.gmra.mxu0 %v2224_v49 }
 0x315   : > { %v2150_v22 = vmul.f32 1.442695, %v2131_v17  ;;  %v4025_v4 = vpop.eup %4024 }
 0x316   : > { %v2001_v5 = vpop.f32.mrf.mxu2  ;;  %v2178_v60 = vmul.f32 %v4025_v4, %v2114_v14 }
 0x317   : > { %4026 = vpow2.f32 %v2150_v22  ;;  %v2002_v63 = vadd.f32 %v2001_v5, %v5080_v40 }
 0x318   : > { %v2050_v13 = vpop.f32.mrf.mxu3  ;;  %v2194_v7 = vadd.f32 %v2178_v60, %v1997_v30  ;;  %v2121_v60 = vld [vmem:[%s5116_s2 + $0x48] sm:$0xff] }
 0x319   : > { %v2051_v52 = vadd.f32 %v2050_v13, %v5096_v21  ;;  %2084 = vst [vmem:[%s5089_s0 + $0x20] sm:$0xff] %v2002_v63 }
 0x31b   : > { %v2132_v35 = vmul.f32 0.5, %v2051_v52  ;;  %2100 = vst [vmem:[%s5102_s4 + $0x20] sm:$0xff] %v2051_v52 }
 0x31d   : > { %v4027_v6 = vpop.eup %4026  ;;  %v2152_v38 = vmul.f32 1.442695, %v2132_v35 }
 0x31e   : > { %v2179_v16 = vmul.f32 %v4027_v6, %v2115_v55  ;;  %v2003_v46 = vpop.f32.mrf.mxu2  ;;  %v2120_v55 = vld [vmem:[%s5116_s2 + $0x40] sm:$0xff] }
 0x31f   : > { %v2004_v24 = vadd.f32 %v2003_v46, %v5080_v40  ;;  %4028 = vpow2.f32 %v2152_v38 }
 0x320   : > { %v2195_v23 = vadd.f32 %v2179_v16, %v1999_v50  ;;  %v2052_v15 = vpop.f32.mrf.mxu3 }
 0x321   : > { %v2053_v33 = vadd.f32 %v2052_v15, %v5096_v21  ;;  %2085 = vst [vmem:[%s5089_s0 + $0x28] sm:$0xff] %v2004_v24 }
 0x322   : > { %v2225_v2 = vpack.c.bf16 %v2195_v23, %v2194_v7 }
 0x323   : > { %v2133_v19 = vmul.f32 0.5, %v2053_v33  ;;  %2101 = vst [vmem:[%s5102_s4 + $0x28] sm:$0xff] %v2053_v33 }
 0x324   : > { %2297 = vmatmul.bf16.gmra.mxu0 %v2225_v2 }
 0x325   : > { %v2154_v62 = vmul.f32 1.442695, %v2133_v19  ;;  %v4029_v41 = vpop.eup %4028 }
 0x326   : > { %v2006_v26 = vpop.f32.mrf.mxu2  ;;  %v2180_v12 = vmul.f32 %v4029_v41, %v2116_v59 }
 0x327   : > { %4030 = vpow2.f32 %v2154_v62  ;;  %v2007_v44 = vadd.f32 %v2006_v26, %v5080_v40 }
 0x328   : > { %v2055_v20 = vpop.f32.mrf.mxu3  ;;  %v2196_v57 = vadd.f32 %v2180_v12, %v2002_v63  ;;  %v2123_v12 = vld [vmem:[%s5116_s2 + $0x58] sm:$0xff] }
 0x329   : > { %v2056_v0 = vadd.f32 %v2055_v20, %v5096_v21  ;;  %2086 = vst [vmem:[%s5089_s0 + $0x30] sm:$0xff] %v2007_v44 }
 0x32b   : > { %v2134_v3 = vmul.f32 0.5, %v2056_v0  ;;  %2102 = vst [vmem:[%s5102_s4 + $0x30] sm:$0xff] %v2056_v0 }
 0x32d   : > { %v4031_v18 = vpop.eup %4030  ;;  %v2156_v42 = vmul.f32 1.442695, %v2134_v3  ;;  %v2122_v3 = vld [vmem:[%s5116_s2 + $0x50] sm:$0xff] }
 0x32e   : > { %v2181_v29 = vmul.f32 %v4031_v18, %v2117_v58  ;;  %v2008_v31 = vpop.f32.mrf.mxu2 }
 0x32f   : > { %v2009_v48 = vadd.f32 %v2008_v31, %v5080_v40  ;;  %4032 = vpow2.f32 %v2156_v42 }
 0x330   : > { %v2057_v47 = vpop.f32.mrf.mxu3  ;;  %v2197_v9 = vadd.f32 %v2181_v29, %v2004_v24 }
 0x331   : > { %v2058_v36 = vadd.f32 %v2057_v47, %v5096_v21  ;;  %2087 = vst [vmem:[%s5089_s0 + $0x38] sm:$0xff] %v2009_v48 }
 0x332   : > { %v2226_v10 = vpack.c.bf16 %v2197_v9, %v2196_v57 }
 0x333   : > { %v2135_v54 = vmul.f32 0.5, %v2058_v36  ;;  %2103 = vst [vmem:[%s5102_s4 + $0x38] sm:$0xff] %v2058_v36 }
 0x334   : > { %2302 = vmatmul.bf16.gmra.mxu0 %v2226_v10 }
 0x335   : > { %v2158_v30 = vmul.f32 1.442695, %v2135_v54  ;;  %v4033_v11 = vpop.eup %4032 }
 0x336   : > { %v2011_v61 = vpop.f32.mrf.mxu2  ;;  %v2182_v50 = vmul.f32 %v4033_v11, %v2118_v27 }
 0x337   : > { %4034 = vpow2.f32 %v2158_v30  ;;  %v2012_v37 = vadd.f32 %v2011_v61, %v5080_v40 }
 0x338   : > { %v2060_v8 = vpop.f32.mrf.mxu3  ;;  %v2198_v53 = vadd.f32 %v2182_v50, %v2007_v44  ;;  %v2125_v50 = vld [vmem:[%s5116_s2 + $0x68] sm:$0xff] }
 0x339   : > { %v2061_v34 = vadd.f32 %v2060_v8, %v5096_v21  ;;  %2088 = vst [vmem:[%s5089_s0 + $0x40] sm:$0xff] %v2012_v37 }
 0x33b   : > { %v2136_v32 = vmul.f32 0.5, %v2061_v34  ;;  %2104 = vst [vmem:[%s5102_s4 + $0x40] sm:$0xff] %v2061_v34 }
 0x33d   : > { %v4035_v25 = vpop.eup %4034  ;;  %v2160_v39 = vmul.f32 1.442695, %v2136_v32  ;;  %v2124_v32 = vld [vmem:[%s5116_s2 + $0x60] sm:$0xff] }
 0x33e   : > { %v2183_v45 = vmul.f32 %v4035_v25, %v2119_v56  ;;  %v2013_v28 = vpop.f32.mrf.mxu2 }
 0x33f   : > { %v2014_v43 = vadd.f32 %v2013_v28, %v5080_v40  ;;  %4036 = vpow2.f32 %v2160_v39 }
 0x340   : > { %v2062_v51 = vpop.f32.mrf.mxu3  ;;  %v2199_v1 = vadd.f32 %v2183_v45, %v2009_v48 }
 0x341   : > { %v2063_v49 = vadd.f32 %v2062_v51, %v5096_v21  ;;  %2089 = vst [vmem:[%s5089_s0 + $0x48] sm:$0xff] %v2014_v43 }
 0x342   : > { %v2227_v17 = vpack.c.bf16 %v2199_v1, %v2198_v53 }
 0x343   : > { %v2137_v22 = vmul.f32 0.5, %v2063_v49  ;;  %2105 = vst [vmem:[%s5102_s4 + $0x48] sm:$0xff] %v2063_v49 }
 0x344   : > { %2307 = vmatmul.bf16.gmra.mxu0 %v2227_v17 }
 0x345   : > { %v2162_v4 = vmul.f32 1.442695, %v2137_v22  ;;  %v4037_v14 = vpop.eup %4036 }
 0x346   : > { %v2016_v5 = vpop.f32.mrf.mxu2  ;;  %v2184_v6 = vmul.f32 %v4037_v14, %v2120_v55  ;;  %v2126_v14 = vld [vmem:[%s5116_s2 + $0x70] sm:$0xff] }
 0x347   : > { %4038 = vpow2.f32 %v2162_v4  ;;  %v2017_v63 = vadd.f32 %v2016_v5, %v5080_v40 }
 0x348   : > { %v2065_v13 = vpop.f32.mrf.mxu3  ;;  %v2200_v15 = vadd.f32 %v2184_v6, %v2012_v37 }
 0x349   : > { %v2066_v52 = vadd.f32 %v2065_v13, %v5096_v21  ;;  %2090 = vst [vmem:[%s5089_s0 + $0x50] sm:$0xff] %v2017_v63 }
 0x34b   : > { %v2138_v35 = vmul.f32 0.5, %v2066_v52  ;;  %2106 = vst [vmem:[%s5102_s4 + $0x50] sm:$0xff] %v2066_v52 }
 0x34d   : > { %v4039_v16 = vpop.eup %4038  ;;  %v2164_v7 = vmul.f32 1.442695, %v2138_v35 }
 0x34e   : > { %v2185_v38 = vmul.f32 %v4039_v16, %v2121_v60  ;;  %v2018_v23 = vpop.f32.mrf.mxu2 }
 0x34f   : > { %v2019_v33 = vadd.f32 %v2018_v23, %v5080_v40  ;;  %4040 = vpow2.f32 %v2164_v7 }
 0x350   : > { %v2067_v46 = vpop.f32.mrf.mxu3  ;;  %v2201_v24 = vadd.f32 %v2185_v38, %v2014_v43 }
 0x351   : > { %v2068_v2 = vadd.f32 %v2067_v46, %v5096_v21  ;;  %2091 = vst [vmem:[%s5089_s0 + $0x58] sm:$0xff] %v2019_v33 }
 0x352   : > { %v2228_v19 = vpack.c.bf16 %v2201_v24, %v2200_v15 }
 0x353   : > { %v2139_v62 = vmul.f32 0.5, %v2068_v2  ;;  %2107 = vst [vmem:[%s5102_s4 + $0x58] sm:$0xff] %v2068_v2 }
 0x354   : > { %2312 = vmatmul.bf16.gmra.mxu0 %v2228_v19 }
 0x355   : > { %v2166_v26 = vmul.f32 1.442695, %v2139_v62  ;;  %v4041_v44 = vpop.eup %4040 }
 0x356   : > { %v2021_v20 = vpop.f32.mrf.mxu2  ;;  %v2186_v18 = vmul.f32 %v4041_v44, %v2122_v3 }
 0x357   : > { %4042 = vpow2.f32 %v2166_v26  ;;  %v2022_v0 = vadd.f32 %v2021_v20, %v5080_v40 }
 0x358   : > { %v2070_v41 = vpop.f32.mrf.mxu3  ;;  %v2202_v9 = vadd.f32 %v2186_v18, %v2017_v63  ;;  %v2127_v63 = vld [vmem:[%s5116_s2 + $0x78] sm:$0xff] }
 0x359   : > { %v2071_v59 = vadd.f32 %v2070_v41, %v5096_v21  ;;  %2092 = vst [vmem:[%s5089_s0 + $0x60] sm:$0xff] %v2022_v0 }
 0x35b   : > { %v2140_v58 = vmul.f32 0.5, %v2071_v59  ;;  %2108 = vst [vmem:[%s5102_s4 + $0x60] sm:$0xff] %v2071_v59 }
 0x35d   : > { %v4043_v29 = vpop.eup %4042  ;;  %v2168_v31 = vmul.f32 1.442695, %v2140_v58 }
 0x35e   : > { %v2187_v42 = vmul.f32 %v4043_v29, %v2123_v12  ;;  %v2023_v47 = vpop.f32.mrf.mxu2  ;;  %v3855_v12 = vld [vmem:[%s5720_s16 + $0x38] sm:$0xff] }
 0x35f   : > { %v2024_v36 = vadd.f32 %v2023_v47, %v5080_v40  ;;  %4044 = vpow2.f32 %v2168_v31  ;;  %2817 = vmatpush.bf16.msrb.mxu1 %v3855_v12  ;;  %v3849_v12 = vld [vmem:[%s5720_s16 + $0x8] sm:$0xff] }
 0x360   : > { %v2072_v57 = vpop.f32.mrf.mxu3  ;;  %v2203_v48 = vadd.f32 %v2187_v42, %v2019_v33 }
 0x361   : > { %v2073_v10 = vadd.f32 %v2072_v57, %v5096_v21  ;;  %2093 = vst [vmem:[%s5089_s0 + $0x68] sm:$0xff] %v2024_v36  ;;  %v3854_v57 = vld [vmem:[%s5720_s16 + $0x30] sm:$0xff] }
 0x362   : > { %v2229_v54 = vpack.c.bf16 %v2203_v48, %v2202_v9 }
 0x363   : > { %v2141_v30 = vmul.f32 0.5, %v2073_v10  ;;  %2109 = vst [vmem:[%s5102_s4 + $0x68] sm:$0xff] %v2073_v10  ;;  %2818 = vmatpush.bf16.msrb.mxu1 %v3854_v57  ;;  %v3848_v57 = vld [vmem:[%s5720_s16] sm:$0xff] }
 0x364   : > { %2317 = vmatmul.bf16.gmra.mxu0 %v2229_v54 }
 0x365   : > { %v2170_v61 = vmul.f32 1.442695, %v2141_v30  ;;  %v4045_v37 = vpop.eup %4044 }
 0x366   : > { %v2026_v8 = vpop.f32.mrf.mxu2  ;;  %v2188_v25 = vmul.f32 %v4045_v37, %v2124_v32 }
 0x367   : > { %4046 = vpow2.f32 %v2170_v61  ;;  %v2027_v34 = vadd.f32 %v2026_v8, %v5080_v40  ;;  %v3853_v8 = vld [vmem:[%s5720_s16 + $0x28] sm:$0xff] }
 0x368   : > { %v2075_v11 = vpop.f32.mrf.mxu3  ;;  %v2204_v1 = vadd.f32 %v2188_v25, %v2022_v0  ;;  %2819 = vmatpush.bf16.msrb.mxu1 %v3853_v8 }
 0x369   : > { %v2076_v27 = vadd.f32 %v2075_v11, %v5096_v21  ;;  %2094 = vst [vmem:[%s5089_s0 + $0x70] sm:$0xff] %v2027_v34 }
 0x36b   : > { %v2142_v56 = vmul.f32 0.5, %v2076_v27  ;;  %2110 = vst [vmem:[%s5102_s4 + $0x70] sm:$0xff] %v2076_v27 }
 0x36d   : > { %v4047_v45 = vpop.eup %4046  ;;  %v2172_v28 = vmul.f32 1.442695, %v2142_v56  ;;  %v3852_v56 = vld [vmem:[%s5720_s16 + $0x20] sm:$0xff] }
 0x36e   : > { %v2189_v39 = vmul.f32 %v4047_v45, %v2125_v50  ;;  %v2028_v51 = vpop.f32.mrf.mxu2  ;;  %2820 = vmatpush.bf16.msrb.mxu1 %v3852_v56 }
 0x36f   : > { %v2029_v49 = vadd.f32 %v2028_v51, %v5080_v40  ;;  %4048 = vpow2.f32 %v2172_v28  ;;  %v5191_v40 = vld [vmem:[%s5717_s13] ss:$0 sm:$0xff] }
 0x370   : > { %v2077_v53 = vpop.f32.mrf.mxu3  ;;  %v2205_v43 = vadd.f32 %v2189_v39, %v2024_v36 }
 0x371   : > { %v2078_v17 = vadd.f32 %v2077_v53, %v5096_v21  ;;  %2095 = vst [vmem:[%s5089_s0 + $0x78] sm:$0xff] %v2029_v49  ;;  %s3577_s0 = sshll.u32 %s5762_s30, 2 }
 0x372   : > { %v2230_v22 = vpack.c.bf16 %v2205_v43, %v2204_v1  ;;  %v3851_v1 = vld [vmem:[%s5720_s16 + $0x18] sm:$0xff]  ;;  %s5691_s8 = scalar_lea.vmem %s5726_s22, %s3577_s0 }
 0x373   : > { %v2143_v4 = vmul.f32 0.5, %v2078_v17  ;;  %2111 = vst [vmem:[%s5102_s4 + $0x78] sm:$0xff] %v2078_v17  ;;  %2821 = vmatpush.bf16.msrb.mxu1 %v3851_v1 }
 0x374   : > { %2322 = vmatmul.bf16.gmra.mxu0 %v2230_v22 }
 0x375   : > { %v2174_v5 = vmul.f32 1.442695, %v2143_v4  ;;  %v4049_v13 = vpop.eup %4048 }
 0x376   : > { %v2190_v52 = vmul.f32 %v4049_v13, %v2126_v14 }
 0x377   : > { %4050 = vpow2.f32 %v2174_v5 }
 0x378   : > { %v2206_v60 = vadd.f32 %v2190_v52, %v2027_v34 }
 0x37d   : > { %v4051_v55 = vpop.eup %4050 }
 0x37e   : > { %v2191_v35 = vmul.f32 %v4051_v55, %v2127_v63 }
 0x380   : > { %v2207_v6 = vadd.f32 %v2191_v35, %v2029_v49 }
 0x382   : > { %v2231_v16 = vpack.c.bf16 %v2207_v6, %v2206_v60 }
 0x384   : > { %2327 = vmatmul.bf16.gmra.mxu0 %v2231_v16 }
 0x390   : > { %v2293_v21 = vpop.f32.mrf.mxu0 }
 0x391   : > { %v2294_v38 = vadd.f32 %v5191_v40, %v2293_v21  ;;  %v3850_v21 = vld [vmem:[%s5720_s16 + $0x10] sm:$0xff] }
 0x392   : > { %2822 = vmatpush.bf16.msrb.mxu1 %v3850_v21 }
 0x393   : > { %v5194_v7 = vmax.f32 %v2294_v38, 0.0 }
 0x395   : > { %2349 = vadd.xlane.f32.xlu1 %v5194_v7  ;;  %v2397_v23 = vmul.f32 %v5194_v7, %v5194_v7 }
 0x396   : > { %2823 = vmatpush.bf16.msrb.mxu1 %v3849_v12  ;;  %v5334_v12 = vld [vmem:[%s5719_s15] ss:$0 sm:$0xff] }
 0x397   : > { %2413 = vadd.xlane.f32.xlu0 %v2397_v23 }
 0x398   : > { %v2295_v46 = vpop.f32.mrf.mxu0 }
 0x399   : > { %v2296_v15 = vadd.f32 %v5191_v40, %v2295_v46 }
 0x39a   : > { %2824 = vmatpush.bf16.msrb.mxu1 %v3848_v57 }
 0x39b   : > { %v5200_v24 = vmax.f32 %v2296_v15, 0.0 }
 0x39d   : > { %2351 = vadd.xlane.f32.xlu2 %v5200_v24  ;;  %v2398_v33 = vmul.f32 %v5200_v24, %v5200_v24 }
 0x39f   : > { %2415 = vadd.xlane.f32.xlu1 %v2398_v33 }
 0x3a1   : > { %v2298_v2 = vpop.f32.mrf.mxu0 }
 0x3a2   : > { %v2299_v19 = vadd.f32 %v5191_v40, %v2298_v2 }
 0x3a4   : > { %v5206_v62 = vmax.f32 %v2299_v19, 0.0 }
 0x3a6   : > { %2353 = vadd.xlane.f32.xlu2 %v5206_v62  ;;  %v2399_v26 = vmul.f32 %v5206_v62, %v5206_v62 }
 0x3a8   : > { %2417 = vadd.xlane.f32.xlu1 %v2399_v26 }
 0x3a9   : > { %v2300_v20 = vpop.f32.mrf.mxu0 }
 0x3aa   : > { %v2301_v41 = vadd.f32 %v5191_v40, %v2300_v20 }
 0x3ac   : > { %v5212_v44 = vmax.f32 %v2301_v41, 0.0 }
 0x3ae   : > { %2355 = vadd.xlane.f32.xlu0 %v5212_v44  ;;  %v2400_v0 = vmul.f32 %v5212_v44, %v5212_v44 }
 0x3b0   : > { %2419 = vadd.xlane.f32.xlu2 %v2400_v0 }
 0x3b1   : > { %v2303_v59 = vpop.f32.mrf.mxu0 }
 0x3b2   : > { %v2304_v3 = vadd.f32 %v5191_v40, %v2303_v59 }
 0x3b4   : > { %v5218_v58 = vmax.f32 %v2304_v3, 0.0 }
 0x3b6   : > { %2357 = vadd.xlane.f32.xlu0 %v5218_v58  ;;  %v2401_v18 = vmul.f32 %v5218_v58, %v5218_v58 }
 0x3b8   : > { %2421 = vadd.xlane.f32.xlu2 %v2401_v18 }
 0x3b9   : > { %v2305_v29 = vpop.f32.mrf.mxu0 }
 0x3ba   : > { %v2306_v42 = vadd.f32 %v5191_v40, %v2305_v29 }
 0x3bc   : > { %v5227_v31 = vmax.f32 %v2306_v42, 0.0 }
 0x3be   : > { %2359 = vadd.xlane.f32.xlu1 %v5227_v31  ;;  %v2402_v47 = vmul.f32 %v5227_v31, %v5227_v31 }
 0x3c0   : > { %2423 = vadd.xlane.f32.xlu0 %v2402_v47 }
 0x3c1   : > { %v2308_v9 = vpop.f32.mrf.mxu0 }
 0x3c2   : > { %v2309_v48 = vadd.f32 %v5191_v40, %v2308_v9 }
 0x3c4   : > { %v5236_v36 = vmax.f32 %v2309_v48, 0.0 }
 0x3c6   : > { %2361 = vadd.xlane.f32.xlu1 %v5236_v36  ;;  %v2403_v10 = vmul.f32 %v5236_v36, %v5236_v36 }
 0x3c8   : > { %2425 = vadd.xlane.f32.xlu0 %v2403_v10 }
 0x3c9   : > { %v2310_v54 = vpop.f32.mrf.mxu0 }
 0x3ca   : > { %v2311_v30 = vadd.f32 %v5191_v40, %v2310_v54 }
 0x3cc   : > { %v5242_v61 = vmax.f32 %v2311_v30, 0.0 }
 0x3ce   : > { %2363 = vadd.xlane.f32.xlu2 %v5242_v61  ;;  %v2404_v11 = vmul.f32 %v5242_v61, %v5242_v61 }
 0x3d0   : > { %2427 = vadd.xlane.f32.xlu1 %v2404_v11 }
 0x3d1   : > { %v2313_v37 = vpop.f32.mrf.mxu0 }
 0x3d2   : > { %v2314_v34 = vadd.f32 %v5191_v40, %v2313_v37 }
 0x3d4   : > { %v5251_v27 = vmax.f32 %v2314_v34, 0.0 }
 0x3d6   : > { %2365 = vadd.xlane.f32.xlu2 %v5251_v27  ;;  %v2405_v32 = vmul.f32 %v5251_v27, %v5251_v27 }
 0x3d8   : > { %2429 = vadd.xlane.f32.xlu1 %v2405_v32 }
 0x3d9   : > { %v2315_v50 = vpop.f32.mrf.mxu0 }
 0x3da   : > { %v2316_v25 = vadd.f32 %v5191_v40, %v2315_v50 }
 0x3dc   : > { %v5260_v45 = vmax.f32 %v2316_v25, 0.0 }
 0x3de   : > { %2367 = vadd.xlane.f32.xlu0 %v5260_v45  ;;  %v2406_v39 = vmul.f32 %v5260_v45, %v5260_v45 }
 0x3e0   : > { %2431 = vadd.xlane.f32.xlu2 %v2406_v39 }
 0x3e1   : > { %v2318_v28 = vpop.f32.mrf.mxu0 }
 0x3e2   : > { %v2319_v51 = vadd.f32 %v5191_v40, %v2318_v28 }
 0x3e4   : > { %v5266_v53 = vmax.f32 %v2319_v51, 0.0 }
 0x3e6   : > { %2369 = vadd.xlane.f32.xlu0 %v5266_v53  ;;  %v2407_v43 = vmul.f32 %v5266_v53, %v5266_v53 }
 0x3e8   : > { %2433 = vadd.xlane.f32.xlu2 %v2407_v43 }
 0x3e9   : > { %v2320_v49 = vpop.f32.mrf.mxu0 }
 0x3ea   : > { %v2321_v17 = vadd.f32 %v5191_v40, %v2320_v49 }
 0x3ec   : > { %v5275_v22 = vmax.f32 %v2321_v17, 0.0 }
 0x3ee   : > { %2371 = vadd.xlane.f32.xlu1 %v5275_v22  ;;  %v2408_v4 = vmul.f32 %v5275_v22, %v5275_v22 }
 0x3f0   : > { %2435 = vadd.xlane.f32.xlu0 %v2408_v4 }
 0x3f1   : > { %v2323_v5 = vpop.f32.mrf.mxu0 }
 0x3f2   : > { %v2324_v13 = vadd.f32 %v5191_v40, %v2323_v5 }
 0x3f4   : > { %v5281_v14 = vmax.f32 %v2324_v13, 0.0 }
 0x3f6   : > { %2373 = vadd.xlane.f32.xlu1 %v5281_v14  ;;  %v2409_v63 = vmul.f32 %v5281_v14, %v5281_v14 }
 0x3f8   : > { %2437 = vadd.xlane.f32.xlu0 %v2409_v63 }
 0x3f9   : > { %v2325_v52 = vpop.f32.mrf.mxu0 }
 0x3fa   : > { %v2326_v55 = vadd.f32 %v5191_v40, %v2325_v52 }
 0x3fc   : > { %v5287_v35 = vmax.f32 %v2326_v55, 0.0 }
 0x3fe   : > { %2375 = vadd.xlane.f32.xlu2 %v5287_v35  ;;  %v2410_v60 = vmul.f32 %v5287_v35, %v5287_v35 }
 0x400   : > { %2439 = vadd.xlane.f32.xlu1 %v2410_v60 }
 0x401   : > { %v2328_v6 = vpop.f32.mrf.mxu0 }
 0x402   : > { %v2329_v16 = vadd.f32 %v5191_v40, %v2328_v6 }
 0x404   : > { %v5296_v38 = vmax.f32 %v2329_v16, 0.0 }
 0x406   : > { %2377 = vadd.xlane.f32.xlu2 %v5296_v38  ;;  %v2411_v23 = vmul.f32 %v5296_v38, %v5296_v38 }
 0x408   : > { %2441 = vadd.xlane.f32.xlu1 %v2411_v23  ;;  %v2350_v46 = vpop.xlane.xlu1 %2349 }
 0x409   : > { %v2330_v15 = vpop.f32.mrf.mxu0  ;;  %v2381_v33 = vmul.f32 0.03125, %v2350_v46  ;;  %v5325_v46 = vld [vmem:[%s5718_s14] ss:$0 sm:$0xff] }
 0x40a   : > { %v2331_v2 = vadd.f32 %v5191_v40, %v2330_v15  ;;  %v2414_v19 = vpop.xlane.xlu0 %2413 }
 0x40b   : > { %v2461_v26 = vmul.f32 %v2381_v33, %v2381_v33  ;;  %v2445_v20 = vmul.f32 0.03125, %v2414_v19  ;;  %v2493_v55 = vsub.f32 %v5194_v7, %v2381_v33 }
 0x40c   : > { %v5302_v41 = vmax.f32 %v2331_v2, 0.0 }
 0x40d   : > { %v2477_v0 = vsub.f32 %v2445_v20, %v2461_v26 }
 0x40e   : > { %2379 = vadd.xlane.f32.xlu0 %v5302_v41  ;;  %v2412_v59 = vmul.f32 %v5302_v41, %v5302_v41 }
 0x40f   : > { %v2509_v3 = vadd.f32 1e-05, %v2477_v0 }
 0x410   : > { %2443 = vadd.xlane.f32.xlu2 %v2412_v59  ;;  %v2352_v18 = vpop.xlane.xlu2 %2351 }
 0x411   : > { %4052 = vrsqrt.f32 %v2509_v3  ;;  %v2382_v40 = vmul.f32 0.03125, %v2352_v18  ;;  %vm2531_vm1 = vweird.f32 %v2509_v3 }
 0x412   : > { %v2416_v29 = vpop.xlane.xlu1 %2415 }
 0x413   : > { %v2462_v42 = vmul.f32 %v2382_v40, %v2382_v40  ;;  %v2446_v47 = vmul.f32 0.03125, %v2416_v29  ;;  %v2494_v19 = vsub.f32 %v5200_v24, %v2382_v40 }
 0x415   : > { %v2478_v9 = vsub.f32 %v2446_v47, %v2462_v42 }
 0x417   : > { %v4053_v48 = vpop.eup %4052  ;;  %v2510_v10 = vadd.f32 1e-05, %v2478_v9 }
 0x418   : > { %v2526_v54 = vmul.f32 %v4053_v48, %v2509_v3  ;;  %vm2532_vm0 = vweird.f32 %v4053_v48 }
 0x419   : > { %v2354_v30 = vpop.xlane.xlu2 %2353  ;;  %4054 = vrsqrt.f32 %v2510_v10  ;;  %vm2533_vm2 = vmor %vm2531_vm1, %vm2532_vm0  ;;  %vm2541_vm4 = vweird.f32 %v2510_v10 }
 0x41a   : > { %v5313_v8 = vmul.f32 0.03125, %v2354_v30  ;;  %v2527_v11 = vmul.f32 %v4053_v48, %v2526_v54 }
 0x41b   : > { %v2418_v37 = vpop.xlane.xlu1 %2417 }
 0x41c   : > { %v2463_v34 = vmul.f32 %v5313_v8, %v5313_v8  ;;  %v2447_v32 = vmul.f32 0.03125, %v2418_v37  ;;  %v2528_v56 = vmul.f32 0.5, %v2527_v11 }
 0x41e   : > { %v2479_v50 = vsub.f32 %v2447_v32, %v2463_v34  ;;  %v2529_v25 = vsub.f32 1.5, %v2528_v56 }
 0x41f   : > { %v4055_v39 = vpop.eup %4054 }
 0x420   : > { %v2511_v28 = vadd.f32 1e-05, %v2479_v50  ;;  %v2530_v51 = vmul.f32 %v4053_v48, %v2529_v25  ;;  %v2536_v1 = vmul.f32 %v4055_v39, %v2510_v10  ;;  %vm2542_vm3 = vweird.f32 %v4055_v39 }
 0x421   : > { %v2356_v43 = vpop.xlane.xlu0 %2355  ;;  %vm2543_vm5 = vmor %vm2541_vm4, %vm2542_vm3 }
 0x422   : > { %4056 = vrsqrt.f32 %v2511_v28  ;;  %v5317_v49 = vmul.f32 0.03125, %v2356_v43  ;;  %v2537_v17 = vmul.f32 %v4055_v39, %v2536_v1  ;;  %v2534_v63 = vsel %vm2533_vm2, %v4053_v48, %v2530_v51 }
 0x423   : > { %v2420_v4 = vpop.xlane.xlu2 %2419  ;;  %v2685_v23 = vmul.f32 %v2534_v63, %v2493_v55  ;;  %vm2551_vm7 = vweird.f32 %v2511_v28  ;;  %v2495_v1 = vsub.f32 %v5206_v62, %v5313_v8 }
 0x424   : > { %v2464_v5 = vmul.f32 %v5317_v49, %v5317_v49  ;;  %v2448_v13 = vmul.f32 0.03125, %v2420_v4  ;;  %v2538_v52 = vmul.f32 0.5, %v2537_v17  ;;  %v2496_v63 = vsub.f32 %v5212_v44, %v5317_v49 }
 0x425   : > { %v2705_v3 = vmul.f32 %v5325_v46, %v2685_v23 }
 0x426   : > { %v2480_v60 = vsub.f32 %v2448_v13, %v2464_v5  ;;  %v2539_v6 = vsub.f32 1.5, %v2538_v52 }
 0x427   : > { %v2725_v9 = vadd.f32 %v5334_v12, %v2705_v3 }
 0x428   : > { %v4057_v16 = vpop.eup %4056  ;;  %v2512_v21 = vadd.f32 1e-05, %v2480_v60  ;;  %v2540_v15 = vmul.f32 %v4055_v39, %v2539_v6 }
 0x429   : > { %v2546_v2 = vmul.f32 %v4057_v16, %v2511_v28  ;;  %v2358_v26 = vpop.xlane.xlu0 %2357  ;;  %vm2552_vm6 = vweird.f32 %v4057_v16 }
 0x42a   : > { %4058 = vrsqrt.f32 %v2512_v21  ;;  %v2544_v7 = vsel %vm2543_vm5, %v4055_v39, %v2540_v15  ;;  %v5328_v20 = vmul.f32 0.03125, %v2358_v26  ;;  %vm2553_vm8 = vmor %vm2551_vm7, %vm2552_vm6  ;;  %vm2561_vm10 = vweird.f32 %v2512_v21 }
 0x42b   : > { %v2547_v33 = vmul.f32 %v4057_v16, %v2546_v2  ;;  %v2422_v0 = vpop.xlane.xlu2 %2421  ;;  %v2686_v59 = vmul.f32 %v2544_v7, %v2494_v19 }
 0x42c   : > { %v2465_v24 = vmul.f32 %v5328_v20, %v5328_v20  ;;  %v2449_v40 = vmul.f32 0.03125, %v2422_v0 }
 0x42d   : > { %v2548_v18 = vmul.f32 0.5, %v2547_v33  ;;  %v2706_v29 = vmul.f32 %v5325_v46, %v2686_v59 }
 0x42e   : > { %v2481_v47 = vsub.f32 %v2449_v40, %v2465_v24 }
 0x42f   : > { %v2549_v42 = vsub.f32 1.5, %v2548_v18  ;;  %v2726_v48 = vadd.f32 %v5334_v12, %v2706_v29 }
 0x430   : > { %v4059_v57 = vpop.eup %4058  ;;  %v2513_v30 = vadd.f32 1e-05, %v2481_v47 }
 0x431   : > { %v2550_v10 = vmul.f32 %v4057_v16, %v2549_v42  ;;  %v2556_v54 = vmul.f32 %v4059_v57, %v2512_v21  ;;  %v2360_v11 = vpop.xlane.xlu1 %2359  ;;  %v2757_v37 = vpack.c.bf16 %v2726_v48, %v2725_v9  ;;  %vm2562_vm9 = vweird.f32 %v4059_v57 }
 0x432   : > { %4060 = vrsqrt.f32 %v2513_v30  ;;  %v5341_v32 = vmul.f32 0.03125, %v2360_v11  ;;  %vm2563_vm11 = vmor %vm2561_vm10, %vm2562_vm9  ;;  %vm2571_vm13 = vweird.f32 %v2513_v30 }
 0x433   : > { %v2557_v34 = vmul.f32 %v4059_v57, %v2556_v54  ;;  %v2424_v56 = vpop.xlane.xlu0 %2423  ;;  %2825 = vmatmul.bf16.vlgmr.msrb.gmra.mxu1 %v2757_v37  ;;  %v2554_v51 = vsel %vm2553_vm8, %v4057_v16, %v2550_v10  ;;  %v2497_v10 = vsub.f32 %v5218_v58, %v5328_v20 }
 0x434   : > { %v2466_v25 = vmul.f32 %v5341_v32, %v5341_v32  ;;  %v2450_v39 = vmul.f32 0.03125, %v2424_v56  ;;  %v2687_v28 = vmul.f32 %v2554_v51, %v2495_v1 }
 0x435   : > { %v2558_v50 = vmul.f32 0.5, %v2557_v34 }
 0x436   : > { %v2482_v17 = vsub.f32 %v2450_v39, %v2466_v25  ;;  %v2707_v23 = vmul.f32 %v5325_v46, %v2687_v28  ;;  %v2498_v39 = vsub.f32 %v5227_v31, %v5341_v32 }
 0x437   : > { %v2559_v43 = vsub.f32 1.5, %v2558_v50 }
 0x438   : > { %v4061_v4 = vpop.eup %4060  ;;  %v2514_v13 = vadd.f32 1e-05, %v2482_v17  ;;  %v2727_v26 = vadd.f32 %v5334_v12, %v2707_v23 }
 0x439   : > { %v2560_v5 = vmul.f32 %v4059_v57, %v2559_v43  ;;  %v2566_v52 = vmul.f32 %v4061_v4, %v2513_v30  ;;  %v2362_v55 = vpop.xlane.xlu1 %2361  ;;  %vm2572_vm12 = vweird.f32 %v4061_v4 }
 0x43a   : > { %4062 = vrsqrt.f32 %v2514_v13  ;;  %v5349_v60 = vmul.f32 0.03125, %v2362_v55  ;;  %vm2573_vm14 = vmor %vm2571_vm13, %vm2572_vm12  ;;  %vm2581_vm0 = vweird.f32 %v2514_v13 }
 0x43b   : > { %v2564_v6 = vsel %vm2563_vm11, %v4059_v57, %v2560_v5  ;;  %v2567_v16 = vmul.f32 %v4061_v4, %v2566_v52  ;;  %v2426_v62 = vpop.xlane.xlu0 %2425 }
 0x43c   : > { %v2688_v8 = vmul.f32 %v2564_v6, %v2496_v63  ;;  %v2467_v15 = vmul.f32 %v5349_v60, %v5349_v60  ;;  %v2451_v21 = vmul.f32 0.03125, %v2426_v62 }
 0x43d   : > { %v2568_v2 = vmul.f32 0.5, %v2567_v16 }
 0x43e   : > { %v2708_v19 = vmul.f32 %v5325_v46, %v2688_v8  ;;  %v2483_v44 = vsub.f32 %v2451_v21, %v2467_v15 }
 0x43f   : > { %v2569_v49 = vsub.f32 1.5, %v2568_v2 }
 0x440   : > { %v2728_v7 = vadd.f32 %v5334_v12, %v2708_v19  ;;  %v4063_v33 = vpop.eup %4062  ;;  %v2515_v0 = vadd.f32 1e-05, %v2483_v44 }
 0x441   : > { %v2570_v59 = vmul.f32 %v4061_v4, %v2569_v49  ;;  %v2576_v3 = vmul.f32 %v4063_v33, %v2514_v13  ;;  %v2364_v18 = vpop.xlane.xlu2 %2363  ;;  %vm2582_vm15 = vweird.f32 %v4063_v33 }
 0x442   : > { %v2758_v24 = vpack.c.bf16 %v2728_v7, %v2727_v26  ;;  %4064 = vrsqrt.f32 %v2515_v0  ;;  %v5357_v40 = vmul.f32 0.03125, %v2364_v18  ;;  %vm2583_vm1 = vmor %vm2581_vm0, %vm2582_vm15  ;;  %vm2591_vm3 = vweird.f32 %v2515_v0 }
 0x443   : > { %v2577_v29 = vmul.f32 %v4063_v33, %v2576_v3  ;;  %v2428_v42 = vpop.xlane.xlu1 %2427  ;;  %v2574_v48 = vsel %vm2573_vm14, %v4061_v4, %v2570_v59  ;;  %v2499_v7 = vsub.f32 %v5236_v36, %v5349_v60 }
 0x444   : > { %2830 = vmatmul.bf16.gmra.mxu1 %v2758_v24  ;;  %v2468_v47 = vmul.f32 %v5357_v40, %v5357_v40  ;;  %v2452_v57 = vmul.f32 0.03125, %v2428_v42  ;;  %v2689_v56 = vmul.f32 %v2574_v48, %v2497_v10 }
 0x445   : > { %v2578_v9 = vmul.f32 0.5, %v2577_v29 }
 0x446   : > { %v2484_v54 = vsub.f32 %v2452_v57, %v2468_v47  ;;  %v2709_v4 = vmul.f32 %v5325_v46, %v2689_v56  ;;  %v2500_v47 = vsub.f32 %v5242_v61, %v5357_v40 }
 0x447   : > { %v2579_v11 = vsub.f32 1.5, %v2578_v9 }
 0x448   : > { %v4065_v37 = vpop.eup %4064  ;;  %v2516_v34 = vadd.f32 1e-05, %v2484_v54  ;;  %v2729_v55 = vadd.f32 %v5334_v12, %v2709_v4 }
 0x449   : > { %v2580_v30 = vmul.f32 %v4063_v33, %v2579_v11  ;;  %v2586_v50 = vmul.f32 %v4065_v37, %v2515_v0  ;;  %v2366_v25 = vpop.xlane.xlu2 %2365  ;;  %vm2592_vm2 = vweird.f32 %v4065_v37 }
 0x44a   : > { %4066 = vrsqrt.f32 %v2516_v34  ;;  %v5365_v51 = vmul.f32 0.03125, %v2366_v25  ;;  %vm2593_vm4 = vmor %vm2591_vm3, %vm2592_vm2  ;;  %vm2601_vm6 = vweird.f32 %v2516_v34 }
 0x44b   : > { %v2587_v1 = vmul.f32 %v4065_v37, %v2586_v50  ;;  %v2430_v43 = vpop.xlane.xlu1 %2429  ;;  %v2584_v58 = vsel %vm2583_vm1, %v4063_v33, %v2580_v30 }
 0x44c   : > { %v2469_v20 = vmul.f32 %v5365_v51, %v5365_v51  ;;  %v2453_v17 = vmul.f32 0.03125, %v2430_v43  ;;  %v2690_v28 = vmul.f32 %v2584_v58, %v2498_v39 }
 0x44d   : > { %v2588_v5 = vmul.f32 0.5, %v2587_v1 }
 0x44e   : > { %v2485_v13 = vsub.f32 %v2453_v17, %v2469_v20  ;;  %v2710_v63 = vmul.f32 %v5325_v46, %v2690_v28 }
 0x44f   : > { %v2589_v52 = vsub.f32 1.5, %v2588_v5 }
 0x450   : > { %v4067_v31 = vpop.eup %4066  ;;  %v2517_v32 = vadd.f32 1e-05, %v2485_v13  ;;  %v2730_v6 = vadd.f32 %v5334_v12, %v2710_v63 }
 0x451   : > { %v2590_v16 = vmul.f32 %v4065_v37, %v2589_v52  ;;  %v2596_v62 = vmul.f32 %v4067_v31, %v2516_v34  ;;  %v2368_v8 = vpop.xlane.xlu0 %2367  ;;  %vm2602_vm5 = vweird.f32 %v4067_v31  ;;  %v2501_v52 = vsub.f32 %v5251_v27, %v5365_v51 }
 0x452   : > { %4068 = vrsqrt.f32 %v2517_v32  ;;  %v5373_v23 = vmul.f32 0.03125, %v2368_v8  ;;  %v2759_v15 = vpack.c.bf16 %v2730_v6, %v2729_v55  ;;  %vm2603_vm7 = vmor %vm2601_vm6, %vm2602_vm5  ;;  %vm2611_vm9 = vweird.f32 %v2517_v32 }
 0x453   : > { %v2597_v21 = vmul.f32 %v4067_v31, %v2596_v62  ;;  %v2432_v2 = vpop.xlane.xlu2 %2431  ;;  %v2594_v26 = vsel %vm2593_vm4, %v4065_v37, %v2590_v16 }
 0x454   : > { %v2470_v19 = vmul.f32 %v5373_v23, %v5373_v23  ;;  %v2454_v44 = vmul.f32 0.03125, %v2432_v2  ;;  %2835 = vmatmul.bf16.gmra.mxu1 %v2759_v15  ;;  %v2691_v24 = vmul.f32 %v2594_v26, %v2499_v7 }
 0x455   : > { %v2598_v49 = vmul.f32 0.5, %v2597_v21  ;;  %v2502_v21 = vsub.f32 %v5260_v45, %v5373_v23 }
 0x456   : > { %v2486_v33 = vsub.f32 %v2454_v44, %v2470_v19  ;;  %v2711_v11 = vmul.f32 %v5325_v46, %v2691_v24 }
 0x457   : > { %v2599_v59 = vsub.f32 1.5, %v2598_v49 }
 0x458   : > { %v4069_v3 = vpop.eup %4068  ;;  %v2518_v18 = vadd.f32 1e-05, %v2486_v33  ;;  %v2731_v50 = vadd.f32 %v5334_v12, %v2711_v11 }
 0x459   : > { %v2600_v0 = vmul.f32 %v4067_v31, %v2599_v59  ;;  %v2606_v29 = vmul.f32 %v4069_v3, %v2517_v32  ;;  %v2370_v42 = vpop.xlane.xlu0 %2369  ;;  %vm2612_vm8 = vweird.f32 %v4069_v3 }
 0x45a   : > { %4070 = vrsqrt.f32 %v2518_v18  ;;  %v5381_v57 = vmul.f32 0.03125, %v2370_v42  ;;  %vm2613_vm10 = vmor %vm2611_vm9, %vm2612_vm8  ;;  %vm2621_vm12 = vweird.f32 %v2518_v18 }
 0x45b   : > { %v2607_v9 = vmul.f32 %v4069_v3, %v2606_v29  ;;  %v2434_v48 = vpop.xlane.xlu2 %2433  ;;  %v2604_v36 = vsel %vm2603_vm7, %v4067_v31, %v2600_v0 }
 0x45c   : > { %v2471_v60 = vmul.f32 %v5381_v57, %v5381_v57  ;;  %v2455_v10 = vmul.f32 0.03125, %v2434_v48  ;;  %v2692_v54 = vmul.f32 %v2604_v36, %v2500_v47 }
 0x45d   : > { %v2608_v37 = vmul.f32 0.5, %v2607_v9 }
 0x45e   : > { %v2487_v34 = vsub.f32 %v2455_v10, %v2471_v60  ;;  %v2712_v56 = vmul.f32 %v5325_v46, %v2692_v54 }
 0x45f   : > { %v2609_v30 = vsub.f32 1.5, %v2608_v37 }
 0x460   : > { %v4071_v61 = vpop.eup %4070  ;;  %v2519_v40 = vadd.f32 1e-05, %v2487_v34  ;;  %v2732_v25 = vadd.f32 %v5334_v12, %v2712_v56  ;;  %v2503_v34 = vsub.f32 %v5266_v53, %v5381_v57 }
 0x461   : > { %v2610_v39 = vmul.f32 %v4069_v3, %v2609_v30  ;;  %v2616_v1 = vmul.f32 %v4071_v61, %v2518_v18  ;;  %v2372_v43 = vpop.xlane.xlu1 %2371  ;;  %vm2622_vm11 = vweird.f32 %v4071_v61 }
 0x462   : > { %4072 = vrsqrt.f32 %v2519_v40  ;;  %v5389_v58 = vmul.f32 0.03125, %v2372_v43  ;;  %v2760_v20 = vpack.c.bf16 %v2732_v25, %v2731_v50  ;;  %vm2623_vm13 = vmor %vm2621_vm12, %vm2622_vm11  ;;  %vm2631_vm15 = vweird.f32 %v2519_v40 }
 0x463   : > { %v2617_v17 = vmul.f32 %v4071_v61, %v2616_v1  ;;  %v2436_v28 = vpop.xlane.xlu0 %2435  ;;  %v2614_v63 = vsel %vm2613_vm10, %v4069_v3, %v2610_v39 }
 0x464   : > { %v2472_v4 = vmul.f32 %v5389_v58, %v5389_v58  ;;  %v2456_v5 = vmul.f32 0.03125, %v2436_v28  ;;  %2840 = vmatmul.bf16.gmra.mxu1 %v2760_v20  ;;  %v2693_v62 = vmul.f32 %v2614_v63, %v2501_v52  ;;  %v2504_v43 = vsub.f32 %v5275_v22, %v5389_v58 }
 0x465   : > { %v2618_v13 = vmul.f32 0.5, %v2617_v17 }
 0x466   : > { %v2488_v31 = vsub.f32 %v2456_v5, %v2472_v4  ;;  %v2713_v7 = vmul.f32 %v5325_v46, %v2693_v62 }
 0x467   : > { %v2619_v55 = vsub.f32 1.5, %v2618_v13 }
 0x468   : > { %v4073_v6 = vpop.eup %4072  ;;  %v2520_v16 = vadd.f32 1e-05, %v2488_v31  ;;  %v2733_v24 = vadd.f32 %v5334_v12, %v2713_v7 }
 0x469   : > { %v2620_v32 = vmul.f32 %v4071_v61, %v2619_v55  ;;  %v2626_v8 = vmul.f32 %v4073_v6, %v2519_v40  ;;  %v2374_v15 = vpop.xlane.xlu1 %2373  ;;  %vm2632_vm14 = vweird.f32 %v4073_v6 }
 0x46a   : > { %4074 = vrsqrt.f32 %v2520_v16  ;;  %v5397_v2 = vmul.f32 0.03125, %v2374_v15  ;;  %vm2633_vm0 = vmor %vm2631_vm15, %vm2632_vm14  ;;  %vm2641_vm2 = vweird.f32 %v2520_v16 }
 0x46b   : > { %v2627_v19 = vmul.f32 %v4073_v6, %v2626_v8  ;;  %v2438_v44 = vpop.xlane.xlu0 %2437  ;;  %v2624_v27 = vsel %vm2623_vm13, %v4071_v61, %v2620_v32 }
 0x46c   : > { %v2473_v51 = vmul.f32 %v5397_v2, %v5397_v2  ;;  %v2457_v49 = vmul.f32 0.03125, %v2438_v44  ;;  %v2694_v26 = vmul.f32 %v2624_v27, %v2502_v21  ;;  %v2505_v7 = vsub.f32 %v5281_v14, %v5397_v2 }
 0x46d   : > { %v2628_v33 = vmul.f32 0.5, %v2627_v19 }
 0x46e   : > { %v2489_v59 = vsub.f32 %v2457_v49, %v2473_v51  ;;  %v2714_v3 = vmul.f32 %v5325_v46, %v2694_v26 }
 0x46f   : > { %v2629_v18 = vsub.f32 1.5, %v2628_v33 }
 0x470   : > { %v4075_v45 = vpop.eup %4074  ;;  %v2521_v23 = vadd.f32 1e-05, %v2489_v59  ;;  %v2734_v0 = vadd.f32 %v5334_v12, %v2714_v3 }
 0x471   : > { %v2630_v29 = vmul.f32 %v4073_v6, %v2629_v18  ;;  %v2636_v42 = vmul.f32 %v4075_v45, %v2520_v16  ;;  %v2376_v47 = vpop.xlane.xlu2 %2375  ;;  %vm2642_vm1 = vweird.f32 %v4075_v45 }
 0x472   : > { %4076 = vrsqrt.f32 %v2521_v23  ;;  %v5405_v9 = vmul.f32 0.03125, %v2376_v47  ;;  %v2761_v48 = vpack.c.bf16 %v2734_v0, %v2733_v24  ;;  %vm2643_vm3 = vmor %vm2641_vm2, %vm2642_vm1  ;;  %vm2651_vm5 = vweird.f32 %v2521_v23 }
 0x473   : > { %v2637_v36 = vmul.f32 %v4075_v45, %v2636_v42  ;;  %v2440_v60 = vpop.xlane.xlu1 %2439  ;;  %v2634_v37 = vsel %vm2633_vm0, %v4073_v6, %v2630_v29 }
 0x474   : > { %v2474_v10 = vmul.f32 %v5405_v9, %v5405_v9  ;;  %v2458_v54 = vmul.f32 0.03125, %v2440_v60  ;;  %2845 = vmatmul.bf16.gmra.mxu1 %v2761_v48  ;;  %v2695_v25 = vmul.f32 %v2634_v37, %v2503_v34  ;;  %v2506_v0 = vsub.f32 %v5287_v35, %v5405_v9 }
 0x475   : > { %v2638_v11 = vmul.f32 0.5, %v2637_v36 }
 0x476   : > { %v2490_v56 = vsub.f32 %v2458_v54, %v2474_v10  ;;  %v2715_v13 = vmul.f32 %v5325_v46, %v2695_v25 }
 0x477   : > { %v2639_v30 = vsub.f32 1.5, %v2638_v11 }
 0x478   : > { %v4077_v61 = vpop.eup %4076  ;;  %v2522_v50 = vadd.f32 1e-05, %v2490_v56  ;;  %v2735_v6 = vadd.f32 %v5334_v12, %v2715_v13 }
 0x479   : > { %v2640_v40 = vmul.f32 %v4075_v45, %v2639_v30  ;;  %v2646_v39 = vmul.f32 %v4077_v61, %v2521_v23  ;;  %v2378_v1 = vpop.xlane.xlu2 %2377  ;;  %vm2652_vm4 = vweird.f32 %v4077_v61 }
 0x47a   : > { %4078 = vrsqrt.f32 %v2522_v50  ;;  %v5413_v20 = vmul.f32 0.03125, %v2378_v1  ;;  %vm2653_vm6 = vmor %vm2651_vm5, %vm2652_vm4  ;;  %vm2661_vm8 = vweird.f32 %v2522_v50 }
 0x47b   : > { %v2647_v17 = vmul.f32 %v4077_v61, %v2646_v39  ;;  %v2442_v28 = vpop.xlane.xlu1 %2441  ;;  %v2644_v53 = vsel %vm2643_vm3, %v4075_v45, %v2640_v40 }
 0x47c   : > { %v2475_v57 = vmul.f32 %v5413_v20, %v5413_v20  ;;  %v2459_v4 = vmul.f32 0.03125, %v2442_v28  ;;  %v2696_v5 = vmul.f32 %v2644_v53, %v2504_v43  ;;  %v2507_v30 = vsub.f32 %v5296_v38, %v5413_v20  ;;  %v5439_v38 = vld [vmem:[%s5721_s17] ss:$0 sm:$0xff] }
 0x47d   : > { %v2648_v63 = vmul.f32 0.5, %v2647_v17 }
 0x47e   : > { %v2491_v52 = vsub.f32 %v2459_v4, %v2475_v57  ;;  %v2716_v31 = vmul.f32 %v5325_v46, %v2696_v5 }
 0x47f   : > { %v2649_v55 = vsub.f32 1.5, %v2648_v63 }
 0x480   : > { %v4079_v22 = vpop.eup %4078  ;;  %v2523_v58 = vadd.f32 1e-05, %v2491_v52  ;;  %v2736_v16 = vadd.f32 %v5334_v12, %v2716_v31 }
 0x481   : > { %v2650_v62 = vmul.f32 %v4077_v61, %v2649_v55  ;;  %v2656_v32 = vmul.f32 %v4079_v22, %v2522_v50  ;;  %v2380_v8 = vpop.xlane.xlu0 %2379  ;;  %vm2662_vm7 = vweird.f32 %v4079_v22 }
 0x482   : > { %4080 = vrsqrt.f32 %v2523_v58  ;;  %v2396_v15 = vmul.f32 0.03125, %v2380_v8  ;;  %v2762_v21 = vpack.c.bf16 %v2736_v16, %v2735_v6  ;;  %vm2663_vm9 = vmor %vm2661_vm8, %vm2662_vm7  ;;  %vm2671_vm11 = vweird.f32 %v2523_v58 }
 0x483   : > { %v2657_v19 = vmul.f32 %v4079_v22, %v2656_v32  ;;  %v2444_v44 = vpop.xlane.xlu2 %2443  ;;  %v2654_v49 = vsel %vm2653_vm6, %v4077_v61, %v2650_v62 }
 0x484   : > { %v2476_v27 = vmul.f32 %v2396_v15, %v2396_v15  ;;  %v2460_v51 = vmul.f32 0.03125, %v2444_v44  ;;  %2850 = vmatmul.bf16.gmra.mxu1 %v2762_v21  ;;  %v2697_v45 = vmul.f32 %v2654_v49, %v2505_v7  ;;  %v2508_v40 = vsub.f32 %v5302_v41, %v2396_v15  ;;  %v3863_v21 = vld [vmem:[%s5724_s20 + $0x38] sm:$0xff] }
 0x485   : > { %v2658_v26 = vmul.f32 0.5, %v2657_v19  ;;  %3350 = vmatpush.bf16.msrb.mxu2 %v3863_v21  ;;  %v3857_v21 = vld [vmem:[%s5724_s20 + $0x8] sm:$0xff] }
 0x486   : > { %v2492_v33 = vsub.f32 %v2460_v51, %v2476_v27  ;;  %v2717_v48 = vmul.f32 %v5325_v46, %v2697_v45 }
 0x487   : > { %v2659_v59 = vsub.f32 1.5, %v2658_v26  ;;  %v3862_v26 = vld [vmem:[%s5724_s20 + $0x30] sm:$0xff] }
 0x488   : > { %v4081_v3 = vpop.eup %4080  ;;  %v2524_v18 = vadd.f32 1e-05, %v2492_v33  ;;  %v2737_v10 = vadd.f32 %v5334_v12, %v2717_v48 }
 0x489   : > { %v2660_v24 = vmul.f32 %v4079_v22, %v2659_v59  ;;  %v2666_v23 = vmul.f32 %v4081_v3, %v2523_v58  ;;  %vm2672_vm10 = vweird.f32 %v4081_v3  ;;  %3351 = vmatpush.bf16.msrb.mxu2 %v3862_v26  ;;  %v3856_v26 = vld [vmem:[%s5724_s20] sm:$0xff] }
 0x48a   : > { %4082 = vrsqrt.f32 %v2524_v18  ;;  %vm2673_vm12 = vmor %vm2671_vm11, %vm2672_vm10  ;;  %vm2681_vm14 = vweird.f32 %v2524_v18 }
 0x48b   : > { %v2664_v29 = vsel %vm2663_vm9, %v4079_v22, %v2660_v24  ;;  %v2667_v42 = vmul.f32 %v4081_v3, %v2666_v23  ;;  %v3861_v23 = vld [vmem:[%s5724_s20 + $0x28] sm:$0xff] }
 0x48c   : > { %v2698_v47 = vmul.f32 %v2664_v29, %v2506_v0 }
 0x48d   : > { %v2668_v14 = vmul.f32 0.5, %v2667_v42  ;;  %3352 = vmatpush.bf16.msrb.mxu2 %v3861_v23 }
 0x48e   : > { %v2718_v2 = vmul.f32 %v5325_v46, %v2698_v47 }
 0x48f   : > { %v2669_v36 = vsub.f32 1.5, %v2668_v14  ;;  %v3860_v14 = vld [vmem:[%s5724_s20 + $0x20] sm:$0xff] }
 0x490   : > { %v4083_v60 = vpop.eup %4082  ;;  %v2738_v54 = vadd.f32 %v5334_v12, %v2718_v2 }
 0x491   : > { %v2670_v11 = vmul.f32 %v4081_v3, %v2669_v36  ;;  %v2676_v37 = vmul.f32 %v4083_v60, %v2524_v18  ;;  %vm2682_vm13 = vweird.f32 %v4083_v60  ;;  %3353 = vmatpush.bf16.msrb.mxu2 %v3860_v14 }
 0x492   : > { %v2763_v35 = vpack.c.bf16 %v2738_v54, %v2737_v10  ;;  %vm2683_vm15 = vmor %vm2681_vm14, %vm2682_vm13 }
 0x493   : > { %v2677_v9 = vmul.f32 %v4083_v60, %v2676_v37  ;;  %v2674_v34 = vsel %vm2673_vm12, %v4081_v3, %v2670_v11 }
 0x494   : > { %2855 = vmatmul.bf16.gmra.mxu1 %v2763_v35  ;;  %v2699_v50 = vmul.f32 %v2674_v34, %v2507_v30  ;;  %v3859_v35 = vld [vmem:[%s5724_s20 + $0x18] sm:$0xff] }
 0x495   : > { %v2678_v56 = vmul.f32 0.5, %v2677_v9  ;;  %3354 = vmatpush.bf16.msrb.mxu2 %v3859_v35 }
 0x496   : > { %v2719_v43 = vmul.f32 %v5325_v46, %v2699_v50 }
 0x497   : > { %v2679_v61 = vsub.f32 1.5, %v2678_v56 }
 0x498   : > { %v2739_v28 = vadd.f32 %v5334_v12, %v2719_v43 }
 0x499   : > { %v2680_v25 = vmul.f32 %v4083_v60, %v2679_v61 }
 0x49b   : > { %v2684_v39 = vsel %vm2683_vm15, %v4083_v60, %v2680_v25 }
 0x49c   : > { %v2700_v1 = vmul.f32 %v2684_v39, %v2508_v40 }
 0x49e   : > { %v2720_v17 = vmul.f32 %v5325_v46, %v2700_v1 }
 0x4a0   : > { %v2740_v53 = vadd.f32 %v5334_v12, %v2720_v17 }
 0x4a2   : > { %v2764_v57 = vpack.c.bf16 %v2740_v53, %v2739_v28 }
 0x4a4   : > { %2860 = vmatmul.bf16.gmra.mxu1 %v2764_v57 }
 0x4b0   : > { %v2826_v20 = vpop.f32.mrf.mxu1 }
 0x4b1   : > { %v2827_v41 = vadd.f32 %v5439_v38, %v2826_v20  ;;  %v3858_v20 = vld [vmem:[%s5724_s20 + $0x10] sm:$0xff] }
 0x4b2   : > { %3355 = vmatpush.bf16.msrb.mxu2 %v3858_v20 }
 0x4b3   : > { %v5442_v4 = vmax.f32 %v2827_v41, 0.0 }
 0x4b5   : > { %2882 = vadd.xlane.f32.xlu0 %v5442_v4  ;;  %v2930_v46 = vmul.f32 %v5442_v4, %v5442_v4 }
 0x4b6   : > { %3356 = vmatpush.bf16.msrb.mxu2 %v3857_v21  ;;  %v5582_v21 = vld [vmem:[%s5723_s19] ss:$0 sm:$0xff] }
 0x4b7   : > { %2946 = vadd.xlane.f32.xlu2 %v2930_v46 }
 0x4b8   : > { %v2828_v5 = vpop.f32.mrf.mxu1 }
 0x4b9   : > { %v2829_v12 = vadd.f32 %v5439_v38, %v2828_v5 }
 0x4ba   : > { %3357 = vmatpush.bf16.msrb.mxu2 %v3856_v26 }
 0x4bb   : > { %v5448_v13 = vmax.f32 %v2829_v12, 0.0 }
 0x4bd   : > { %2884 = vadd.xlane.f32.xlu1 %v5448_v13  ;;  %v2931_v63 = vmul.f32 %v5448_v13, %v5448_v13 }
 0x4bf   : > { %2948 = vadd.xlane.f32.xlu0 %v2931_v63 }
 0x4c1   : > { %v2831_v52 = vpop.f32.mrf.mxu1 }
 0x4c2   : > { %v2832_v31 = vadd.f32 %v5439_v38, %v2831_v52 }
 0x4c4   : > { %v5454_v55 = vmax.f32 %v2832_v31, 0.0 }
 0x4c6   : > { %2886 = vadd.xlane.f32.xlu1 %v5454_v55  ;;  %v2932_v22 = vmul.f32 %v5454_v55, %v5454_v55 }
 0x4c8   : > { %2950 = vadd.xlane.f32.xlu0 %v2932_v22 }
 0x4c9   : > { %v2833_v58 = vpop.f32.mrf.mxu1 }
 0x4ca   : > { %v2834_v6 = vadd.f32 %v5439_v38, %v2833_v58 }
 0x4cc   : > { %v5460_v16 = vmax.f32 %v2834_v6, 0.0 }
 0x4ce   : > { %2888 = vadd.xlane.f32.xlu2 %v5460_v16  ;;  %v2933_v62 = vmul.f32 %v5460_v16, %v5460_v16 }
 0x4d0   : > { %2952 = vadd.xlane.f32.xlu1 %v2933_v62 }
 0x4d1   : > { %v2836_v32 = vpop.f32.mrf.mxu1 }
 0x4d2   : > { %v2837_v8 = vadd.f32 %v5439_v38, %v2836_v32 }
 0x4d4   : > { %v5466_v15 = vmax.f32 %v2837_v8, 0.0 }
 0x4d6   : > { %2890 = vadd.xlane.f32.xlu2 %v5466_v15  ;;  %v2934_v19 = vmul.f32 %v5466_v15, %v5466_v15 }
 0x4d8   : > { %2954 = vadd.xlane.f32.xlu1 %v2934_v19 }
 0x4d9   : > { %v2838_v44 = vpop.f32.mrf.mxu1 }
 0x4da   : > { %v2839_v27 = vadd.f32 %v5439_v38, %v2838_v44 }
 0x4dc   : > { %v5475_v51 = vmax.f32 %v2839_v27, 0.0 }
 0x4de   : > { %2892 = vadd.xlane.f32.xlu0 %v5475_v51  ;;  %v2935_v49 = vmul.f32 %v5475_v51, %v5475_v51 }
 0x4e0   : > { %2956 = vadd.xlane.f32.xlu2 %v2935_v49 }
 0x4e1   : > { %v2841_v7 = vpop.f32.mrf.mxu1 }
 0x4e2   : > { %v2842_v33 = vadd.f32 %v5439_v38, %v2841_v7 }
 0x4e4   : > { %v5484_v59 = vmax.f32 %v2842_v33, 0.0 }
 0x4e6   : > { %2894 = vadd.xlane.f32.xlu0 %v5484_v59  ;;  %v2936_v3 = vmul.f32 %v5484_v59, %v5484_v59 }
 0x4e8   : > { %2958 = vadd.xlane.f32.xlu2 %v2936_v3 }
 0x4e9   : > { %v2843_v18 = vpop.f32.mrf.mxu1 }
 0x4ea   : > { %v2844_v45 = vadd.f32 %v5439_v38, %v2843_v18 }
 0x4ec   : > { %v5490_v24 = vmax.f32 %v2844_v45, 0.0 }
 0x4ee   : > { %2896 = vadd.xlane.f32.xlu1 %v5490_v24  ;;  %v2937_v0 = vmul.f32 %v5490_v24, %v5490_v24 }
 0x4f0   : > { %2960 = vadd.xlane.f32.xlu0 %v2937_v0 }
 0x4f1   : > { %v2846_v29 = vpop.f32.mrf.mxu1 }
 0x4f2   : > { %v2847_v42 = vadd.f32 %v5439_v38, %v2846_v29 }
 0x4f4   : > { %v5499_v47 = vmax.f32 %v2847_v42, 0.0 }
 0x4f6   : > { %2898 = vadd.xlane.f32.xlu1 %v5499_v47  ;;  %v2938_v48 = vmul.f32 %v5499_v47, %v5499_v47 }
 0x4f8   : > { %2962 = vadd.xlane.f32.xlu0 %v2938_v48 }
 0x4f9   : > { %v2848_v2 = vpop.f32.mrf.mxu1 }
 0x4fa   : > { %v2849_v36 = vadd.f32 %v5439_v38, %v2848_v2 }
 0x4fc   : > { %v5508_v60 = vmax.f32 %v2849_v36, 0.0 }
 0x4fe   : > { %2900 = vadd.xlane.f32.xlu2 %v5508_v60  ;;  %v2939_v10 = vmul.f32 %v5508_v60, %v5508_v60 }
 0x500   : > { %2964 = vadd.xlane.f32.xlu1 %v2939_v10 }
 0x501   : > { %v2851_v54 = vpop.f32.mrf.mxu1 }
 0x502   : > { %v2852_v11 = vadd.f32 %v5439_v38, %v2851_v54 }
 0x504   : > { %v5514_v37 = vmax.f32 %v2852_v11, 0.0 }
 0x506   : > { %2902 = vadd.xlane.f32.xlu2 %v5514_v37  ;;  %v2940_v9 = vmul.f32 %v5514_v37, %v5514_v37 }
 0x508   : > { %2966 = vadd.xlane.f32.xlu1 %v2940_v9 }
 0x509   : > { %v2853_v34 = vpop.f32.mrf.mxu1 }
 0x50a   : > { %v2854_v56 = vadd.f32 %v5439_v38, %v2853_v34 }
 0x50c   : > { %v5523_v30 = vmax.f32 %v2854_v56, 0.0 }
 0x50e   : > { %2904 = vadd.xlane.f32.xlu0 %v5523_v30  ;;  %v2941_v61 = vmul.f32 %v5523_v30, %v5523_v30 }
 0x510   : > { %2968 = vadd.xlane.f32.xlu2 %v2941_v61 }
 0x511   : > { %v2856_v50 = vpop.f32.mrf.mxu1 }
 0x512   : > { %v2857_v25 = vadd.f32 %v5439_v38, %v2856_v50 }
 0x514   : > { %v5529_v40 = vmax.f32 %v2857_v25, 0.0 }
 0x516   : > { %2906 = vadd.xlane.f32.xlu0 %v5529_v40  ;;  %v2942_v39 = vmul.f32 %v5529_v40, %v5529_v40 }
 0x518   : > { %2970 = vadd.xlane.f32.xlu2 %v2942_v39 }
 0x519   : > { %v2858_v1 = vpop.f32.mrf.mxu1 }
 0x51a   : > { %v2859_v43 = vadd.f32 %v5439_v38, %v2858_v1 }
 0x51c   : > { %v5535_v17 = vmax.f32 %v2859_v43, 0.0 }
 0x51e   : > { %2908 = vadd.xlane.f32.xlu1 %v5535_v17  ;;  %v2943_v28 = vmul.f32 %v5535_v17, %v5535_v17 }
 0x520   : > { %2972 = vadd.xlane.f32.xlu0 %v2943_v28 }
 0x521   : > { %v2861_v53 = vpop.f32.mrf.mxu1 }
 0x522   : > { %v2862_v57 = vadd.f32 %v5439_v38, %v2861_v53 }
 0x524   : > { %v5544_v41 = vmax.f32 %v2862_v57, 0.0 }
 0x526   : > { %2910 = vadd.xlane.f32.xlu1 %v5544_v41  ;;  %v2944_v46 = vmul.f32 %v5544_v41, %v5544_v41 }
 0x528   : > { %2974 = vadd.xlane.f32.xlu0 %v2944_v46  ;;  %v2883_v5 = vpop.xlane.xlu0 %2882 }
 0x529   : > { %v2914_v12 = vmul.f32 0.03125, %v2883_v5  ;;  %v2863_v63 = vpop.f32.mrf.mxu1  ;;  %v5573_v5 = vld [vmem:[%s5722_s18] ss:$0 sm:$0xff] }
 0x52a   : > { %v2864_v52 = vadd.f32 %v5439_v38, %v2863_v63  ;;  %v2947_v31 = vpop.xlane.xlu2 %2946 }
 0x52b   : > { %v2994_v22 = vmul.f32 %v2914_v12, %v2914_v12  ;;  %v2978_v58 = vmul.f32 0.03125, %v2947_v31  ;;  %v3026_v43 = vsub.f32 %v5442_v4, %v2914_v12 }
 0x52c   : > { %v5550_v6 = vmax.f32 %v2864_v52, 0.0 }
 0x52d   : > { %v3010_v62 = vsub.f32 %v2978_v58, %v2994_v22 }
 0x52e   : > { %2912 = vadd.xlane.f32.xlu2 %v5550_v6  ;;  %v2945_v32 = vmul.f32 %v5550_v6, %v5550_v6 }
 0x52f   : > { %v3042_v8 = vadd.f32 1e-05, %v3010_v62 }
 0x530   : > { %2976 = vadd.xlane.f32.xlu1 %v2945_v32  ;;  %v2885_v19 = vpop.xlane.xlu1 %2884 }
 0x531   : > { %4084 = vrsqrt.f32 %v3042_v8  ;;  %v2915_v38 = vmul.f32 0.03125, %v2885_v19  ;;  %vm3064_vm1 = vweird.f32 %v3042_v8 }
 0x532   : > { %v2949_v44 = vpop.xlane.xlu0 %2948 }
 0x533   : > { %v2995_v27 = vmul.f32 %v2915_v38, %v2915_v38  ;;  %v2979_v49 = vmul.f32 0.03125, %v2949_v44  ;;  %v3027_v31 = vsub.f32 %v5448_v13, %v2915_v38 }
 0x535   : > { %v3011_v7 = vsub.f32 %v2979_v49, %v2995_v27 }
 0x537   : > { %v4085_v33 = vpop.eup %4084  ;;  %v3043_v3 = vadd.f32 1e-05, %v3011_v7 }
 0x538   : > { %v3059_v18 = vmul.f32 %v4085_v33, %v3042_v8  ;;  %vm3065_vm0 = vweird.f32 %v4085_v33 }
 0x539   : > { %v2887_v45 = vpop.xlane.xlu1 %2886  ;;  %4086 = vrsqrt.f32 %v3043_v3  ;;  %vm3066_vm2 = vmor %vm3064_vm1, %vm3065_vm0  ;;  %vm3074_vm4 = vweird.f32 %v3043_v3 }
 0x53a   : > { %v5561_v23 = vmul.f32 0.03125, %v2887_v45  ;;  %v3060_v0 = vmul.f32 %v4085_v33, %v3059_v18 }
 0x53b   : > { %v2951_v29 = vpop.xlane.xlu0 %2950 }
 0x53c   : > { %v2996_v42 = vmul.f32 %v5561_v23, %v5561_v23  ;;  %v2980_v48 = vmul.f32 0.03125, %v2951_v29  ;;  %v3061_v14 = vmul.f32 0.5, %v3060_v0 }
 0x53e   : > { %v3012_v2 = vsub.f32 %v2980_v48, %v2996_v42  ;;  %v3062_v36 = vsub.f32 1.5, %v3061_v14 }
 0x53f   : > { %v4087_v10 = vpop.eup %4086 }
 0x540   : > { %v3044_v54 = vadd.f32 1e-05, %v3012_v2  ;;  %v3063_v11 = vmul.f32 %v4085_v33, %v3062_v36  ;;  %v3069_v35 = vmul.f32 %v4087_v10, %v3043_v3  ;;  %vm3075_vm3 = vweird.f32 %v4087_v10 }
 0x541   : > { %v2889_v9 = vpop.xlane.xlu2 %2888  ;;  %vm3076_vm5 = vmor %vm3074_vm4, %vm3075_vm3 }
 0x542   : > { %4088 = vrsqrt.f32 %v3044_v54  ;;  %v5565_v34 = vmul.f32 0.03125, %v2889_v9  ;;  %v3070_v56 = vmul.f32 %v4087_v10, %v3069_v35  ;;  %v3067_v39 = vsel %vm3066_vm2, %v4085_v33, %v3063_v11 }
 0x543   : > { %v2953_v61 = vpop.xlane.xlu1 %2952  ;;  %v3218_v46 = vmul.f32 %v3067_v39, %v3026_v43  ;;  %vm3084_vm7 = vweird.f32 %v3044_v54  ;;  %v3028_v35 = vsub.f32 %v5454_v55, %v5561_v23 }
 0x544   : > { %v2997_v50 = vmul.f32 %v5565_v34, %v5565_v34  ;;  %v2981_v25 = vmul.f32 0.03125, %v2953_v61  ;;  %v3071_v1 = vmul.f32 0.5, %v3070_v56  ;;  %v3029_v39 = vsub.f32 %v5460_v16, %v5565_v34 }
 0x545   : > { %v3238_v8 = vmul.f32 %v5573_v5, %v3218_v46 }
 0x546   : > { %v3013_v28 = vsub.f32 %v2981_v25, %v2997_v50  ;;  %v3072_v53 = vsub.f32 1.5, %v3071_v1 }
 0x547   : > { %v3258_v7 = vadd.f32 %v5582_v21, %v3238_v8 }
 0x548   : > { %v4089_v57 = vpop.eup %4088  ;;  %v3045_v20 = vadd.f32 1e-05, %v3013_v28  ;;  %v3073_v63 = vmul.f32 %v4087_v10, %v3072_v53 }
 0x549   : > { %v3079_v52 = vmul.f32 %v4089_v57, %v3044_v54  ;;  %v2891_v22 = vpop.xlane.xlu2 %2890  ;;  %vm3085_vm6 = vweird.f32 %v4089_v57 }
 0x54a   : > { %4090 = vrsqrt.f32 %v3045_v20  ;;  %v3077_v4 = vsel %vm3076_vm5, %v4087_v10, %v3073_v63  ;;  %v5576_v58 = vmul.f32 0.03125, %v2891_v22  ;;  %vm3086_vm8 = vmor %vm3084_vm7, %vm3085_vm6  ;;  %vm3094_vm10 = vweird.f32 %v3045_v20 }
 0x54b   : > { %v3080_v12 = vmul.f32 %v4089_v57, %v3079_v52  ;;  %v2955_v62 = vpop.xlane.xlu1 %2954  ;;  %v3219_v32 = vmul.f32 %v3077_v4, %v3027_v31 }
 0x54c   : > { %v2998_v13 = vmul.f32 %v5576_v58, %v5576_v58  ;;  %v2982_v38 = vmul.f32 0.03125, %v2955_v62 }
 0x54d   : > { %v3081_v19 = vmul.f32 0.5, %v3080_v12  ;;  %v3239_v44 = vmul.f32 %v5573_v5, %v3219_v32 }
 0x54e   : > { %v3014_v49 = vsub.f32 %v2982_v38, %v2998_v13 }
 0x54f   : > { %v3082_v27 = vsub.f32 1.5, %v3081_v19  ;;  %v3259_v33 = vadd.f32 %v5582_v21, %v3239_v44 }
 0x550   : > { %v4091_v26 = vpop.eup %4090  ;;  %v3046_v45 = vadd.f32 1e-05, %v3014_v49 }
 0x551   : > { %v3083_v3 = vmul.f32 %v4089_v57, %v3082_v27  ;;  %v3089_v18 = vmul.f32 %v4091_v26, %v3045_v20  ;;  %v2893_v0 = vpop.xlane.xlu0 %2892  ;;  %v3290_v29 = vpack.c.bf16 %v3259_v33, %v3258_v7  ;;  %vm3095_vm9 = vweird.f32 %v4091_v26 }
 0x552   : > { %4092 = vrsqrt.f32 %v3046_v45  ;;  %v5589_v48 = vmul.f32 0.03125, %v2893_v0  ;;  %vm3096_vm11 = vmor %vm3094_vm10, %vm3095_vm9  ;;  %vm3104_vm13 = vweird.f32 %v3046_v45 }
 0x553   : > { %v3090_v42 = vmul.f32 %v4091_v26, %v3089_v18  ;;  %v2957_v14 = vpop.xlane.xlu2 %2956  ;;  %3358 = vmatmul.bf16.vlgmr.msrb.gmra.mxu2 %v3290_v29  ;;  %v3087_v11 = vsel %vm3086_vm8, %v4089_v57, %v3083_v3  ;;  %v3030_v3 = vsub.f32 %v5466_v15, %v5576_v58 }
 0x554   : > { %v2999_v36 = vmul.f32 %v5589_v48, %v5589_v48  ;;  %v2983_v10 = vmul.f32 0.03125, %v2957_v14  ;;  %v3220_v54 = vmul.f32 %v3087_v11, %v3028_v35 }
 0x555   : > { %v3091_v2 = vmul.f32 0.5, %v3090_v42 }
 0x556   : > { %v3015_v56 = vsub.f32 %v2983_v10, %v2999_v36  ;;  %v3240_v46 = vmul.f32 %v5573_v5, %v3220_v54  ;;  %v3031_v10 = vsub.f32 %v5475_v51, %v5589_v48 }
 0x557   : > { %v3092_v9 = vsub.f32 1.5, %v3091_v2 }
 0x558   : > { %v4093_v61 = vpop.eup %4092  ;;  %v3047_v25 = vadd.f32 1e-05, %v3015_v56  ;;  %v3260_v22 = vadd.f32 %v5582_v21, %v3240_v46 }
 0x559   : > { %v3093_v50 = vmul.f32 %v4091_v26, %v3092_v9  ;;  %v3099_v1 = vmul.f32 %v4093_v61, %v3046_v45  ;;  %v2895_v43 = vpop.xlane.xlu0 %2894  ;;  %vm3105_vm12 = vweird.f32 %v4093_v61 }
 0x55a   : > { %4094 = vrsqrt.f32 %v3047_v25  ;;  %v5597_v28 = vmul.f32 0.03125, %v2895_v43  ;;  %vm3106_vm14 = vmor %vm3104_vm13, %vm3105_vm12  ;;  %vm3114_vm0 = vweird.f32 %v3047_v25 }
 0x55b   : > { %v3097_v53 = vsel %vm3096_vm11, %v4091_v26, %v3093_v50  ;;  %v3100_v57 = vmul.f32 %v4093_v61, %v3099_v1  ;;  %v2959_v55 = vpop.xlane.xlu2 %2958 }
 0x55c   : > { %v3221_v23 = vmul.f32 %v3097_v53, %v3029_v39  ;;  %v3000_v63 = vmul.f32 %v5597_v28, %v5597_v28  ;;  %v2984_v20 = vmul.f32 0.03125, %v2959_v55 }
 0x55d   : > { %v3101_v52 = vmul.f32 0.5, %v3100_v57 }
 0x55e   : > { %v3241_v31 = vmul.f32 %v5573_v5, %v3221_v23  ;;  %v3016_v16 = vsub.f32 %v2984_v20, %v3000_v63 }
 0x55f   : > { %v3102_v34 = vsub.f32 1.5, %v3101_v52 }
 0x560   : > { %v3261_v4 = vadd.f32 %v5582_v21, %v3241_v31  ;;  %v4095_v12 = vpop.eup %4094  ;;  %v3048_v62 = vadd.f32 1e-05, %v3016_v16 }
 0x561   : > { %v3103_v32 = vmul.f32 %v4093_v61, %v3102_v34  ;;  %v3109_v8 = vmul.f32 %v4095_v12, %v3047_v25  ;;  %v2897_v19 = vpop.xlane.xlu1 %2896  ;;  %vm3115_vm15 = vweird.f32 %v4095_v12 }
 0x562   : > { %v3291_v13 = vpack.c.bf16 %v3261_v4, %v3260_v22  ;;  %4096 = vrsqrt.f32 %v3048_v62  ;;  %v5605_v38 = vmul.f32 0.03125, %v2897_v19  ;;  %vm3116_vm1 = vmor %vm3114_vm0, %vm3115_vm15  ;;  %vm3124_vm3 = vweird.f32 %v3048_v62 }
 0x563   : > { %v3110_v44 = vmul.f32 %v4095_v12, %v3109_v8  ;;  %v2961_v27 = vpop.xlane.xlu0 %2960  ;;  %v3107_v33 = vsel %vm3106_vm14, %v4093_v61, %v3103_v32  ;;  %v3032_v4 = vsub.f32 %v5484_v59, %v5597_v28 }
 0x564   : > { %3363 = vmatmul.bf16.gmra.mxu2 %v3291_v13  ;;  %v3001_v49 = vmul.f32 %v5605_v38, %v5605_v38  ;;  %v2985_v26 = vmul.f32 0.03125, %v2961_v27  ;;  %v3222_v14 = vmul.f32 %v3107_v33, %v3030_v3 }
 0x565   : > { %v3111_v7 = vmul.f32 0.5, %v3110_v44 }
 0x566   : > { %v3017_v18 = vsub.f32 %v2985_v26, %v3001_v49  ;;  %v3242_v61 = vmul.f32 %v5573_v5, %v3222_v14  ;;  %v3033_v49 = vsub.f32 %v5490_v24, %v5605_v38 }
 0x567   : > { %v3112_v0 = vsub.f32 1.5, %v3111_v7 }
 0x568   : > { %v4097_v29 = vpop.eup %4096  ;;  %v3049_v42 = vadd.f32 1e-05, %v3017_v18  ;;  %v3262_v43 = vadd.f32 %v5582_v21, %v3242_v61 }
 0x569   : > { %v3113_v45 = vmul.f32 %v4095_v12, %v3112_v0  ;;  %v3119_v2 = vmul.f32 %v4097_v29, %v3048_v62  ;;  %v2899_v36 = vpop.xlane.xlu1 %2898  ;;  %vm3125_vm2 = vweird.f32 %v4097_v29 }
 0x56a   : > { %4098 = vrsqrt.f32 %v3049_v42  ;;  %v5613_v11 = vmul.f32 0.03125, %v2899_v36  ;;  %vm3126_vm4 = vmor %vm3124_vm3, %vm3125_vm2  ;;  %vm3134_vm6 = vweird.f32 %v3049_v42 }
 0x56b   : > { %v3120_v35 = vmul.f32 %v4097_v29, %v3119_v2  ;;  %v2963_v9 = vpop.xlane.xlu0 %2962  ;;  %v3117_v15 = vsel %vm3116_vm1, %v4095_v12, %v3113_v45 }
 0x56c   : > { %v3002_v58 = vmul.f32 %v5613_v11, %v5613_v11  ;;  %v2986_v56 = vmul.f32 0.03125, %v2963_v9  ;;  %v3223_v54 = vmul.f32 %v3117_v15, %v3031_v10 }
 0x56d   : > { %v3121_v50 = vmul.f32 0.5, %v3120_v35 }
 0x56e   : > { %v3018_v25 = vsub.f32 %v2986_v56, %v3002_v58  ;;  %v3243_v39 = vmul.f32 %v5573_v5, %v3223_v54 }
 0x56f   : > { %v3122_v1 = vsub.f32 1.5, %v3121_v50 }
 0x570   : > { %v4099_v51 = vpop.eup %4098  ;;  %v3050_v48 = vadd.f32 1e-05, %v3018_v25  ;;  %v3263_v53 = vadd.f32 %v5582_v21, %v3243_v39 }
 0x571   : > { %v3123_v57 = vmul.f32 %v4097_v29, %v3122_v1  ;;  %v3129_v55 = vmul.f32 %v4099_v51, %v3049_v42  ;;  %v2901_v23 = vpop.xlane.xlu2 %2900  ;;  %vm3135_vm5 = vweird.f32 %v4099_v51  ;;  %v3034_v1 = vsub.f32 %v5499_v47, %v5613_v11 }
 0x572   : > { %4100 = vrsqrt.f32 %v3050_v48  ;;  %v5621_v46 = vmul.f32 0.03125, %v2901_v23  ;;  %v3292_v63 = vpack.c.bf16 %v3263_v53, %v3262_v43  ;;  %vm3136_vm7 = vmor %vm3134_vm6, %vm3135_vm5  ;;  %vm3144_vm9 = vweird.f32 %v3050_v48 }
 0x573   : > { %v3130_v20 = vmul.f32 %v4099_v51, %v3129_v55  ;;  %v2965_v52 = vpop.xlane.xlu1 %2964  ;;  %v3127_v22 = vsel %vm3126_vm4, %v4097_v29, %v3123_v57 }
 0x574   : > { %v3003_v31 = vmul.f32 %v5621_v46, %v5621_v46  ;;  %v2987_v16 = vmul.f32 0.03125, %v2965_v52  ;;  %3368 = vmatmul.bf16.gmra.mxu2 %v3292_v63  ;;  %v3224_v13 = vmul.f32 %v3127_v22, %v3032_v4 }
 0x575   : > { %v3131_v34 = vmul.f32 0.5, %v3130_v20  ;;  %v3035_v20 = vsub.f32 %v5508_v60, %v5621_v46 }
 0x576   : > { %v3019_v12 = vsub.f32 %v2987_v16, %v3003_v31  ;;  %v3244_v0 = vmul.f32 %v5573_v5, %v3224_v13 }
 0x577   : > { %v3132_v32 = vsub.f32 1.5, %v3131_v34 }
 0x578   : > { %v4101_v8 = vpop.eup %4100  ;;  %v3051_v19 = vadd.f32 1e-05, %v3019_v12  ;;  %v3264_v2 = vadd.f32 %v5582_v21, %v3244_v0 }
 0x579   : > { %v3133_v62 = vmul.f32 %v4099_v51, %v3132_v32  ;;  %v3139_v44 = vmul.f32 %v4101_v8, %v3050_v48  ;;  %v2903_v27 = vpop.xlane.xlu2 %2902  ;;  %vm3145_vm8 = vweird.f32 %v4101_v8 }
 0x57a   : > { %4102 = vrsqrt.f32 %v3051_v19  ;;  %v5629_v26 = vmul.f32 0.03125, %v2903_v27  ;;  %vm3146_vm10 = vmor %vm3144_vm9, %vm3145_vm8  ;;  %vm3154_vm12 = vweird.f32 %v3051_v19 }
 0x57b   : > { %v3140_v7 = vmul.f32 %v4101_v8, %v3139_v44  ;;  %v2967_v33 = vpop.xlane.xlu1 %2966  ;;  %v3137_v59 = vsel %vm3136_vm7, %v4099_v51, %v3133_v62 }
 0x57c   : > { %v3004_v28 = vmul.f32 %v5629_v26, %v5629_v26  ;;  %v2988_v3 = vmul.f32 0.03125, %v2967_v33  ;;  %v3225_v18 = vmul.f32 %v3137_v59, %v3033_v49 }
 0x57d   : > { %v3141_v29 = vmul.f32 0.5, %v3140_v7 }
 0x57e   : > { %v3020_v42 = vsub.f32 %v2988_v3, %v3004_v28  ;;  %v3245_v14 = vmul.f32 %v5573_v5, %v3225_v18 }
 0x57f   : > { %v3142_v45 = vsub.f32 1.5, %v3141_v29 }
 0x580   : > { %v4103_v24 = vpop.eup %4102  ;;  %v3052_v38 = vadd.f32 1e-05, %v3020_v42  ;;  %v3265_v36 = vadd.f32 %v5582_v21, %v3245_v14  ;;  %v3036_v42 = vsub.f32 %v5514_v37, %v5629_v26 }
 0x581   : > { %v3143_v10 = vmul.f32 %v4101_v8, %v3142_v45  ;;  %v3149_v35 = vmul.f32 %v4103_v24, %v3051_v19  ;;  %v2905_v9 = vpop.xlane.xlu0 %2904  ;;  %vm3155_vm11 = vweird.f32 %v4103_v24 }
 0x582   : > { %4104 = vrsqrt.f32 %v3052_v38  ;;  %v5637_v15 = vmul.f32 0.03125, %v2905_v9  ;;  %v3293_v58 = vpack.c.bf16 %v3265_v36, %v3264_v2  ;;  %vm3156_vm13 = vmor %vm3154_vm12, %vm3155_vm11  ;;  %vm3164_vm15 = vweird.f32 %v3052_v38 }
 0x583   : > { %v3150_v56 = vmul.f32 %v4103_v24, %v3149_v35  ;;  %v2969_v54 = vpop.xlane.xlu2 %2968  ;;  %v3147_v39 = vsel %vm3146_vm10, %v4101_v8, %v3143_v10 }
 0x584   : > { %v3005_v61 = vmul.f32 %v5637_v15, %v5637_v15  ;;  %v2989_v50 = vmul.f32 0.03125, %v2969_v54  ;;  %3373 = vmatmul.bf16.gmra.mxu2 %v3293_v58  ;;  %v3226_v55 = vmul.f32 %v3147_v39, %v3034_v1  ;;  %v3037_v9 = vsub.f32 %v5523_v30, %v5637_v15 }
 0x585   : > { %v3151_v25 = vmul.f32 0.5, %v3150_v56 }
 0x586   : > { %v3021_v51 = vsub.f32 %v2989_v50, %v3005_v61  ;;  %v3246_v4 = vmul.f32 %v5573_v5, %v3226_v55 }
 0x587   : > { %v3152_v43 = vsub.f32 1.5, %v3151_v25 }
 0x588   : > { %v4105_v53 = vpop.eup %4104  ;;  %v3053_v57 = vadd.f32 1e-05, %v3021_v51  ;;  %v3266_v13 = vadd.f32 %v5582_v21, %v3246_v4 }
 0x589   : > { %v3153_v48 = vmul.f32 %v4103_v24, %v3152_v43  ;;  %v3159_v23 = vmul.f32 %v4105_v53, %v3052_v38  ;;  %v2907_v63 = vpop.xlane.xlu0 %2906  ;;  %vm3165_vm14 = vweird.f32 %v4105_v53 }
 0x58a   : > { %4106 = vrsqrt.f32 %v3053_v57  ;;  %v5645_v52 = vmul.f32 0.03125, %v2907_v63  ;;  %vm3166_vm0 = vmor %vm3164_vm15, %vm3165_vm14  ;;  %vm3174_vm2 = vweird.f32 %v3053_v57 }
 0x58b   : > { %v3160_v31 = vmul.f32 %v4105_v53, %v3159_v23  ;;  %v2971_v16 = vpop.xlane.xlu2 %2970  ;;  %v3157_v47 = vsel %vm3156_vm13, %v4103_v24, %v3153_v48 }
 0x58c   : > { %v3006_v11 = vmul.f32 %v5645_v52, %v5645_v52  ;;  %v2990_v34 = vmul.f32 0.03125, %v2971_v16  ;;  %v3227_v22 = vmul.f32 %v3157_v47, %v3035_v20  ;;  %v3038_v4 = vsub.f32 %v5529_v40, %v5645_v52 }
 0x58d   : > { %v3161_v12 = vmul.f32 0.5, %v3160_v31 }
 0x58e   : > { %v3022_v32 = vsub.f32 %v2990_v34, %v3006_v11  ;;  %v3247_v8 = vmul.f32 %v5573_v5, %v3227_v22 }
 0x58f   : > { %v3162_v19 = vsub.f32 1.5, %v3161_v12 }
 0x590   : > { %v4107_v60 = vpop.eup %4106  ;;  %v3054_v46 = vadd.f32 1e-05, %v3022_v32  ;;  %v3267_v62 = vadd.f32 %v5582_v21, %v3247_v8 }
 0x591   : > { %v3163_v44 = vmul.f32 %v4105_v53, %v3162_v19  ;;  %v3169_v27 = vmul.f32 %v4107_v60, %v3053_v57  ;;  %v2909_v49 = vpop.xlane.xlu1 %2908  ;;  %vm3175_vm1 = vweird.f32 %v4107_v60 }
 0x592   : > { %4108 = vrsqrt.f32 %v3054_v46  ;;  %v5653_v7 = vmul.f32 0.03125, %v2909_v49  ;;  %v3294_v33 = vpack.c.bf16 %v3267_v62, %v3266_v13  ;;  %vm3176_vm3 = vmor %vm3174_vm2, %vm3175_vm1  ;;  %vm3184_vm5 = vweird.f32 %v3054_v46 }
 0x593   : > { %v3170_v59 = vmul.f32 %v4107_v60, %v3169_v27  ;;  %v2973_v28 = vpop.xlane.xlu0 %2972  ;;  %v3167_v29 = vsel %vm3166_vm0, %v4105_v53, %v3163_v44 }
 0x594   : > { %v3007_v3 = vmul.f32 %v5653_v7, %v5653_v7  ;;  %v2991_v18 = vmul.f32 0.03125, %v2973_v28  ;;  %3378 = vmatmul.bf16.gmra.mxu2 %v3294_v33  ;;  %v3228_v36 = vmul.f32 %v3167_v29, %v3036_v42  ;;  %v3039_v62 = vsub.f32 %v5535_v17, %v5653_v7 }
 0x595   : > { %v3171_v0 = vmul.f32 0.5, %v3170_v59 }
 0x596   : > { %v3023_v14 = vsub.f32 %v2991_v18, %v3007_v3  ;;  %v3248_v25 = vmul.f32 %v5573_v5, %v3228_v36 }
 0x597   : > { %v3172_v45 = vsub.f32 1.5, %v3171_v0 }
 0x598   : > { %v4109_v24 = vpop.eup %4108  ;;  %v3055_v2 = vadd.f32 1e-05, %v3023_v14  ;;  %v3268_v53 = vadd.f32 %v5582_v21, %v3248_v25 }
 0x599   : > { %v3173_v38 = vmul.f32 %v4107_v60, %v3172_v45  ;;  %v3179_v10 = vmul.f32 %v4109_v24, %v3054_v46  ;;  %v2911_v35 = vpop.xlane.xlu1 %2910  ;;  %vm3185_vm4 = vweird.f32 %v4109_v24 }
 0x59a   : > { %4110 = vrsqrt.f32 %v3055_v2  ;;  %v5661_v58 = vmul.f32 0.03125, %v2911_v35  ;;  %vm3186_vm6 = vmor %vm3184_vm5, %vm3185_vm4  ;;  %vm3194_vm8 = vweird.f32 %v3055_v2 }
 0x59b   : > { %v3180_v56 = vmul.f32 %v4109_v24, %v3179_v10  ;;  %v2975_v54 = vpop.xlane.xlu0 %2974  ;;  %v3177_v37 = vsel %vm3176_vm3, %v4107_v60, %v3173_v38 }
 0x59c   : > { %v3008_v26 = vmul.f32 %v5661_v58, %v5661_v58  ;;  %v2992_v61 = vmul.f32 0.03125, %v2975_v54  ;;  %v3229_v50 = vmul.f32 %v3177_v37, %v3037_v9  ;;  %v3040_v45 = vsub.f32 %v5544_v41, %v5661_v58 }
 0x59d   : > { %v3181_v39 = vmul.f32 0.5, %v3180_v56 }
 0x59e   : > { %v3024_v1 = vsub.f32 %v2992_v61, %v3008_v26  ;;  %v3249_v51 = vmul.f32 %v5573_v5, %v3229_v50  ;;  %v3955_v26 = vld [vmem:[%s5725_s21] ss:$0 sm:$0xff] }
 0x59f   : > { %v3182_v43 = vsub.f32 1.5, %v3181_v39 }
 0x5a0   : > { %v4111_v30 = vpop.eup %4110  ;;  %v3056_v15 = vadd.f32 1e-05, %v3024_v1  ;;  %v3269_v57 = vadd.f32 %v5582_v21, %v3249_v51 }
 0x5a1   : > { %v3183_v55 = vmul.f32 %v4109_v24, %v3182_v43  ;;  %v3189_v48 = vmul.f32 %v4111_v30, %v3055_v2  ;;  %v2913_v23 = vpop.xlane.xlu2 %2912  ;;  %vm3195_vm7 = vweird.f32 %v4111_v30 }
 0x5a2   : > { %4112 = vrsqrt.f32 %v3056_v15  ;;  %v2929_v63 = vmul.f32 0.03125, %v2913_v23  ;;  %v3295_v20 = vpack.c.bf16 %v3269_v57, %v3268_v53  ;;  %vm3196_vm9 = vmor %vm3194_vm8, %vm3195_vm7  ;;  %vm3204_vm11 = vweird.f32 %v3056_v15 }
 0x5a3   : > { %v3190_v31 = vmul.f32 %v4111_v30, %v3189_v48  ;;  %v2977_v16 = vpop.xlane.xlu1 %2976  ;;  %v3187_v34 = vsel %vm3186_vm6, %v4109_v24, %v3183_v55 }
 0x5a4   : > { %v3009_v47 = vmul.f32 %v2929_v63, %v2929_v63  ;;  %v2993_v11 = vmul.f32 0.03125, %v2977_v16  ;;  %3383 = vmatmul.bf16.gmra.mxu2 %v3295_v20  ;;  %v3230_v60 = vmul.f32 %v3187_v34, %v3038_v4  ;;  %v3041_v38 = vsub.f32 %v5550_v6, %v2929_v63 }
 0x5a5   : > { %v3191_v22 = vmul.f32 0.5, %v3190_v31 }
 0x5a6   : > { %v3025_v12 = vsub.f32 %v2993_v11, %v3009_v47  ;;  %v3250_v33 = vmul.f32 %v5573_v5, %v3230_v60 }
 0x5a7   : > { %v3192_v32 = vsub.f32 1.5, %v3191_v22 }
 0x5a8   : > { %v4113_v8 = vpop.eup %4112  ;;  %v3057_v19 = vadd.f32 1e-05, %v3025_v12  ;;  %v3270_v3 = vadd.f32 %v5582_v21, %v3250_v33 }
 0x5a9   : > { %v3193_v13 = vmul.f32 %v4111_v30, %v3192_v32  ;;  %v3199_v46 = vmul.f32 %v4113_v8, %v3056_v15  ;;  %vm3205_vm10 = vweird.f32 %v4113_v8 }
 0x5aa   : > { %4114 = vrsqrt.f32 %v3057_v19  ;;  %vm3206_vm12 = vmor %vm3204_vm11, %vm3205_vm10  ;;  %vm3214_vm14 = vweird.f32 %v3057_v19 }
 0x5ab   : > { %v3197_v44 = vsel %vm3196_vm9, %v4111_v30, %v3193_v13  ;;  %v3200_v27 = vmul.f32 %v4113_v8, %v3199_v46 }
 0x5ac   : > { %v3231_v49 = vmul.f32 %v3197_v44, %v3039_v62 }
 0x5ad   : > { %v3201_v40 = vmul.f32 0.5, %v3200_v27 }
 0x5ae   : > { %v3251_v52 = vmul.f32 %v5573_v5, %v3231_v49 }
 0x5af   : > { %v3202_v59 = vsub.f32 1.5, %v3201_v40 }
 0x5b0   : > { %v4115_v28 = vpop.eup %4114  ;;  %v3271_v18 = vadd.f32 %v5582_v21, %v3251_v52 }
 0x5b1   : > { %v3203_v0 = vmul.f32 %v4113_v8, %v3202_v59  ;;  %v3209_v29 = vmul.f32 %v4115_v28, %v3057_v19  ;;  %vm3215_vm13 = vweird.f32 %v4115_v28 }
 0x5b2   : > { %v3296_v17 = vpack.c.bf16 %v3271_v18, %v3270_v3  ;;  %vm3216_vm15 = vmor %vm3214_vm14, %vm3215_vm13 }
 0x5b3   : > { %v3210_v7 = vmul.f32 %v4115_v28, %v3209_v29  ;;  %v3207_v42 = vsel %vm3206_vm12, %v4113_v8, %v3203_v0 }
 0x5b4   : > { %3388 = vmatmul.bf16.gmra.mxu2 %v3296_v17  ;;  %v3232_v2 = vmul.f32 %v3207_v42, %v3040_v45 }
 0x5b5   : > { %v3211_v14 = vmul.f32 0.5, %v3210_v7 }
 0x5b6   : > { %v3252_v9 = vmul.f32 %v5573_v5, %v3232_v2 }
 0x5b7   : > { %v3212_v24 = vsub.f32 1.5, %v3211_v14 }
 0x5b8   : > { %v3272_v54 = vadd.f32 %v5582_v21, %v3252_v9 }
 0x5b9   : > { %v3213_v36 = vmul.f32 %v4115_v28, %v3212_v24 }
 0x5bb   : > { %v3217_v10 = vsel %vm3216_vm15, %v4115_v28, %v3213_v36 }
 0x5bc   : > { %v3233_v35 = vmul.f32 %v3217_v10, %v3041_v38 }
 0x5be   : > { %v3253_v56 = vmul.f32 %v5573_v5, %v3233_v35 }
 0x5c0   : > { %v3273_v37 = vadd.f32 %v5582_v21, %v3253_v56 }
 0x5c2   : > { %v3297_v41 = vpack.c.bf16 %v3273_v37, %v3272_v54 }
 0x5c4   : > { %3393 = vmatmul.bf16.gmra.mxu2 %v3297_v41 }
 0x5d6   : > { %v3359_v58 = vpop.f32.mrf.mxu2 }
 0x5d7   : > { %v3360_v61 = vadd.f32 %v3955_v26, %v3359_v58 }
 0x5de   : > { %v3361_v6 = vpop.f32.mrf.mxu2 }
 0x5df   : > { %v3362_v50 = vadd.f32 %v3955_v26, %v3361_v6 }
 0x5e1   : > { %v3867_v5 = vpack.c.bf16 %v3362_v50, %v3360_v61 }
 0x5e3   : > { %3868 = vst [vmem:[%s5691_s8] sm:$0xff] %v3867_v5  }
 0x5e7   : > { %v3364_v21 = vpop.f32.mrf.mxu2 }
 0x5e8   : > { %v3365_v39 = vadd.f32 %v3955_v26, %v3364_v21 }
 0x5ef   : > { %v3366_v25 = vpop.f32.mrf.mxu2 }
 0x5f0   : > { %v3367_v1 = vadd.f32 %v3955_v26, %v3366_v25 }
 0x5f2   : > { %v3872_v51 = vpack.c.bf16 %v3367_v1, %v3365_v39 }
 0x5f4   : > { %3904 = vst [vmem:[%s5691_s8 + $0x8] sm:$0xff] %v3872_v51  }
 0x5f7   : > { %v3369_v43 = vpop.f32.mrf.mxu2 }
 0x5f8   : > { %v3370_v15 = vadd.f32 %v3955_v26, %v3369_v43 }
 0x5ff   : > { %v3371_v30 = vpop.f32.mrf.mxu2 }
 0x600   : > { %v3372_v53 = vadd.f32 %v3955_v26, %v3371_v30 }
 0x602   : > { %v3877_v57 = vpack.c.bf16 %v3372_v53, %v3370_v15 }
 0x604   : > { %3905 = vst [vmem:[%s5691_s8 + $0x10] sm:$0xff] %v3877_v57  }
 0x607   : > { %v3374_v55 = vpop.f32.mrf.mxu2 }
 0x608   : > { %v3375_v23 = vadd.f32 %v3955_v26, %v3374_v55 }
 0x60f   : > { %v3376_v48 = vpop.f32.mrf.mxu2 }
 0x610   : > { %v3377_v63 = vadd.f32 %v3955_v26, %v3376_v48 }
 0x612   : > { %v3882_v20 = vpack.c.bf16 %v3377_v63, %v3375_v23 }
 0x614   : > { %3906 = vst [vmem:[%s5691_s8 + $0x18] sm:$0xff] %v3882_v20  }
 0x617   : > { %v3379_v31 = vpop.f32.mrf.mxu2 }
 0x618   : > { %v3380_v47 = vadd.f32 %v3955_v26, %v3379_v31 }
 0x61f   : > { %v3381_v16 = vpop.f32.mrf.mxu2 }
 0x620   : > { %v3382_v11 = vadd.f32 %v3955_v26, %v3381_v16 }
 0x622   : > { %v3887_v34 = vpack.c.bf16 %v3382_v11, %v3380_v47 }
 0x624   : > { %3907 = vst [vmem:[%s5691_s8 + $0x20] sm:$0xff] %v3887_v34  }
 0x627   : > { %v3384_v22 = vpop.f32.mrf.mxu2 }
 0x628   : > { %v3385_v12 = vadd.f32 %v3955_v26, %v3384_v22 }
 0x62f   : > { %v3386_v4 = vpop.f32.mrf.mxu2 }
 0x630   : > { %v3387_v32 = vadd.f32 %v3955_v26, %v3386_v4 }
 0x632   : > { %v3892_v8 = vpack.c.bf16 %v3387_v32, %v3385_v12 }
 0x634   : > { %3908 = vst [vmem:[%s5691_s8 + $0x28] sm:$0xff] %v3892_v8  }
 0x637   : > { %v3389_v19 = vpop.f32.mrf.mxu2 }
 0x638   : > { %v3390_v13 = vadd.f32 %v3955_v26, %v3389_v19 }
 0x63f   : > { %v3391_v60 = vpop.f32.mrf.mxu2 }
 0x640   : > { %v3392_v46 = vadd.f32 %v3955_v26, %v3391_v60 }
 0x642   : > { %v3897_v62 = vpack.c.bf16 %v3392_v46, %v3390_v13 }
 0x644   : > { %3909 = vst [vmem:[%s5691_s8 + $0x30] sm:$0xff] %v3897_v62  }
 0x647   : > { %v3394_v44 = vpop.f32.mrf.mxu2 }
 0x648   : > { %v3395_v49 = vadd.f32 %v3955_v26, %v3394_v44 }
 0x64f   : > { %v3396_v27 = vpop.f32.mrf.mxu2 }
 0x650   : > { %v3397_v33 = vadd.f32 %v3955_v26, %v3396_v27 }
 0x652   : > { %v3902_v40 = vpack.c.bf16 %v3397_v33, %v3395_v49 }
 0x654   : > { %3910 = vst [vmem:[%s5691_s8 + $0x38] sm:$0xff] %v3902_v40  }
 0x655 PF: > { %s35_s5 = sadd.s32 1, %s4122_s5  }
 0x656   : > { %p32_p4 = scmp.ge.s32.totalorder %s35_s5, 4  }
 0x658   :  { %34 = sbr.rel (!%p32_p4) target bundleno = 10 (0xa), region = 165 }

</bundles_post_ra>
